<compile_context>
chip_gen: v7x
topology: tpu7x:2x2x1
jax: 0.10.0
libtpu: 0.0.40
codegen_flags: <defaults>
</compile_context>

<pallas_src>
import jax
import jax.numpy as jnp
from jax import lax
from jax.experimental import pallas as pl
from jax.experimental.pallas import tpu as pltpu

EPS = 1e-5
LANE = 128


def _round_up(v, m):
    return ((v + m - 1) // m) * m


def _out_size(n, stride):
    # 3x3 conv, pad=1, stride s (== 1x1 conv, no pad, stride s):
    #   floor((n + 2 - 3)/s) + 1 == floor((n - 1)/s) + 1
    return (n - 1) // stride + 1


# ------------------------------ fused kernel -------------------------------- #

def _make_fused_residual_kernel(H, W, Cin, Cout, Co_p, Ho, Wo, stride,
                                use_1x1conv, compute_dtype):
    """One grid step = one batch element: conv1+bn1+relu -> conv2+bn2 -> +skip -> relu."""
    f32 = jnp.float32
    taps = [(dy, dx) for dy in range(3) for dx in range(3)]   # t = 3*dy + dx

    def window(ref, dy, dx):
        """(Ho, Wo, C) window of a zero-framed scratch, strided by `stride`."""
        if stride == 1:
            return ref[dy:dy + Ho, dx:dx + Wo, :]
        return ref[pl.ds(dy, Ho, stride), pl.ds(dx, Wo, stride), :]

    def zero_frame(ref, nrows, ncols):
        """Zero only the 1-pixel frame of the used (nrows x ncols) region.

        The interior is fully overwritten every grid step and columns >= ncols
        are never read, so a full-buffer zero pass is unnecessary.
        """
        c = ref.shape[-1]
        zrow = jnp.zeros((1, ncols, c), ref.dtype)
        ref[0:1, 0:ncols, :] = zrow
        ref[nrows - 1:nrows, 0:ncols, :] = zrow
        zcol = jnp.zeros((nrows - 2, 1, c), ref.dtype)
        ref[1:nrows - 1, 0:1, :] = zcol
        ref[1:nrows - 1, ncols - 1:ncols, :] = zcol

    def kernel(*refs):
        if use_1x1conv:
            (x_ref, w1_ref, s1_ref, o1_ref, w2_ref, s2_ref, o2_ref,
             w3_ref, b3_ref, out_ref, xpad, ypad) = refs
        else:
            (x_ref, w1_ref, s1_ref, o1_ref, w2_ref, s2_ref, o2_ref,
             out_ref, xpad, ypad) = refs

        # ---- stage x into the zero-framed halo scratch (single cast copy) --
        zero_frame(xpad, H + 2, W + 2)
        xpad[1:H + 1, 1:W + 1, :] = x_ref[0].astype(compute_dtype)

        # ---- conv1: dense im2col dot (K = 9*Cin) + folded BN1 + ReLU -------
        p1 = jnp.concatenate([window(xpad, dy, dx) for dy, dx in taps], axis=-1)
        acc1 = lax.dot_general(p1, w1_ref[...],
                               dimension_numbers=(((2,), (0,)), ((), ())),
                               preferred_element_type=f32)           # (Ho,Wo,Co_p)
        y = jnp.maximum(acc1 * s1_ref[0] + o1_ref[0], 0.0)

        # ---- y never leaves the chip: stash it zero-framed in VMEM ---------
        zero_frame(ypad, Ho + 2, Wo + 2)
        ypad[1:Ho + 1, 1:Wo + 1, :] = y.astype(compute_dtype)

        # ---- conv2: dense im2col dot (K = 9*Co_p, lane-aligned) + BN2 ------
        p2 = jnp.concatenate([ypad[dy:dy + Ho, dx:dx + Wo, :] for dy, dx in taps],
                             axis=-1)
        acc2 = lax.dot_general(p2, w2_ref[...],
                               dimension_numbers=(((2,), (0,)), ((), ())),
                               preferred_element_type=f32)           # (Ho,Wo,Co_p)
        z = acc2 * s2_ref[0] + o2_ref[0]

        # ---- shortcut in f32 straight from the (unpadded) input block ------
        if stride == 1:
            xs = x_ref[0]                                            # (Ho,Wo,Cin) f32
        else:
            xs = x_ref[0, pl.ds(0, Ho, stride), pl.ds(0, Wo, stride), :]
        if use_1x1conv:
            skip = lax.dot_general(xs, w3_ref[...],
                                   dimension_numbers=(((2,), (0,)), ((), ())),
                                   preferred_element_type=f32) + b3_ref[0]
        else:
            skip = xs                                                # Cin == Cout
            if Co_p > Cin:
                skip = jnp.concatenate(
                    [skip, jnp.zeros((Ho, Wo, Co_p - Cin), f32)], axis=-1)

        # ---- residual add + ReLU, lane-dense (Co_p) store -------------------
        out_ref[0] = jnp.maximum(z + skip, 0.0).astype(out_ref.dtype)

    return kernel


# ----------------------------- pallas_call wrapper --------------------------- #

def residual_forward_pallas(x_nchw, p, use_1x1conv=False, strides=1,
                            compute_dtype=jnp.float32):
    """Forward pass of the Residual module. x_nchw: (N, Cin, H, W) float32.

    compute_dtype: dtype of the matmul operands and of the halo scratches. Use
    jnp.bfloat16 on any TPU generation (v5e's MXU is bf16-native too) to hit the
    MXU bf16 rate and halve scratch/window traffic; BN, residual add, the
    shortcut path and all accumulation stay in float32.
    """
    N, Cin, H, W = x_nchw.shape
    Cout = p["w1"].shape[0]
    if not use_1x1conv:
        assert Cin == Cout and strides == 1, \
            "identity shortcut requires Cin==Cout and stride 1 (as in the PyTorch module)"
    Ho, Wo = _out_size(H, strides), _out_size(W, strides)
    Co_p = _round_up(Cout, LANE)              # lane-dense output / intermediate channels

    # NCHW -> NHWC (channels on the lane dim).
    x = jnp.transpose(x_nchw, (0, 2, 3, 1))

    # Fold eval-mode BatchNorm + conv bias into per-channel scale / offset:
    #   bn(conv(x) + b) = s * conv_nobias(x) + (beta + s * (b - mean))
    s1 = p["bn1_gamma"] / jnp.sqrt(p["bn1_var"] + EPS)
    o1 = p["bn1_beta"] + s1 * (p["b1"] - p["bn1_mean"])
    s2 = p["bn2_gamma"] / jnp.sqrt(p["bn2_var"] + EPS)
    o2 = p["bn2_beta"] + s2 * (p["b2"] - p["bn2_mean"])

    def pad_c(v):                              # (Cout,) -> (1, Co_p) f32, zero-padded
        return jnp.pad(v, (0, Co_p - Cout)).reshape(1, Co_p).astype(jnp.float32)

    # conv1 weights: OIHW -> im2col matrix (9*Cin, Co_p); row index = (3*dy+dx)*Cin + c.
    w1 = jnp.transpose(p["w1"], (2, 3, 1, 0)).reshape(9 * Cin, Cout)
    w1 = jnp.pad(w1, ((0, 0), (0, Co_p - Cout))).astype(compute_dtype)
    # conv2 weights: both channel axes padded so rows line up with ypad's Co_p lanes.
    w2 = jnp.transpose(p["w2"], (2, 3, 1, 0))                         # (3,3,Cout,Cout)
    w2 = jnp.pad(w2, ((0, 0), (0, 0), (0, Co_p - Cout), (0, Co_p - Cout)))
    w2 = w2.reshape(9 * Co_p, Co_p).astype(compute_dtype)

    kernel = _make_fused_residual_kernel(H, W, Cin, Cout, Co_p, Ho, Wo, strides,
                                         use_1x1conv, compute_dtype)

    in_specs = [
        pl.BlockSpec((1, H, W, Cin), lambda n: (n, 0, 0, 0)),
        pl.BlockSpec((9 * Cin, Co_p), lambda n: (0, 0)),
        pl.BlockSpec((1, Co_p), lambda n: (0, 0)),
        pl.BlockSpec((1, Co_p), lambda n: (0, 0)),
        pl.BlockSpec((9 * Co_p, Co_p), lambda n: (0, 0)),
        pl.BlockSpec((1, Co_p), lambda n: (0, 0)),
        pl.BlockSpec((1, Co_p), lambda n: (0, 0)),
    ]
    args = [x, w1, pad_c(s1), pad_c(o1), w2, pad_c(s2), pad_c(o2)]
    if use_1x1conv:
        # 1x1 shortcut kept in f32 (tiny matmul; avoids bf16 error on the skip path).
        w3 = jnp.transpose(p["w3"][:, :, 0, 0], (1, 0))               # (Cin, Cout)
        w3 = jnp.pad(w3, ((0, 0), (0, Co_p - Cout))).astype(jnp.float32)
        in_specs += [pl.BlockSpec((Cin, Co_p), lambda n: (0, 0)),
                     pl.BlockSpec((1, Co_p), lambda n: (0, 0))]
        args += [w3, pad_c(p["b3"])]

    # Scratch W extents rounded up to a sublane multiple; only cols < W+2 / Wo+2
    # are ever touched.
    wxp = _round_up(W + 2, 8)
    wyp = _round_up(Wo + 2, 8)

    out = pl.pallas_call(
        kernel,
        out_shape=jax.ShapeDtypeStruct((N, Ho, Wo, Co_p), x.dtype),
        grid=(N,),
        in_specs=in_specs,
        out_specs=pl.BlockSpec((1, Ho, Wo, Co_p), lambda n: (n, 0, 0, 0)),
        scratch_shapes=[
            pltpu.VMEM((H + 2, wxp, Cin), compute_dtype),     # zero-framed input halo
            pltpu.VMEM((Ho + 2, wyp, Co_p), compute_dtype),   # zero-framed intermediate y
        ],
        compiler_params=pltpu.CompilerParams(
            # "parallel" batch axis: v7x splits the grid across its 2 TensorCores.
            dimension_semantics=("parallel",),
            # v7x-safe; raise toward 64-96 MiB on v5e/v6e when tiles grow.
            vmem_limit_bytes=48 * 1024 * 1024,
        ),
    )(*args)

    if Co_p != Cout:
        out = out[..., :Cout]
    return jnp.transpose(out, (0, 3, 1, 2))                   # NHWC -> NCHW


# ----------------------- parameters (PyTorch-equivalent) --------------------- #

def init_residual_params(key, in_channels, num_of_channels, use_1x1conv=False):
    C, O = in_channels, num_of_channels
    ks = jax.random.split(key, 16)
    p = {
        "w1": 0.1 * jax.random.normal(ks[0], (O, C, 3, 3), jnp.float32),   # OIHW
        "b1": 0.1 * jax.random.normal(ks[1], (O,), jnp.float32),
        "w2": 0.1 * jax.random.normal(ks[2], (O, O, 3, 3), jnp.float32),
        "b2": 0.1 * jax.random.normal(ks[3], (O,), jnp.float32),
        # BatchNorm2d affine params + running stats (eval mode)
        "bn1_gamma": 1.0 + 0.1 * jax.random.normal(ks[4], (O,), jnp.float32),
        "bn1_beta": 0.1 * jax.random.normal(ks[5], (O,), jnp.float32),
        "bn1_mean": 0.1 * jax.random.normal(ks[6], (O,), jnp.float32),
        "bn1_var": jnp.abs(1.0 + 0.1 * jax.random.normal(ks[7], (O,), jnp.float32)),
        "bn2_gamma": 1.0 + 0.1 * jax.random.normal(ks[8], (O,), jnp.float32),
        "bn2_beta": 0.1 * jax.random.normal(ks[9], (O,), jnp.float32),
        "bn2_mean": 0.1 * jax.random.normal(ks[10], (O,), jnp.float32),
        "bn2_var": jnp.abs(1.0 + 0.1 * jax.random.normal(ks[11], (O,), jnp.float32)),
    }
    if use_1x1conv:
        p["w3"] = 0.1 * jax.random.normal(ks[12], (O, C, 1, 1), jnp.float32)
        p["b3"] = 0.1 * jax.random.normal(ks[13], (O,), jnp.float32)
    return p


# ------------------------------ pure-JAX reference --------------------------- #

def residual_forward_ref(x, p, use_1x1conv=False, strides=1):
    dn = ("NCHW", "OIHW", "NCHW")

    def bn(y, g, b, m, v):
        return ((y - m[None, :, None, None]) / jnp.sqrt(v + EPS)[None, :, None, None]
                * g[None, :, None, None] + b[None, :, None, None])

    y = lax.conv_general_dilated(x, p["w1"], (strides, strides), ((1, 1), (1, 1)),
                                 dimension_numbers=dn) + p["b1"][None, :, None, None]
    y = jax.nn.relu(bn(y, p["bn1_gamma"], p["bn1_beta"], p["bn1_mean"], p["bn1_var"]))
    y = lax.conv_general_dilated(y, p["w2"], (1, 1), ((1, 1), (1, 1)),
                                 dimension_numbers=dn) + p["b2"][None, :, None, None]
    y = bn(y, p["bn2_gamma"], p["bn2_beta"], p["bn2_mean"], p["bn2_var"])
    if use_1x1conv:
        x = lax.conv_general_dilated(x, p["w3"], (strides, strides), ((0, 0), (0, 0)),
                                     dimension_numbers=dn) + p["b3"][None, :, None, None]
    return jax.nn.relu(y + x)


# ----------------------------------- main ------------------------------------ #

if __name__ == "__main__":
    key = jax.random.PRNGKey(0)
    N, H, W = 2, 16, 16

    configs = [
        # (name,                 Cin, Cout, use_1x1conv, strides, compute_dtype, tol)
        ("identity-shortcut f32", 8,   8,   False,       1,       jnp.float32,   1e-3),
        ("1x1-shortcut f32",      4,   8,   True,        1,       jnp.float32,   1e-3),
        ("1x1-shortcut bf16-MXU", 4,   8,   True,        1,       jnp.bfloat16,  5e-2),
    ]

    for name, Cin, Cout, use_1x1, s, cdt, tol in configs:
        kx, kp, key = jax.random.split(key, 3)
        x = jax.random.normal(kx, (N, Cin, H, W), jnp.float32)      # NCHW, like PyTorch
        params = init_residual_params(kp, Cin, Cout, use_1x1)

        out = residual_forward_pallas(x, params, use_1x1, s, compute_dtype=cdt)
        out = jax.block_until_ready(out)

        ref = residual_forward_ref(x, params, use_1x1, s)
        assert out.shape == ref.shape, (name, out.shape, ref.shape)
        max_err = float(jnp.max(jnp.abs(out - ref)))
        assert max_err < tol, f"{name}: max abs err {max_err}"

    print("KERNEL_OK")
</pallas_src>

<mosaic_0001>
module attributes {stable_mosaic.version = 11 : i64} {
  func.func @kernel(%arg0: i32, %arg1: memref<1x16x16x8xf32, #tpu.memory_space<vmem>>, %arg2: memref<72x128xf32, #tpu.memory_space<vmem>>, %arg3: memref<1x128xf32, #tpu.memory_space<vmem>>, %arg4: memref<1x128xf32, #tpu.memory_space<vmem>>, %arg5: memref<1152x128xf32, #tpu.memory_space<vmem>>, %arg6: memref<1x128xf32, #tpu.memory_space<vmem>>, %arg7: memref<1x128xf32, #tpu.memory_space<vmem>>, %arg8: memref<1x16x16x128xf32, #tpu.memory_space<vmem>>, %arg9: memref<18x24x8xf32, #tpu.memory_space<vmem>>, %arg10: memref<18x24x128xf32, #tpu.memory_space<vmem>>) attributes {dimension_semantics = [#tpu.dimension_semantics<parallel>], iteration_bounds = array<i64: 2>, scalar_prefetch = 0 : i64, scratch_operands = 2 : i64, tpu.core_type = #tpu.core_type<tc>, window_params = [{transform_indices = @transform_0, window_bounds = array<i64: 1, 16, 16, 8>}, {pipeline_mode = #tpu.pipeline_mode<synchronous>, transform_indices = @transform_1, window_bounds = array<i64: 72, 128>}, {pipeline_mode = #tpu.pipeline_mode<synchronous>, transform_indices = @transform_2, window_bounds = array<i64: 1, 128>}, {pipeline_mode = #tpu.pipeline_mode<synchronous>, transform_indices = @transform_3, window_bounds = array<i64: 1, 128>}, {pipeline_mode = #tpu.pipeline_mode<synchronous>, transform_indices = @transform_4, window_bounds = array<i64: 1152, 128>}, {pipeline_mode = #tpu.pipeline_mode<synchronous>, transform_indices = @transform_5, window_bounds = array<i64: 1, 128>}, {pipeline_mode = #tpu.pipeline_mode<synchronous>, transform_indices = @transform_6, window_bounds = array<i64: 1, 128>}, {transform_indices = @transform_7, window_bounds = array<i64: 1, 16, 16, 128>}]} {
    %cst = arith.constant 0.000000e+00 : f32
    %0 = vector.broadcast %cst : f32 to vector<1x18x8xf32>
    %c0 = arith.constant 0 : index
    %c0_0 = arith.constant 0 : index
    %c0_1 = arith.constant 0 : index
    %1 = vector.load %arg9[%c0, %c0_0, %c0_1] : memref<18x24x8xf32, #tpu.memory_space<vmem>>, vector<1x18x8xf32>
    tpu.vector_store %arg9[%c0, %c0_0, %c0_1], %0 {strides = array<i32>} : memref<18x24x8xf32, #tpu.memory_space<vmem>>, vector<1x18x8xf32>,
    %c17 = arith.constant 17 : index
    %c0_2 = arith.constant 0 : index
    %c0_3 = arith.constant 0 : index
    %2 = vector.load %arg9[%c17, %c0_2, %c0_3] : memref<18x24x8xf32, #tpu.memory_space<vmem>>, vector<1x18x8xf32>
    tpu.vector_store %arg9[%c17, %c0_2, %c0_3], %0 {strides = array<i32>} : memref<18x24x8xf32, #tpu.memory_space<vmem>>, vector<1x18x8xf32>,
    %cst_4 = arith.constant 0.000000e+00 : f32
    %3 = vector.broadcast %cst_4 : f32 to vector<16x1x8xf32>
    %c1 = arith.constant 1 : index
    %c0_5 = arith.constant 0 : index
    %c0_6 = arith.constant 0 : index
    %4 = vector.load %arg9[%c1, %c0_5, %c0_6] : memref<18x24x8xf32, #tpu.memory_space<vmem>>, vector<16x1x8xf32>
    tpu.vector_store %arg9[%c1, %c0_5, %c0_6], %3 {strides = array<i32>} : memref<18x24x8xf32, #tpu.memory_space<vmem>>, vector<16x1x8xf32>,
    %c1_7 = arith.constant 1 : index
    %c17_8 = arith.constant 17 : index
    %c0_9 = arith.constant 0 : index
    %5 = vector.load %arg9[%c1_7, %c17_8, %c0_9] : memref<18x24x8xf32, #tpu.memory_space<vmem>>, vector<16x1x8xf32>
    tpu.vector_store %arg9[%c1_7, %c17_8, %c0_9], %3 {strides = array<i32>} : memref<18x24x8xf32, #tpu.memory_space<vmem>>, vector<16x1x8xf32>,
    %c0_10 = arith.constant 0 : index
    %c0_11 = arith.constant 0 : index
    %c0_12 = arith.constant 0 : index
    %c0_13 = arith.constant 0 : index
    %6 = vector.load %arg1[%c0_10, %c0_11, %c0_12, %c0_13] : memref<1x16x16x8xf32, #tpu.memory_space<vmem>>, vector<1x16x16x8xf32>
    %7 = vector.shape_cast %6 : vector<1x16x16x8xf32> to vector<16x16x8xf32>
    %c1_14 = arith.constant 1 : index
    %c1_15 = arith.constant 1 : index
    %c0_16 = arith.constant 0 : index
    %8 = vector.load %arg9[%c1_14, %c1_15, %c0_16] : memref<18x24x8xf32, #tpu.memory_space<vmem>>, vector<16x16x8xf32>
    tpu.vector_store %arg9[%c1_14, %c1_15, %c0_16], %7 {strides = array<i32>} : memref<18x24x8xf32, #tpu.memory_space<vmem>>, vector<16x16x8xf32>,
    %c0_17 = arith.constant 0 : index
    %c0_18 = arith.constant 0 : index
    %c0_19 = arith.constant 0 : index
    %9 = vector.load %arg9[%c0_17, %c0_18, %c0_19] : memref<18x24x8xf32, #tpu.memory_space<vmem>>, vector<16x16x8xf32>
    %c0_20 = arith.constant 0 : index
    %c1_21 = arith.constant 1 : index
    %c0_22 = arith.constant 0 : index
    %10 = vector.load %arg9[%c0_20, %c1_21, %c0_22] : memref<18x24x8xf32, #tpu.memory_space<vmem>>, vector<16x16x8xf32>
    %c0_23 = arith.constant 0 : index
    %c2 = arith.constant 2 : index
    %c0_24 = arith.constant 0 : index
    %11 = vector.load %arg9[%c0_23, %c2, %c0_24] : memref<18x24x8xf32, #tpu.memory_space<vmem>>, vector<16x16x8xf32>
    %c1_25 = arith.constant 1 : index
    %c0_26 = arith.constant 0 : index
    %c0_27 = arith.constant 0 : index
    %12 = vector.load %arg9[%c1_25, %c0_26, %c0_27] : memref<18x24x8xf32, #tpu.memory_space<vmem>>, vector<16x16x8xf32>
    %c1_28 = arith.constant 1 : index
    %c1_29 = arith.constant 1 : index
    %c0_30 = arith.constant 0 : index
    %13 = vector.load %arg9[%c1_28, %c1_29, %c0_30] : memref<18x24x8xf32, #tpu.memory_space<vmem>>, vector<16x16x8xf32>
    %c1_31 = arith.constant 1 : index
    %c2_32 = arith.constant 2 : index
    %c0_33 = arith.constant 0 : index
    %14 = vector.load %arg9[%c1_31, %c2_32, %c0_33] : memref<18x24x8xf32, #tpu.memory_space<vmem>>, vector<16x16x8xf32>
    %c2_34 = arith.constant 2 : index
    %c0_35 = arith.constant 0 : index
    %c0_36 = arith.constant 0 : index
    %15 = vector.load %arg9[%c2_34, %c0_35, %c0_36] : memref<18x24x8xf32, #tpu.memory_space<vmem>>, vector<16x16x8xf32>
    %c2_37 = arith.constant 2 : index
    %c1_38 = arith.constant 1 : index
    %c0_39 = arith.constant 0 : index
    %16 = vector.load %arg9[%c2_37, %c1_38, %c0_39] : memref<18x24x8xf32, #tpu.memory_space<vmem>>, vector<16x16x8xf32>
    %c2_40 = arith.constant 2 : index
    %c2_41 = arith.constant 2 : index
    %c0_42 = arith.constant 0 : index
    %17 = vector.load %arg9[%c2_40, %c2_41, %c0_42] : memref<18x24x8xf32, #tpu.memory_space<vmem>>, vector<16x16x8xf32>
    %18 = tpu.concatenate %9, %10, %11, %12, %13, %14, %15, %16, %17 in 2 : vector<16x16x8xf32>, vector<16x16x8xf32>, vector<16x16x8xf32>, vector<16x16x8xf32>, vector<16x16x8xf32>, vector<16x16x8xf32>, vector<16x16x8xf32>, vector<16x16x8xf32>, vector<16x16x8xf32> -> vector<16x16x72xf32>
    %c0_43 = arith.constant 0 : index
    %c0_44 = arith.constant 0 : index
    %19 = vector.load %arg2[%c0_43, %c0_44] : memref<72x128xf32, #tpu.memory_space<vmem>>, vector<72x128xf32>
    %cst_45 = arith.constant dense<0.000000e+00> : vector<16x16x128xf32>
    %20 = tpu.matmul %18, %19, %cst_45 {dimension_numbers = #tpu.dot_dimension_numbers<[2], [0], [0, 1], [1], [0, 0, 0, 1, 1, 1], [], []>} : vector<16x16x72xf32>, vector<72x128xf32>, vector<16x16x128xf32> -> vector<16x16x128xf32>
    %c0_46 = arith.constant 0 : index
    %c0_47 = arith.constant 0 : index
    %21 = vector.load %arg3[%c0_46, %c0_47] : memref<1x128xf32, #tpu.memory_space<vmem>>, vector<1x128xf32>
    %22 = vector.shape_cast %21 : vector<1x128xf32> to vector<128xf32>
    %23 = vector.shape_cast %22 : vector<128xf32> to vector<1x1x128xf32>
    %24 = vector.broadcast %23 : vector<1x1x128xf32> to vector<16x16x128xf32>
    %25 = arith.mulf %20, %24 : vector<16x16x128xf32>
    %c0_48 = arith.constant 0 : index
    %c0_49 = arith.constant 0 : index
    %26 = vector.load %arg4[%c0_48, %c0_49] : memref<1x128xf32, #tpu.memory_space<vmem>>, vector<1x128xf32>
    %27 = vector.shape_cast %26 : vector<1x128xf32> to vector<128xf32>
    %28 = vector.shape_cast %27 : vector<128xf32> to vector<1x1x128xf32>
    %29 = vector.broadcast %28 : vector<1x1x128xf32> to vector<16x16x128xf32>
    %30 = arith.addf %25, %29 : vector<16x16x128xf32>
    %cst_50 = arith.constant 0.000000e+00 : f32
    %31 = vector.broadcast %cst_50 : f32 to vector<16x16x128xf32>
    %32 = arith.maximumf %30, %31 : vector<16x16x128xf32>
    %cst_51 = arith.constant 0.000000e+00 : f32
    %33 = vector.broadcast %cst_51 : f32 to vector<1x18x128xf32>
    %c0_52 = arith.constant 0 : index
    %c0_53 = arith.constant 0 : index
    %c0_54 = arith.constant 0 : index
    %34 = vector.load %arg10[%c0_52, %c0_53, %c0_54] : memref<18x24x128xf32, #tpu.memory_space<vmem>>, vector<1x18x128xf32>
    tpu.vector_store %arg10[%c0_52, %c0_53, %c0_54], %33 {strides = array<i32>} : memref<18x24x128xf32, #tpu.memory_space<vmem>>, vector<1x18x128xf32>,
    %c17_55 = arith.constant 17 : index
    %c0_56 = arith.constant 0 : index
    %c0_57 = arith.constant 0 : index
    %35 = vector.load %arg10[%c17_55, %c0_56, %c0_57] : memref<18x24x128xf32, #tpu.memory_space<vmem>>, vector<1x18x128xf32>
    tpu.vector_store %arg10[%c17_55, %c0_56, %c0_57], %33 {strides = array<i32>} : memref<18x24x128xf32, #tpu.memory_space<vmem>>, vector<1x18x128xf32>,
    %cst_58 = arith.constant 0.000000e+00 : f32
    %36 = vector.broadcast %cst_58 : f32 to vector<16x1x128xf32>
    %c1_59 = arith.constant 1 : index
    %c0_60 = arith.constant 0 : index
    %c0_61 = arith.constant 0 : index
    %37 = vector.load %arg10[%c1_59, %c0_60, %c0_61] : memref<18x24x128xf32, #tpu.memory_space<vmem>>, vector<16x1x128xf32>
    tpu.vector_store %arg10[%c1_59, %c0_60, %c0_61], %36 {strides = array<i32>} : memref<18x24x128xf32, #tpu.memory_space<vmem>>, vector<16x1x128xf32>,
    %c1_62 = arith.constant 1 : index
    %c17_63 = arith.constant 17 : index
    %c0_64 = arith.constant 0 : index
    %38 = vector.load %arg10[%c1_62, %c17_63, %c0_64] : memref<18x24x128xf32, #tpu.memory_space<vmem>>, vector<16x1x128xf32>
    tpu.vector_store %arg10[%c1_62, %c17_63, %c0_64], %36 {strides = array<i32>} : memref<18x24x128xf32, #tpu.memory_space<vmem>>, vector<16x1x128xf32>,
    %c1_65 = arith.constant 1 : index
    %c1_66 = arith.constant 1 : index
    %c0_67 = arith.constant 0 : index
    %39 = vector.load %arg10[%c1_65, %c1_66, %c0_67] : memref<18x24x128xf32, #tpu.memory_space<vmem>>, vector<16x16x128xf32>
    tpu.vector_store %arg10[%c1_65, %c1_66, %c0_67], %32 {strides = array<i32>} : memref<18x24x128xf32, #tpu.memory_space<vmem>>, vector<16x16x128xf32>,
    %c0_68 = arith.constant 0 : index
    %c0_69 = arith.constant 0 : index
    %c0_70 = arith.constant 0 : index
    %40 = vector.load %arg10[%c0_68, %c0_69, %c0_70] : memref<18x24x128xf32, #tpu.memory_space<vmem>>, vector<16x16x128xf32>
    %c0_71 = arith.constant 0 : index
    %c1_72 = arith.constant 1 : index
    %c0_73 = arith.constant 0 : index
    %41 = vector.load %arg10[%c0_71, %c1_72, %c0_73] : memref<18x24x128xf32, #tpu.memory_space<vmem>>, vector<16x16x128xf32>
    %c0_74 = arith.constant 0 : index
    %c2_75 = arith.constant 2 : index
    %c0_76 = arith.constant 0 : index
    %42 = vector.load %arg10[%c0_74, %c2_75, %c0_76] : memref<18x24x128xf32, #tpu.memory_space<vmem>>, vector<16x16x128xf32>
    %c1_77 = arith.constant 1 : index
    %c0_78 = arith.constant 0 : index
    %c0_79 = arith.constant 0 : index
    %43 = vector.load %arg10[%c1_77, %c0_78, %c0_79] : memref<18x24x128xf32, #tpu.memory_space<vmem>>, vector<16x16x128xf32>
    %c1_80 = arith.constant 1 : index
    %c1_81 = arith.constant 1 : index
    %c0_82 = arith.constant 0 : index
    %44 = vector.load %arg10[%c1_80, %c1_81, %c0_82] : memref<18x24x128xf32, #tpu.memory_space<vmem>>, vector<16x16x128xf32>
    %c1_83 = arith.constant 1 : index
    %c2_84 = arith.constant 2 : index
    %c0_85 = arith.constant 0 : index
    %45 = vector.load %arg10[%c1_83, %c2_84, %c0_85] : memref<18x24x128xf32, #tpu.memory_space<vmem>>, vector<16x16x128xf32>
    %c2_86 = arith.constant 2 : index
    %c0_87 = arith.constant 0 : index
    %c0_88 = arith.constant 0 : index
    %46 = vector.load %arg10[%c2_86, %c0_87, %c0_88] : memref<18x24x128xf32, #tpu.memory_space<vmem>>, vector<16x16x128xf32>
    %c2_89 = arith.constant 2 : index
    %c1_90 = arith.constant 1 : index
    %c0_91 = arith.constant 0 : index
    %47 = vector.load %arg10[%c2_89, %c1_90, %c0_91] : memref<18x24x128xf32, #tpu.memory_space<vmem>>, vector<16x16x128xf32>
    %c2_92 = arith.constant 2 : index
    %c2_93 = arith.constant 2 : index
    %c0_94 = arith.constant 0 : index
    %48 = vector.load %arg10[%c2_92, %c2_93, %c0_94] : memref<18x24x128xf32, #tpu.memory_space<vmem>>, vector<16x16x128xf32>
    %49 = tpu.concatenate %40, %41, %42, %43, %44, %45, %46, %47, %48 in 2 : vector<16x16x128xf32>, vector<16x16x128xf32>, vector<16x16x128xf32>, vector<16x16x128xf32>, vector<16x16x128xf32>, vector<16x16x128xf32>, vector<16x16x128xf32>, vector<16x16x128xf32>, vector<16x16x128xf32> -> vector<16x16x1152xf32>
    %c0_95 = arith.constant 0 : index
    %c0_96 = arith.constant 0 : index
    %50 = vector.load %arg5[%c0_95, %c0_96] : memref<1152x128xf32, #tpu.memory_space<vmem>>, vector<1152x128xf32>
    %cst_97 = arith.constant dense<0.000000e+00> : vector<16x16x128xf32>
    %51 = tpu.matmul %49, %50, %cst_97 {dimension_numbers = #tpu.dot_dimension_numbers<[2], [0], [0, 1], [1], [0, 0, 0, 1, 1, 1], [], []>} : vector<16x16x1152xf32>, vector<1152x128xf32>, vector<16x16x128xf32> -> vector<16x16x128xf32>
    %c0_98 = arith.constant 0 : index
    %c0_99 = arith.constant 0 : index
    %52 = vector.load %arg6[%c0_98, %c0_99] : memref<1x128xf32, #tpu.memory_space<vmem>>, vector<1x128xf32>
    %53 = vector.shape_cast %52 : vector<1x128xf32> to vector<128xf32>
    %54 = vector.shape_cast %53 : vector<128xf32> to vector<1x1x128xf32>
    %55 = vector.broadcast %54 : vector<1x1x128xf32> to vector<16x16x128xf32>
    %56 = arith.mulf %51, %55 : vector<16x16x128xf32>
    %c0_100 = arith.constant 0 : index
    %c0_101 = arith.constant 0 : index
    %57 = vector.load %arg7[%c0_100, %c0_101] : memref<1x128xf32, #tpu.memory_space<vmem>>, vector<1x128xf32>
    %58 = vector.shape_cast %57 : vector<1x128xf32> to vector<128xf32>
    %59 = vector.shape_cast %58 : vector<128xf32> to vector<1x1x128xf32>
    %60 = vector.broadcast %59 : vector<1x1x128xf32> to vector<16x16x128xf32>
    %61 = arith.addf %56, %60 : vector<16x16x128xf32>
    %c0_102 = arith.constant 0 : index
    %c0_103 = arith.constant 0 : index
    %c0_104 = arith.constant 0 : index
    %c0_105 = arith.constant 0 : index
    %62 = vector.load %arg1[%c0_102, %c0_103, %c0_104, %c0_105] : memref<1x16x16x8xf32, #tpu.memory_space<vmem>>, vector<1x16x16x8xf32>
    %63 = vector.shape_cast %62 : vector<1x16x16x8xf32> to vector<16x16x8xf32>
    %cst_106 = arith.constant 0.000000e+00 : f32
    %64 = vector.broadcast %cst_106 : f32 to vector<16x16x120xf32>
    %65 = tpu.concatenate %63, %64 in 2 : vector<16x16x8xf32>, vector<16x16x120xf32> -> vector<16x16x128xf32>
    %66 = arith.addf %61, %65 : vector<16x16x128xf32>
    %cst_107 = arith.constant 0.000000e+00 : f32
    %67 = vector.broadcast %cst_107 : f32 to vector<16x16x128xf32>
    %68 = arith.maximumf %66, %67 : vector<16x16x128xf32>
    %c0_108 = arith.constant 0 : index
    %c0_109 = arith.constant 0 : index
    %c0_110 = arith.constant 0 : index
    %c0_111 = arith.constant 0 : index
    %69 = vector.load %arg8[%c0_108, %c0_109, %c0_110, %c0_111] : memref<1x16x16x128xf32, #tpu.memory_space<vmem>>, vector<1x16x16x128xf32>
    %70 = vector.shape_cast %69 : vector<1x16x16x128xf32> to vector<16x16x128xf32>
    %71 = vector.shape_cast %68 : vector<16x16x128xf32> to vector<1x16x16x128xf32>
    tpu.vector_store %arg8[%c0_108, %c0_109, %c0_110, %c0_111], %71 {strides = array<i32>} : memref<1x16x16x128xf32, #tpu.memory_space<vmem>>, vector<1x16x16x128xf32>,
    return
  }
  func.func @transform_0(%arg0: i32) -> (i32, i32, i32, i32) {
    %c0_i32 = arith.constant 0 : i32
    %c0_i32_0 = arith.constant 0 : i32
    %c0_i32_1 = arith.constant 0 : i32
    %c0_i32_2 = arith.constant 0 : i32
    return %arg0, %c0_i32, %c0_i32_0, %c0_i32_1 : i32, i32, i32, i32
  }
  func.func @transform_1(%arg0: i32) -> (i32, i32) {
    %c0_i32 = arith.constant 0 : i32
    %c0_i32_0 = arith.constant 0 : i32
    %c0_i32_1 = arith.constant 0 : i32
    return %c0_i32, %c0_i32_0 : i32, i32
  }
  func.func @transform_2(%arg0: i32) -> (i32, i32) {
    %c0_i32 = arith.constant 0 : i32
    %c0_i32_0 = arith.constant 0 : i32
    %c0_i32_1 = arith.constant 0 : i32
    return %c0_i32, %c0_i32_0 : i32, i32
  }
  func.func @transform_3(%arg0: i32) -> (i32, i32) {
    %c0_i32 = arith.constant 0 : i32
    %c0_i32_0 = arith.constant 0 : i32
    %c0_i32_1 = arith.constant 0 : i32
    return %c0_i32, %c0_i32_0 : i32, i32
  }
  func.func @transform_4(%arg0: i32) -> (i32, i32) {
    %c0_i32 = arith.constant 0 : i32
    %c0_i32_0 = arith.constant 0 : i32
    %c0_i32_1 = arith.constant 0 : i32
    return %c0_i32, %c0_i32_0 : i32, i32
  }
  func.func @transform_5(%arg0: i32) -> (i32, i32) {
    %c0_i32 = arith.constant 0 : i32
    %c0_i32_0 = arith.constant 0 : i32
    %c0_i32_1 = arith.constant 0 : i32
    return %c0_i32, %c0_i32_0 : i32, i32
  }
  func.func @transform_6(%arg0: i32) -> (i32, i32) {
    %c0_i32 = arith.constant 0 : i32
    %c0_i32_0 = arith.constant 0 : i32
    %c0_i32_1 = arith.constant 0 : i32
    return %c0_i32, %c0_i32_0 : i32, i32
  }
  func.func @transform_7(%arg0: i32) -> (i32, i32, i32, i32) {
    %c0_i32 = arith.constant 0 : i32
    %c0_i32_0 = arith.constant 0 : i32
    %c0_i32_1 = arith.constant 0 : i32
    %c0_i32_2 = arith.constant 0 : i32
    return %arg0, %c0_i32, %c0_i32_0, %c0_i32_1 : i32, i32, i32, i32
  }
}

</mosaic_0001>

<bundles_post_ra>
// kernel: tpu_custom_call.1
= control target key start
LH: loop header
LB: loop body
LE: loop exit
PB: predicated region body
PF: predicated region fallthrough
CT: control target
= control target key end

     0   :  { %12 = vsyncpa [#allocation5], 0  ;;  %s7605_s0 = inlined_call_operand.vmem [shape: f32[2,16,16,8], index: 0, kind: input, shape index: {}]   ;;  %s7606_s1 = inlined_call_operand.vmem [shape: f32[72,128], index: 1, kind: input, shape index: {}]   ;;  %s7607_s2 = inlined_call_operand.vmem [shape: f32[1,128], index: 2, kind: input, shape index: {}]   ;;  %s7608_s3 = inlined_call_operand.vmem [shape: f32[1,128], index: 3, kind: input, shape index: {}]   ;;  %s7609_s4 = inlined_call_operand.hbm [shape: f32[1152,128], index: 4, kind: input, shape index: {}]   ;;  %s7610_s5 = inlined_call_operand.vmem [shape: f32[1,128], index: 5, kind: input, shape index: {}]   ;;  %s7611_s6 = inlined_call_operand.vmem [shape: f32[1,128], index: 6, kind: input, shape index: {}]   ;;  %s7612_s7 = inlined_call_operand.hbm [shape: f32[2,16,16,128], index: 7, kind: output, shape index: {}]  }
   0x1   :  { %13 = vsyncpa [#allocation6], 0 }
   0x2   :  { %15 = vsyncpa [#allocation6 + $0x1], 0  ;;  %s5289_s24 = smov 0   ;;  %s5291_s25 = smov 0  }
   0x3   :  { %s5293_s26 = smov 0   ;;  %s5295_s27 = smov 0  }
   0x4 LB: > { %s5310_s28 = sadd.s32 4294967295, %s5232_s27   ;;  %s4372_s29 = sadd.s32 4294967294, %s5232_s27   ;;  %s5232_s27 = sphi %s5295_s27, %s7640_s27   ;;  %s5228_s26 = sphi %s5293_s26, %s7639_s26   ;;  %s5224_s25 = sphi %s5291_s25, %s7638_s25   ;;  %s5220_s24 = sphi %s5289_s24, %s7637_s24  }
   0x5   : > { %s5314_s30 = sadd.s32 1, %s5232_s27   ;;  %s180_s8 = sadd.s32 1, %s5228_s26 }
   0x6   : > { %s177_s9 = ssub.s32 %s5232_s27, %s5314_s30  ;;  %p190_p0 = scmp.ne.s32.totalorder %s5228_s26, %s5224_s25 }
   0x7   : > { %p178_p1 = scmp.eq.s32.totalorder %s177_s9, 0  ;;  %p191_p2 = scmp.eq.s32.totalorder %s5310_s28, 1 }
   0x8   : > { %p196_p3 = scmp.ne.s32.totalorder %s5224_s25, %s5220_s24  ;;  %p197_p4 = scmp.eq.s32.totalorder %s4372_s29, 1 }
   0x9   : > { %s5325_s10 = scalar_select %p178_p1, %s5228_s26, %s180_s8  }
   0xa   : > { %p5327_p5 = por %p191_p2, %p190_p0  ;;  %p5331_p6 = por %p197_p4, %p196_p3 }
   0xb   : > { %p4373_p7 = scmp.ge.s32.totalorder %s5232_s27, 1  ;;  %p204_p8 = scmp.lt.s32.totalorder %s5232_s27, 3 }
   0xc   : > { %s7620_s11 = scalar_select %p5327_p5, 1, 0 }
   0xd   : > { %s7621_s12 = scalar_select %p5331_p6, 1, 0 }
   0xe   : > { %p7613_p9 = scmp.eq.s32.totalorder %s5310_s28, 0  ;;  %p5338_p10 = pnand %p4373_p7, %p204_p8 }
   0xf   : > { %s5234_s14 = smov [#allocation4]   ;;  %s5138_s19 = scalar_lea.hbm %s7609_s4, 18432 }
  0x10   : > { %s7622_s13 = scalar_select %p5338_p10, 1, 0 }
  0x11   : > { %s225_s15 = sshll.u32 %s5234_s14, 4  ;;  %p5076_p11 = pneg %p5338_p10  ;;  %s226_s15 = int_to_ptr.vmem [resolvable:$true] %s225_s15 }
  0x12   : > { %p5139_p13 = scmp.ne.s32.totalorder %s7609_s4, %s5138_s19  ;;  %p5145_p3 = scmp.lt.u32.totalorder %s5138_s19, %s7609_s4 }
  0x13   : > { %p5346_p12 = pnand %p7613_p9, %p5076_p11 }
  0x15   : > { %p5140_p0 = pneg %p5346_p12 }
  0x17   : > { %p5141_p1 = pnand %p5140_p0, %p5139_p13 }
  0x19   : > { %p5142_p2 = pneg %p5141_p1 }
  0x1b   : > { %p5147_p4 = pnand %p5145_p3, %p5142_p2 }
  0x1d   : > { %5150 = shalt.err (!%p5147_p4)
}
  0x1e   : > { %s5151_s29 = scalar_lea.vmem %s226_s15, 18432  ;;  %p5159_p9 = scmp.lt.s32.totalorder %s226_s15, %s226_s15 }
  0x1f   : > { %p5152_p7 = scmp.ne.s32.totalorder %s226_s15, %s5151_s29  ;;  %p5160_p6 = scmp.lt.s32.totalorder %s5151_s29, %s5151_s29 }
  0x21   : > { %p5154_p8 = pnand %p5152_p7, %p5140_p0  ;;  %p5161_p5 = por %p5160_p6, %p5159_p9 }
  0x23   : > { %p5155_p11 = pneg %p5154_p8 }
  0x25   : > { %p5162_p10 = pnand %p5161_p5, %p5155_p11 }
  0x27   : > { %5165 = shalt.err (!%p5162_p10)
}
  0x28   : > { %s5235_s8 = smov 128   ;;  %s5236_s9 = smov 8  }
  0x29   : > { %5079 = dma.hbm_to_vmem [thread:$0]  (!%p5346_p12), %s7609_s4, 18432, %s226_s15, [#allocation5], %s5235_s8, %s5235_s8, %s5236_s9  }
  0x2a   : > { %p7624_p13 = scmp.ne.s32.totalorder %s7622_s13, 0 }
  0x2c   : > { %255 = sbr.rel (%p7624_p13) target bundleno = 1363 (0x553), region = 48 }
  0x33   : > { %p7625_p1 = scmp.eq.s32.totalorder %s5310_s28, 0 }
  0x35   : > { %5211 = dma.done.wait (%p7625_p1), [#allocation5], 18432   ;;  %p7626_p0 = pmov %p7625_p1 }
  0x36   : > { %vm292_vm0 = vcmask 64512   ;;  %v5237_v0 = vmov 0.0   ;;  %vm295_vm1 = vcmask 58368   ;;  %p287_p5 = scmp.lt.s32.totalorder %s5310_s28, 1  ;;  %vm302_vm2 = vcmask 57344   ;;  %s5238_s20 = smov 16  }
  0x37   : > { %5213 = vsyncadd (%p7626_p0), [#allocation5], 4294948864  ;;  %293 = vst.msk [vmem:[#allocation2] sm:$0xff] %vm292_vm0, %v5237_v0  ;;  %s5239_s21 = smov 8   ;;  %v1975_v15 = vld [vmem:[%s7606_s1] sm:$0xff]  ;;  %v1976_v16 = vld [vmem:[%s7606_s1 + $0x8] sm:$0xff] }
  0x38   : > { %294 = vst.msk [vmem:[#allocation2 + $0x8] sm:$0xff] %vm292_vm0, %v5237_v0  ;;  %298 = vst.msk [vmem:[#allocation2 + $0x198] sm:$0xff] %vm292_vm0, %v5237_v0  ;;  %s288_s13 = scalar_select %p287_p5, %s5310_s28, 1  ;;  %v4659_v17 = vpack.c.bf16 %v1976_v16, %v1975_v15  ;;  %v1977_v18 = vld [vmem:[%s7606_s1 + $0x10] sm:$0xff]  ;;  %v1978_v19 = vld [vmem:[%s7606_s1 + $0x18] sm:$0xff]  ;;  %vm1744_vm3 = vcmask 130048  }
  0x39   : > { %299 = vst.msk [vmem:[#allocation2 + $0x1a0] sm:$0xff] %vm292_vm0, %v5237_v0  ;;  %2416 = vst [vmem:[#allocation3] sm:$0xff] %v5237_v0  ;;  %v4663_v20 = vpack.c.bf16 %v1978_v19, %v1977_v18  ;;  %s5241_s16 = smov 32   ;;  %s5242_s18 = smov 40   ;;  %v1979_v28 = vld [vmem:[%s7606_s1 + $0x20] sm:$0xff]  ;;  %v1980_v29 = vld [vmem:[%s7606_s1 + $0x28] sm:$0xff] }
  0x3a   : > { %2417 = vst [vmem:[#allocation3 + $0x8] sm:$0xff] %v5237_v0  ;;  %2418 = vst [vmem:[#allocation3 + $0x10] sm:$0x3] %v5237_v0  ;;  %s4422_s15 = sshll.u32 %s288_s13, 8  ;;  %4660 = vmatprep.subr.bf16.mxu0 %v4659_v17  ;;  %v4667_v31 = vpack.c.bf16 %v1980_v29, %v1979_v28  ;;  %v1981_v32 = vld [vmem:[%s7606_s1 + $0x30] sm:$0xff]  ;;  %v1982_v33 = vld [vmem:[%s7606_s1 + $0x38] sm:$0xff] }
  0x3b   : > { %2420 = vst [vmem:[#allocation3 + $0x198] sm:$0xff] %v5237_v0  ;;  %2421 = vst [vmem:[#allocation3 + $0x1a0] sm:$0xff] %v5237_v0  ;;  %s5491_s19 = scalar_lea.vmem %s7605_s0, %s4422_s15  ;;  %4662 = vmatpush3.bf16.msra.mxu0 %v4659_v17  ;;  %s5240_s15 = smov 24   ;;  %v4671_v34 = vpack.c.bf16 %v1982_v33, %v1981_v32  ;;  %v1983_v39 = vld [vmem:[%s7606_s1 + $0x40] sm:$0xff]  ;;  %vm1777_vm4 = vcmask 195584   ;;  %vm1810_vm5 = vcmask 261120  }
  0x3c   : > { %2422 = vst [vmem:[#allocation3 + $0x1a8] sm:$0x3] %v5237_v0  ;;  %2424 = vst [vmem:[#allocation3 + $0x18] sm:$0x1] %v5237_v0  ;;  %v335_v1 = vld [vmem:[%s5491_s19] sm:$0xff]  ;;  %v336_v2 = vld [vmem:[%s5491_s19 + $0x8] sm:$0xff]  ;;  %4664 = vmatprep.subr.bf16.mxu0 %v4663_v20 }
  0x3d   : > { %2425 = vst [vmem:[#allocation3 + $0x30] sm:$0x1] %v5237_v0  ;;  %2426 = vst [vmem:[#allocation3 + $0x48] sm:$0x1] %v5237_v0  ;;  %v337_v3 = vld [vmem:[%s5491_s19 + $0x10] sm:$0xff]  ;;  %v338_v6 = vld [vmem:[%s5491_s19 + $0x18] sm:$0xff] }
  0x3e   : > { %2427 = vst [vmem:[#allocation3 + $0x60] sm:$0x1] %v5237_v0  ;;  %2428 = vst [vmem:[#allocation3 + $0x78] sm:$0x1] %v5237_v0  ;;  %v339_v9 = vld [vmem:[%s5491_s19 + $0x20] sm:$0xff]  ;;  %v340_v10 = vld [vmem:[%s5491_s19 + $0x28] sm:$0xff] }
  0x3f   : > { %2429 = vst [vmem:[#allocation3 + $0x90] sm:$0x1] %v5237_v0  ;;  %2430 = vst [vmem:[#allocation3 + $0xa8] sm:$0x1] %v5237_v0  ;;  %v463_v4 = vld [vmem:[#allocation2 + $0x2] sm:$0xff]  ;;  %v341_v11 = vld [vmem:[%s5491_s19 + $0x30] sm:$0xff]  ;;  %4666 = vmatpush3.bf16.msra.mxu0 %v4663_v20 }
  0x40   : > { %2431 = vst [vmem:[#allocation3 + $0xc0] sm:$0x1] %v5237_v0  ;;  %2432 = vst [vmem:[#allocation3 + $0xd8] sm:$0x1] %v5237_v0  ;;  %v431_v5 = vld [vmem:[#allocation2 + $0x1] sm:$0xff]  ;;  %848 = vrot.lane.b32.xlu1 %v463_v4, %s5238_s20  ;;  %v342_v12 = vld [vmem:[%s5491_s19 + $0x38] sm:$0xff]  ;;  %4668 = vmatprep.subr.bf16.mxu0 %v4667_v31 }
  0x41   : > { %2433 = vst [vmem:[#allocation3 + $0xf0] sm:$0x1] %v5237_v0  ;;  %2434 = vst [vmem:[#allocation3 + $0x108] sm:$0x1] %v5237_v0  ;;  %720 = vrot.lane.b32.xlu0 %v431_v5, %s5239_s21  ;;  %v343_v13 = vld [vmem:[%s5491_s19 + $0x40] sm:$0xff]  ;;  %v344_v14 = vld [vmem:[%s5491_s19 + $0x48] sm:$0xff] }
  0x42   : > { %2435 = vst [vmem:[#allocation3 + $0x120] sm:$0x1] %v5237_v0  ;;  %2436 = vst [vmem:[#allocation3 + $0x138] sm:$0x1] %v5237_v0  ;;  %v345_v35 = vld [vmem:[%s5491_s19 + $0x50] sm:$0xff]  ;;  %v346_v36 = vld [vmem:[%s5491_s19 + $0x58] sm:$0xff] }
  0x43   : > { %2437 = vst [vmem:[#allocation3 + $0x150] sm:$0x1] %v5237_v0  ;;  %2438 = vst [vmem:[#allocation3 + $0x168] sm:$0x1] %v5237_v0  ;;  %s5243_s22 = smov 48   ;;  %4670 = vmatpush3.bf16.msra.mxu0 %v4667_v31  ;;  %s5244_s8 = smov 56  }
  0x44   : > { %2439 = vst [vmem:[#allocation3 + $0x180] sm:$0x1] %v5237_v0  ;;  %2440 = vst [vmem:[#allocation3 + $0x29] sm:$0x1] %v5237_v0  ;;  %4672 = vmatprep.subr.bf16.mxu0 %v4671_v34  ;;  %s5245_s9 = smov 64   ;;  %v347_v42 = vld [vmem:[%s5491_s19 + $0x60] sm:$0xff] }
  0x45   : > { %2441 = vst [vmem:[#allocation3 + $0x41] sm:$0x1] %v5237_v0  ;;  %2442 = vst [vmem:[#allocation3 + $0x59] sm:$0x1] %v5237_v0  ;;  %v348_v43 = vld [vmem:[%s5491_s19 + $0x68] sm:$0xff]  ;;  %v349_v50 = vld [vmem:[%s5491_s19 + $0x70] sm:$0xff] }
  0x46   : > { %2443 = vst [vmem:[#allocation3 + $0x71] sm:$0x1] %v5237_v0  ;;  %2444 = vst [vmem:[#allocation3 + $0x89] sm:$0x1] %v5237_v0  ;;  %v350_v51 = vld [vmem:[%s5491_s19 + $0x78] sm:$0xff]  ;;  %v351_v58 = vld [vmem:[%s5491_s19 + $0x80] sm:$0xff] }
  0x47   : > { %2445 = vst [vmem:[#allocation3 + $0xa1] sm:$0x1] %v5237_v0  ;;  %2446 = vst [vmem:[#allocation3 + $0xb9] sm:$0x1] %v5237_v0  ;;  %4674 = vmatpush3.bf16.msra.mxu0 %v4671_v34  ;;  %v352_v59 = vld [vmem:[%s5491_s19 + $0x88] sm:$0xff]  ;;  %vm1843_vm6 = vcmask 326656  }
  0x48   : > { %2447 = vst [vmem:[#allocation3 + $0xd1] sm:$0x1] %v5237_v0  ;;  %2448 = vst [vmem:[#allocation3 + $0xe9] sm:$0x1] %v5237_v0  ;;  %4529 = vmatprep.subr.mxu0 %v1983_v39  ;;  %v400_v16 = vld [vmem:[#allocation2 + $0x8] sm:$0xff]  ;;  %vm1876_vm7 = vcmask 392192  }
  0x49   : > { %2449 = vst [vmem:[#allocation3 + $0x101] sm:$0x1] %v5237_v0  ;;  %2450 = vst [vmem:[#allocation3 + $0x119] sm:$0x1] %v5237_v0  ;;  %vm1909_vm8 = vcmask 457728   ;;  %vm1942_vm9 = vcmask 523264  }
  0x4a   : > { %2451 = vst [vmem:[#allocation3 + $0x131] sm:$0x1] %v5237_v0  ;;  %2452 = vst [vmem:[#allocation3 + $0x149] sm:$0x1] %v5237_v0  ;;  %v354_v28 = vld [vmem:[%s5491_s19 + $0x98] sm:$0xff]  ;;  %vm1984_vm10 = vcmask 588800  }
  0x4b   : > { %2453 = vst [vmem:[#allocation3 + $0x161] sm:$0x1] %v5237_v0  ;;  %2454 = vst [vmem:[#allocation3 + $0x179] sm:$0x1] %v5237_v0  ;;  %4530 = vmatpush3.msra.mxu0 %v1983_v39  ;;  %s4423_s23 = sshll.u32 %s5310_s28, 12  ;;  %p7635_p9 = scmp.ne.s32.totalorder %s7620_s11, 0 }
  0x4c   : > { %2455 = vst [vmem:[#allocation3 + $0x191] sm:$0x1] %v5237_v0  ;;  %296 = vst.msk [vmem:[#allocation2 + $0x10] sm:$0x3] %vm295_vm1, %v5237_v0  ;;  %s5247_s28 = smov [#allocation7]  }
  0x4d   : > { %300 = vst.msk [vmem:[#allocation2 + $0x1a8] sm:$0x3] %vm295_vm1, %v5237_v0  ;;  %s5170_s29 = sshll.u32 %s5247_s28, 4  ;;  %s5171_s29 = int_to_ptr.vmem [resolvable:$false] %s5170_s29 }
  0x4e   : > { %303 = vst.msk [vmem:[#allocation2 + $0x18] sm:$0x1] %vm302_vm2, %v5237_v0  ;;  %304 = vst.msk [vmem:[#allocation2 + $0x30] sm:$0x1] %vm302_vm2, %v5237_v0 }
  0x4f   : > { %305 = vst.msk [vmem:[#allocation2 + $0x48] sm:$0x1] %vm302_vm2, %v5237_v0  ;;  %306 = vst.msk [vmem:[#allocation2 + $0x60] sm:$0x1] %vm302_vm2, %v5237_v0 }
  0x50   : > { %307 = vst.msk [vmem:[#allocation2 + $0x78] sm:$0x1] %vm302_vm2, %v5237_v0  ;;  %308 = vst.msk [vmem:[#allocation2 + $0x90] sm:$0x1] %vm302_vm2, %v5237_v0 }
  0x51   : > { %309 = vst.msk [vmem:[#allocation2 + $0xa8] sm:$0x1] %vm302_vm2, %v5237_v0  ;;  %310 = vst.msk [vmem:[#allocation2 + $0xc0] sm:$0x1] %vm302_vm2, %v5237_v0 }
  0x52   : > { %311 = vst.msk [vmem:[#allocation2 + $0xd8] sm:$0x1] %vm302_vm2, %v5237_v0  ;;  %312 = vst.msk [vmem:[#allocation2 + $0xf0] sm:$0x1] %vm302_vm2, %v5237_v0 }
  0x53   : > { %313 = vst.msk [vmem:[#allocation2 + $0x108] sm:$0x1] %vm302_vm2, %v5237_v0  ;;  %314 = vst.msk [vmem:[#allocation2 + $0x120] sm:$0x1] %vm302_vm2, %v5237_v0  ;;  %v464_v7 = vld [vmem:[#allocation2 + $0xa] sm:$0xff] }
  0x54   : > { %315 = vst.msk [vmem:[#allocation2 + $0x138] sm:$0x1] %vm302_vm2, %v5237_v0  ;;  %316 = vst.msk [vmem:[#allocation2 + $0x150] sm:$0x1] %vm302_vm2, %v5237_v0  ;;  %v432_v8 = vld [vmem:[#allocation2 + $0x9] sm:$0xff]  ;;  %850 = vrot.lane.b32.xlu1 %v464_v7, %s5238_s20 }
  0x55   : > { %317 = vst.msk [vmem:[#allocation2 + $0x168] sm:$0x1] %vm302_vm2, %v5237_v0  ;;  %318 = vst.msk [vmem:[#allocation2 + $0x180] sm:$0x1] %vm302_vm2, %v5237_v0  ;;  %722 = vrot.lane.b32.xlu0 %v432_v8, %s5239_s21 }
  0x56   : > { %319 = vst.msk [vmem:[#allocation2 + $0x29] sm:$0x1] %vm302_vm2, %v5237_v0  ;;  %320 = vst.msk [vmem:[#allocation2 + $0x41] sm:$0x1] %vm302_vm2, %v5237_v0 }
  0x57   : > { %321 = vst.msk [vmem:[#allocation2 + $0x59] sm:$0x1] %vm302_vm2, %v5237_v0  ;;  %322 = vst.msk [vmem:[#allocation2 + $0x71] sm:$0x1] %vm302_vm2, %v5237_v0 }
  0x58   : > { %323 = vst.msk [vmem:[#allocation2 + $0x89] sm:$0x1] %vm302_vm2, %v5237_v0  ;;  %324 = vst.msk [vmem:[#allocation2 + $0xa1] sm:$0x1] %vm302_vm2, %v5237_v0 }
  0x59   : > { %325 = vst.msk [vmem:[#allocation2 + $0xb9] sm:$0x1] %vm302_vm2, %v5237_v0  ;;  %326 = vst.msk [vmem:[#allocation2 + $0xd1] sm:$0x1] %vm302_vm2, %v5237_v0 }
  0x5a   : > { %327 = vst.msk [vmem:[#allocation2 + $0xe9] sm:$0x1] %vm302_vm2, %v5237_v0  ;;  %328 = vst.msk [vmem:[#allocation2 + $0x101] sm:$0x1] %vm302_vm2, %v5237_v0 }
  0x5b   : > { %329 = vst.msk [vmem:[#allocation2 + $0x119] sm:$0x1] %vm302_vm2, %v5237_v0  ;;  %330 = vst.msk [vmem:[#allocation2 + $0x131] sm:$0x1] %vm302_vm2, %v5237_v0 }
  0x5c   : > { %331 = vst.msk [vmem:[#allocation2 + $0x149] sm:$0x1] %vm302_vm2, %v5237_v0  ;;  %332 = vst.msk [vmem:[#allocation2 + $0x161] sm:$0x1] %vm302_vm2, %v5237_v0 }
  0x5d   : > { %333 = vst.msk [vmem:[#allocation2 + $0x179] sm:$0x1] %vm302_vm2, %v5237_v0  ;;  %334 = vst.msk [vmem:[#allocation2 + $0x191] sm:$0x1] %vm302_vm2, %v5237_v0 }
  0x5e   : > { %367 = vst.msk [vmem:[#allocation2 + $0x19] sm:$0xff] %vm292_vm0, %v335_v1  ;;  %368 = vst.msk [vmem:[#allocation2 + $0x21] sm:$0xff] %vm292_vm0, %v336_v2 }
  0x5f   : > { %369 = vst.msk [vmem:[#allocation2 + $0x31] sm:$0xff] %vm292_vm0, %v337_v3  ;;  %370 = vst.msk [vmem:[#allocation2 + $0x39] sm:$0xff] %vm292_vm0, %v338_v6 }
  0x60   : > { %371 = vst.msk [vmem:[#allocation2 + $0x49] sm:$0xff] %vm292_vm0, %v339_v9  ;;  %372 = vst.msk [vmem:[#allocation2 + $0x51] sm:$0xff] %vm292_vm0, %v340_v10 }
  0x61   : > { %373 = vst.msk [vmem:[#allocation2 + $0x61] sm:$0xff] %vm292_vm0, %v341_v11  ;;  %374 = vst.msk [vmem:[#allocation2 + $0x69] sm:$0xff] %vm292_vm0, %v342_v12  ;;  %v399_v12 = vld [vmem:[#allocation2] sm:$0xff] }
  0x62   : > { %375 = vst.msk [vmem:[#allocation2 + $0x79] sm:$0xff] %vm292_vm0, %v343_v13  ;;  %376 = vst.msk [vmem:[#allocation2 + $0x81] sm:$0xff] %vm292_vm0, %v344_v14 }
  0x63   : > { %377 = vst.msk [vmem:[#allocation2 + $0x91] sm:$0xff] %vm292_vm0, %v345_v35  ;;  %378 = vst.msk [vmem:[#allocation2 + $0x99] sm:$0xff] %vm292_vm0, %v346_v36 }
  0x64   : > { %379 = vst.msk [vmem:[#allocation2 + $0xa9] sm:$0xff] %vm292_vm0, %v347_v42  ;;  %380 = vst.msk [vmem:[#allocation2 + $0xb1] sm:$0xff] %vm292_vm0, %v348_v43 }
  0x65   : > { %v5529_v21 = vld [vmem:[#allocation2 + $0x20] sm:$0xff]  ;;  %v5531_v22 = vld [vmem:[#allocation2 + $0x18] sm:$0xff]  ;;  %381 = vst.msk [vmem:[#allocation2 + $0xc1] sm:$0xff] %vm292_vm0, %v349_v50  ;;  %382 = vst.msk [vmem:[#allocation2 + $0xc9] sm:$0xff] %vm292_vm0, %v350_v51 }
  0x66   : > { %978 = vrot.lane.b32.xlu1 %v5529_v21, %s5240_s15  ;;  %976 = vrot.lane.b32.xlu0 %v5531_v22, %s5240_s15  ;;  %v528_v23 = vld [vmem:[#allocation2 + $0x21] sm:$0xff]  ;;  %v527_v24 = vld [vmem:[#allocation2 + $0x19] sm:$0xff]  ;;  %v5549_v30 = vld [vmem:[#allocation2 + $0x30] sm:$0xff]  ;;  %383 = vst.msk [vmem:[#allocation2 + $0xd9] sm:$0xff] %vm292_vm0, %v351_v58 }
  0x67   : > { %v560_v25 = vld [vmem:[#allocation2 + $0x22] sm:$0xff]  ;;  %v559_v26 = vld [vmem:[#allocation2 + $0x1a] sm:$0xff]  ;;  %v624_v38 = vld [vmem:[#allocation2 + $0x31] sm:$0xff]  ;;  %384 = vst.msk [vmem:[#allocation2 + $0xe1] sm:$0xff] %vm292_vm0, %v352_v59 }
  0x68   : > { %v5541_v27 = vld [vmem:[#allocation2 + $0x38] sm:$0xff]  ;;  %v5588_v44 = vld [vmem:[#allocation2 + $0x50] sm:$0xff]  ;;  %v5590_v45 = vld [vmem:[#allocation2 + $0x48] sm:$0xff]  ;;  %386 = vst.msk [vmem:[#allocation2 + $0xf9] sm:$0xff] %vm292_vm0, %v354_v28 }
  0x69   : > { %v625_v37 = vld [vmem:[#allocation2 + $0x39] sm:$0xff]  ;;  %v627_v46 = vld [vmem:[#allocation2 + $0x51] sm:$0xff]  ;;  %v626_v47 = vld [vmem:[#allocation2 + $0x49] sm:$0xff] }
  0x6a   : > { %1106 = vrot.lane.b32.xlu1 %v528_v23, %s5241_s16  ;;  %1104 = vrot.lane.b32.xlu0 %v527_v24, %s5241_s16  ;;  %v656_v40 = vld [vmem:[#allocation2 + $0x32] sm:$0xff]  ;;  %v657_v41 = vld [vmem:[#allocation2 + $0x3a] sm:$0xff]  ;;  %v658_v48 = vld [vmem:[#allocation2 + $0x4a] sm:$0xff] }
  0x6b   : > { %v659_v49 = vld [vmem:[#allocation2 + $0x52] sm:$0xff]  ;;  %v5616_v52 = vld [vmem:[#allocation2 + $0x68] sm:$0xff]  ;;  %v5618_v53 = vld [vmem:[#allocation2 + $0x60] sm:$0xff] }
  0x6c   : > { %v629_v54 = vld [vmem:[#allocation2 + $0x69] sm:$0xff]  ;;  %v628_v55 = vld [vmem:[#allocation2 + $0x61] sm:$0xff]  ;;  %v5646_v61 = vld [vmem:[#allocation2 + $0x78] sm:$0xff] }
  0x6d   : > { %v660_v56 = vld [vmem:[#allocation2 + $0x62] sm:$0xff]  ;;  %v661_v57 = vld [vmem:[#allocation2 + $0x6a] sm:$0xff]  ;;  %v5654_v1 = vld [vmem:[#allocation2 + $0x79] sm:$0xff] }
  0x6e   : > { %1234 = vrot.lane.b32.xlu1 %v560_v25, %s5242_s18  ;;  %1232 = vrot.lane.b32.xlu0 %v559_v26, %s5242_s18  ;;  %v5644_v60 = vld [vmem:[#allocation2 + $0x80] sm:$0xff] }
  0x6f   : > { %v5652_v0 = vld [vmem:[#allocation2 + $0x81] sm:$0xff] }
  0x70   : > { %v5660_v4 = vld [vmem:[#allocation2 + $0x7a] sm:$0xff]  ;;  %v5665_v7 = vld [vmem:[#allocation2 + $0x82] sm:$0xff] }
  0x72   : > { %1362 = vrot.lane.b32.xlu1 %v5541_v27, %s5243_s22  ;;  %1360 = vrot.lane.b32.xlu0 %v5549_v30, %s5243_s22 }
  0x76   : > { %1490 = vrot.lane.b32.xlu1 %v625_v37, %s5244_s8  ;;  %1488 = vrot.lane.b32.xlu0 %v624_v38, %s5244_s8 }
  0x7a   : > { %724 = vrot.lane.b32.xlu1 %v527_v24, %s5239_s21  ;;  %1616 = vrot.lane.b32.xlu0 %v656_v40, %s5245_s9 }
  0x7e   : > { %726 = vrot.lane.b32.xlu1 %v528_v23, %s5239_s21  ;;  %1618 = vrot.lane.b32.xlu0 %v657_v41, %s5245_s9 }
  0x82   : > { %854 = vrot.lane.b32.xlu1 %v560_v25, %s5238_s20  ;;  %852 = vrot.lane.b32.xlu0 %v559_v26, %s5238_s20  ;;  %v353_v26 = vld [vmem:[%s5491_s19 + $0x90] sm:$0xff] }
  0x83   : > { %385 = vst.msk [vmem:[#allocation2 + $0xf1] sm:$0xff] %vm292_vm0, %v353_v26 }
  0x86   : > { %982 = vrot.lane.b32.xlu1 %v5541_v27, %s5240_s15  ;;  %980 = vrot.lane.b32.xlu0 %v5549_v30, %s5240_s15 }
  0x8a   : > { %1110 = vrot.lane.b32.xlu1 %v625_v37, %s5241_s16  ;;  %1108 = vrot.lane.b32.xlu0 %v624_v38, %s5241_s16 }
  0x8e   : > { %1238 = vrot.lane.b32.xlu1 %v657_v41, %s5242_s18  ;;  %1236 = vrot.lane.b32.xlu0 %v656_v40, %s5242_s18 }
  0x92   : > { %1366 = vrot.lane.b32.xlu1 %v5588_v44, %s5243_s22  ;;  %1364 = vrot.lane.b32.xlu0 %v5590_v45, %s5243_s22 }
  0x96   : > { %1494 = vrot.lane.b32.xlu1 %v627_v46, %s5244_s8  ;;  %1492 = vrot.lane.b32.xlu0 %v626_v47, %s5244_s8 }
  0x9a   : > { %728 = vrot.lane.b32.xlu1 %v624_v38, %s5239_s21  ;;  %1620 = vrot.lane.b32.xlu0 %v658_v48, %s5245_s9 }
  0x9e   : > { %730 = vrot.lane.b32.xlu1 %v625_v37, %s5239_s21  ;;  %1622 = vrot.lane.b32.xlu0 %v659_v49, %s5245_s9 }
  0xa2   : > { %858 = vrot.lane.b32.xlu1 %v657_v41, %s5238_s20  ;;  %856 = vrot.lane.b32.xlu0 %v656_v40, %s5238_s20  ;;  %v5703_v40 = vld [vmem:[#allocation2 + $0x98] sm:$0xff]  ;;  %v5705_v41 = vld [vmem:[#allocation2 + $0x90] sm:$0xff] }
  0xa6   : > { %986 = vrot.lane.b32.xlu1 %v5588_v44, %s5240_s15  ;;  %984 = vrot.lane.b32.xlu0 %v5590_v45, %s5240_s15 }
  0xaa   : > { %1114 = vrot.lane.b32.xlu1 %v627_v46, %s5241_s16  ;;  %1112 = vrot.lane.b32.xlu0 %v626_v47, %s5241_s16 }
  0xae   : > { %1242 = vrot.lane.b32.xlu1 %v659_v49, %s5242_s18  ;;  %1240 = vrot.lane.b32.xlu0 %v658_v48, %s5242_s18 }
  0xb2   : > { %1370 = vrot.lane.b32.xlu1 %v5616_v52, %s5243_s22  ;;  %1368 = vrot.lane.b32.xlu0 %v5618_v53, %s5243_s22  ;;  %v849_v62 = vpop.permute.xlu1 %848 }
  0xb3   : > { %v721_v63 = vpop.permute.xlu0 %720 }
  0xb4   : > { %v1712_v13 = vsel %vm292_vm0, %v399_v12, %v721_v63 }
  0xb5   : > { %v1745_v17 = vsel %vm1744_vm3, %v1712_v13, %v849_v62 }
  0xb6   : > { %1498 = vrot.lane.b32.xlu1 %v629_v54, %s5244_s8  ;;  %1496 = vrot.lane.b32.xlu0 %v628_v55, %s5244_s8 }
  0xba   : > { %732 = vrot.lane.b32.xlu1 %v626_v47, %s5239_s21  ;;  %1624 = vrot.lane.b32.xlu0 %v660_v56, %s5245_s9 }
  0xbe   : > { %734 = vrot.lane.b32.xlu1 %v627_v46, %s5239_s21  ;;  %1626 = vrot.lane.b32.xlu0 %v661_v57, %s5245_s9 }
  0xc2   : > { %862 = vrot.lane.b32.xlu1 %v659_v49, %s5238_s20  ;;  %860 = vrot.lane.b32.xlu0 %v658_v48, %s5238_s20  ;;  %v5714_v48 = vld [vmem:[#allocation2 + $0x99] sm:$0xff]  ;;  %v5716_v49 = vld [vmem:[#allocation2 + $0x91] sm:$0xff] }
  0xc6   : > { %990 = vrot.lane.b32.xlu1 %v5616_v52, %s5240_s15  ;;  %988 = vrot.lane.b32.xlu0 %v5618_v53, %s5240_s15  ;;  %v851_v2 = vpop.permute.xlu1 %850 }
  0xc7   : > { %v723_v3 = vpop.permute.xlu0 %722 }
  0xc8   : > { %v1713_v18 = vsel %vm292_vm0, %v400_v16, %v723_v3 }
  0xc9   : > { %v1746_v29 = vsel %vm1744_vm3, %v1713_v18, %v851_v2 }
  0xca   : > { %1118 = vrot.lane.b32.xlu1 %v629_v54, %s5241_s16  ;;  %1116 = vrot.lane.b32.xlu0 %v628_v55, %s5241_s16 }
  0xce   : > { %1246 = vrot.lane.b32.xlu1 %v661_v57, %s5242_s18  ;;  %1244 = vrot.lane.b32.xlu0 %v660_v56, %s5242_s18 }
  0xd2   : > { %1374 = vrot.lane.b32.xlu1 %v5644_v60, %s5243_s22  ;;  %1372 = vrot.lane.b32.xlu0 %v5646_v61, %s5243_s22 }
  0xd6   : > { %1502 = vrot.lane.b32.xlu1 %v5652_v0, %s5244_s8  ;;  %1500 = vrot.lane.b32.xlu0 %v5654_v1, %s5244_s8 }
  0xd8   : > { %v979_v5 = vpop.permute.xlu1 %978  ;;  %v977_v6 = vpop.permute.xlu0 %976 }
  0xd9   : > { %v1778_v19 = vsel %vm1777_vm4, %v1745_v17, %v977_v6  ;;  %v1779_v32 = vsel %vm1777_vm4, %v1746_v29, %v979_v5  ;;  %v5786_v29 = vld [vmem:[#allocation2 + $0xb1] sm:$0xff] }
  0xda   : > { %736 = vrot.lane.b32.xlu1 %v628_v55, %s5239_s21  ;;  %1628 = vrot.lane.b32.xlu0 %v5660_v4, %s5245_s9 }
  0xdc   : > { %v1107_v8 = vpop.permute.xlu1 %1106  ;;  %v1105_v9 = vpop.permute.xlu0 %1104 }
  0xdd   : > { %v1811_v24 = vsel %vm1810_vm5, %v1778_v19, %v1105_v9  ;;  %v1812_v36 = vsel %vm1810_vm5, %v1779_v32, %v1107_v8 }
  0xde   : > { %738 = vrot.lane.b32.xlu1 %v629_v54, %s5239_s21  ;;  %1630 = vrot.lane.b32.xlu0 %v5665_v7, %s5245_s9  ;;  %v5722_v54 = vld [vmem:[#allocation2 + $0x92] sm:$0xff] }
  0xe0   : > { %v1235_v10 = vpop.permute.xlu1 %1234  ;;  %v1233_v11 = vpop.permute.xlu0 %1232 }
  0xe1   : > { %v1844_v25 = vsel %vm1843_vm6, %v1811_v24, %v1233_v11  ;;  %v1845_v38 = vsel %vm1843_vm6, %v1812_v36, %v1235_v10  ;;  %v356_v10 = vld [vmem:[%s5491_s19 + $0xa8] sm:$0xff] }
  0xe2   : > { %866 = vrot.lane.b32.xlu1 %v661_v57, %s5238_s20  ;;  %864 = vrot.lane.b32.xlu0 %v660_v56, %s5238_s20  ;;  %v5728_v57 = vld [vmem:[#allocation2 + $0x9a] sm:$0xff]  ;;  %388 = vst.msk [vmem:[#allocation2 + $0x111] sm:$0xff] %vm292_vm0, %v356_v10 }
  0xe4   : > { %v1363_v14 = vpop.permute.xlu1 %1362  ;;  %v1361_v15 = vpop.permute.xlu0 %1360 }
  0xe5   : > { %v1877_v31 = vsel %vm1876_vm7, %v1844_v25, %v1361_v15  ;;  %v1878_v39 = vsel %vm1876_vm7, %v1845_v38, %v1363_v14  ;;  %v5246_v38 = vmov 0.0|0.0  }
  0xe6   : > { %994 = vrot.lane.b32.xlu1 %v5644_v60, %s5240_s15  ;;  %992 = vrot.lane.b32.xlu0 %v5646_v61, %s5240_s15 }
  0xe7   : > { %4723 = vmatprep.subr.bf16.mxu1 %v5246_v38  ;;  %4675 = vmatprep.subr.bf16.mxu0 %v5246_v38 }
  0xe8   : > { %v1491_v20 = vpop.permute.xlu1 %1490  ;;  %v1489_v23 = vpop.permute.xlu0 %1488 }
  0xe9   : > { %v1910_v33 = vsel %vm1909_vm8, %v1877_v31, %v1489_v23  ;;  %v1911_v42 = vsel %vm1909_vm8, %v1878_v39, %v1491_v20  ;;  %v5773_v20 = vld [vmem:[#allocation2 + $0xb0] sm:$0xff]  ;;  %v5775_v23 = vld [vmem:[#allocation2 + $0xa8] sm:$0xff] }
  0xea   : > { %1122 = vrot.lane.b32.xlu1 %v5652_v0, %s5241_s16  ;;  %1120 = vrot.lane.b32.xlu0 %v5654_v1, %s5241_s16  ;;  %v5788_v31 = vld [vmem:[#allocation2 + $0xa9] sm:$0xff] }
  0xec   : > { %v725_v34 = vpop.permute.xlu1 %724  ;;  %v1617_v35 = vpop.permute.xlu0 %1616 }
  0xed   : > { %v1943_v37 = vsel %vm1942_vm9, %v1910_v33, %v1617_v35  ;;  %v1714_v3 = vsel %vm292_vm0, %v5531_v22, %v725_v34  ;;  %v355_v22 = vld [vmem:[%s5491_s19 + $0xa0] sm:$0xff]  ;;  %v2810_v35 = vld [vmem:[#allocation4 + $0x108] sm:$0xff] }
  0xee   : > { %1250 = vrot.lane.b32.xlu1 %v5665_v7, %s5242_s18  ;;  %1248 = vrot.lane.b32.xlu0 %v5660_v4, %s5242_s18  ;;  %387 = vst.msk [vmem:[#allocation2 + $0x109] sm:$0xff] %vm292_vm0, %v355_v22  ;;  %v2809_v34 = vld [vmem:[#allocation4 + $0x100] sm:$0xff]  ;;  %v2820_v22 = vld [vmem:[#allocation4 + $0x158] sm:$0xff] }
  0xef   : > { %4531 = vmatprep.mubr.msk.f32.mxu0 %vm1984_vm10, %v1943_v37  ;;  %v4724_v36 = vpack.c.bf16 %v2810_v35, %v2809_v34  ;;  %v5796_v37 = vld [vmem:[#allocation2 + $0xaa] sm:$0xff]  ;;  %v5860_v35 = vld [vmem:[#allocation2 + $0xc0] sm:$0xff] }
  0xf0   : > { %v727_v43 = vpop.permute.xlu1 %726  ;;  %v1619_v46 = vpop.permute.xlu0 %1618  ;;  %v5858_v34 = vld [vmem:[#allocation2 + $0xc8] sm:$0xff] }
  0xf1   : > { %v1944_v47 = vsel %vm1942_vm9, %v1911_v42, %v1619_v46  ;;  %v1715_v8 = vsel %vm292_vm0, %v5529_v21, %v727_v43  ;;  %4725 = vmatpush1.bf16.msra.mxu1 %v4724_v36  ;;  %v2811_v43 = vld [vmem:[#allocation4 + $0x110] sm:$0xff]  ;;  %v2812_v46 = vld [vmem:[#allocation4 + $0x118] sm:$0xff] }
  0xf2   : > { %1378 = vrot.lane.b32.xlu1 %v5703_v40, %s5243_s22  ;;  %1376 = vrot.lane.b32.xlu0 %v5705_v41, %s5243_s22 }
  0xf3   : > { %4532 = vmatmul.mubr.msk.f32.vlgmr.msra.gmra.mrb[0].mxu0 %vm1984_vm10, %v1944_v47  ;;  %4726 = vmatprep.subr.bf16.mxu1 %v5246_v38  ;;  %v4727_v47 = vpack.c.bf16 %v2812_v46, %v2811_v43  ;;  %v2823_v46 = vld [vmem:[#allocation4 + $0x170] sm:$0xff] }
  0xf4   : > { %v855_v50 = vpop.permute.xlu1 %854  ;;  %v853_v51 = vpop.permute.xlu0 %852 }
  0xf5   : > { %v1748_v11 = vsel %vm1744_vm3, %v1715_v8, %v855_v50  ;;  %v5805_v50 = vld [vmem:[#allocation2 + $0xb2] sm:$0xff]  ;;  %4728 = vmatpush1.bf16.msra.mxu1 %v4727_v47 }
  0xf6   : > { %1506 = vrot.lane.b32.xlu1 %v5714_v48, %s5244_s8  ;;  %1504 = vrot.lane.b32.xlu0 %v5716_v49, %s5244_s8  ;;  %v2824_v47 = vld [vmem:[#allocation4 + $0x178] sm:$0xff] }
  0xf7   : > { %4729 = vmatprep.subr.bf16.mxu1 %v5246_v38 }
  0xf8   : > { %v983_v55 = vpop.permute.xlu1 %982  ;;  %v981_v56 = vpop.permute.xlu0 %980 }
  0xf9   : > { %v1781_v21 = vsel %vm1777_vm4, %v1748_v11, %v983_v55 }
  0xfa   : > { %740 = vrot.lane.b32.xlu1 %v5654_v1, %s5239_s21  ;;  %1632 = vrot.lane.b32.xlu0 %v5722_v54, %s5245_s9 }
  0xfc   : > { %v1111_v58 = vpop.permute.xlu1 %1110  ;;  %v1109_v59 = vpop.permute.xlu0 %1108 }
  0xfd   : > { %v1814_v16 = vsel %vm1810_vm5, %v1781_v21, %v1111_v58  ;;  %v2814_v58 = vld [vmem:[#allocation4 + $0x128] sm:$0xff]  ;;  %v357_v21 = vld [vmem:[%s5491_s19 + $0xb0] sm:$0xff] }
  0xfe   : > { %742 = vrot.lane.b32.xlu1 %v5652_v0, %s5239_s21  ;;  %1634 = vrot.lane.b32.xlu0 %v5728_v57, %s5245_s9  ;;  %v1747_v0 = vsel %vm1744_vm3, %v1714_v3, %v853_v51  ;;  %389 = vst.msk [vmem:[#allocation2 + $0x121] sm:$0xff] %vm292_vm0, %v357_v21  ;;  %v2834_v21 = vld [vmem:[#allocation4 + $0x1c8] sm:$0xff] }
  0xff   : > { %v1780_v5 = vsel %vm1777_vm4, %v1747_v0, %v981_v56  ;;  %v2813_v56 = vld [vmem:[#allocation4 + $0x120] sm:$0xff] }
 0x100   : > { %v1239_v62 = vpop.permute.xlu1 %1238  ;;  %v1237_v63 = vpop.permute.xlu0 %1236  ;;  %v2817_v0 = vld [vmem:[#allocation4 + $0x140] sm:$0xff] }
 0x101   : > { %v1847_v18 = vsel %vm1843_vm6, %v1814_v16, %v1239_v62 }
 0x102   : > { %870 = vrot.lane.b32.xlu1 %v5665_v7, %s5238_s20  ;;  %868 = vrot.lane.b32.xlu0 %v5660_v4, %s5238_s20  ;;  %v1813_v4 = vsel %vm1810_vm5, %v1780_v5, %v1109_v59  ;;  %v2818_v5 = vld [vmem:[#allocation4 + $0x148] sm:$0xff] }
 0x103   : > { %v1846_v9 = vsel %vm1843_vm6, %v1813_v4, %v1237_v63  ;;  %v2815_v63 = vld [vmem:[#allocation4 + $0x130] sm:$0xff] }
 0x104   : > { %v1367_v1 = vpop.permute.xlu1 %1366  ;;  %v1365_v2 = vpop.permute.xlu0 %1364 }
 0x105   : > { %v1879_v12 = vsel %vm1876_vm7, %v1846_v9, %v1365_v2  ;;  %v1880_v19 = vsel %vm1876_vm7, %v1847_v18, %v1367_v1  ;;  %v2816_v1 = vld [vmem:[#allocation4 + $0x138] sm:$0xff] }
 0x106   : > { %998 = vrot.lane.b32.xlu1 %v5703_v40, %s5240_s15  ;;  %996 = vrot.lane.b32.xlu0 %v5705_v41, %s5240_s15  ;;  %v4733_v2 = vpack.c.bf16 %v2816_v1, %v2815_v63  ;;  %v5883_v1 = vld [vmem:[#allocation2 + $0xc2] sm:$0xff] }
 0x108   : > { %v1495_v6 = vpop.permute.xlu1 %1494  ;;  %v1493_v7 = vpop.permute.xlu0 %1492 }
 0x109   : > { %v1912_v13 = vsel %vm1909_vm8, %v1879_v12, %v1493_v7  ;;  %v1913_v24 = vsel %vm1909_vm8, %v1880_v19, %v1495_v6 }
 0x10a   : > { %1126 = vrot.lane.b32.xlu1 %v5714_v48, %s5241_s16  ;;  %1124 = vrot.lane.b32.xlu0 %v5716_v49, %s5241_s16 }
 0x10c   : > { %v5762_v14 = vpop.permute.xlu1 %728  ;;  %v1621_v15 = vpop.permute.xlu0 %1620 }
 0x10d   : > { %v1945_v17 = vsel %vm1942_vm9, %v1912_v13, %v1621_v15  ;;  %v1716_v6 = vsel %vm292_vm0, %v5549_v30, %v5762_v14  ;;  %v2819_v30 = vld [vmem:[#allocation4 + $0x150] sm:$0xff]  ;;  %v358_v13 = vld [vmem:[%s5491_s19 + $0xb8] sm:$0xff] }
 0x10e   : > { %1254 = vrot.lane.b32.xlu1 %v5728_v57, %s5242_s18  ;;  %1252 = vrot.lane.b32.xlu0 %v5722_v54, %s5242_s18  ;;  %v4739_v12 = vpack.c.bf16 %v2820_v22, %v2819_v30  ;;  %390 = vst.msk [vmem:[#allocation2 + $0x129] sm:$0xff] %vm292_vm0, %v358_v13  ;;  %v2831_v30 = vld [vmem:[#allocation4 + $0x1b0] sm:$0xff]  ;;  %v2832_v22 = vld [vmem:[#allocation4 + $0x1b8] sm:$0xff] }
 0x10f   : > { %4534 = vmatprep.mubr.msk.f32.mxu0 %vm1984_vm10, %v1945_v17 }
 0x110   : > { %v5778_v25 = vpop.permute.xlu1 %730  ;;  %v1623_v26 = vpop.permute.xlu0 %1622 }
 0x111   : > { %v1946_v28 = vsel %vm1942_vm9, %v1913_v24, %v1623_v26  ;;  %v1717_v10 = vsel %vm292_vm0, %v5541_v27, %v5778_v25  ;;  %v2821_v25 = vld [vmem:[#allocation4 + $0x160] sm:$0xff]  ;;  %v2822_v26 = vld [vmem:[#allocation4 + $0x168] sm:$0xff] }
 0x112   : > { %1382 = vrot.lane.b32.xlu1 %v5773_v20, %s5243_s22  ;;  %1380 = vrot.lane.b32.xlu0 %v5775_v23, %s5243_s22 }
 0x113   : > { %4535 = vmatmul.mubr.msk.f32.gmra.mrb[2].mxu0 %vm1984_vm10, %v1946_v28 }
 0x114   : > { %v5790_v32 = vpop.permute.xlu1 %858  ;;  %v857_v33 = vpop.permute.xlu0 %856 }
 0x115   : > { %v1750_v14 = vsel %vm1744_vm3, %v1717_v10, %v5790_v32  ;;  %v4742_v32 = vpack.c.bf16 %v2822_v26, %v2821_v25  ;;  %v4757_v10 = vpack.c.bf16 %v2832_v22, %v2831_v30  ;;  %v359_v25 = vld [vmem:[%s5491_s19 + $0xc0] sm:$0xff]  ;;  %v360_v26 = vld [vmem:[%s5491_s19 + $0xc8] sm:$0xff] }
 0x116   : > { %1510 = vrot.lane.b32.xlu1 %v5786_v29, %s5244_s8  ;;  %1508 = vrot.lane.b32.xlu0 %v5788_v31, %s5244_s8  ;;  %391 = vst.msk [vmem:[#allocation2 + $0x139] sm:$0xff] %vm292_vm0, %v359_v25  ;;  %392 = vst.msk [vmem:[#allocation2 + $0x141] sm:$0xff] %vm292_vm0, %v360_v26  ;;  %v5968_v22 = vld [vmem:[#allocation2 + $0xe2] sm:$0xff] }
 0x118   : > { %v987_v39 = vpop.permute.xlu1 %986  ;;  %v985_v42 = vpop.permute.xlu0 %984 }
 0x119   : > { %v1783_v27 = vsel %vm1777_vm4, %v1750_v14, %v987_v39 }
 0x11a   : > { %744 = vrot.lane.b32.xlu1 %v5716_v49, %s5239_s21  ;;  %1636 = vrot.lane.b32.xlu0 %v5796_v37, %s5245_s9  ;;  %v4730_v49 = vpack.c.bf16 %v2814_v58, %v2813_v56  ;;  %v5874_v56 = vld [vmem:[#allocation2 + $0xc1] sm:$0xff] }
 0x11c   : > { %v1115_v51 = vpop.permute.xlu1 %1114  ;;  %v1113_v55 = vpop.permute.xlu0 %1112  ;;  %4731 = vmatpush1.bf16.msra.mxu1 %v4730_v49 }
 0x11d   : > { %4732 = vmatprep.subr.bf16.mxu1 %v5246_v38  ;;  %v1816_v19 = vsel %vm1810_vm5, %v1783_v27, %v1115_v51  ;;  %v4745_v51 = vpack.c.bf16 %v2824_v47, %v2823_v46  ;;  %v2837_v46 = vld [vmem:[#allocation4 + $0x1e0] sm:$0xff]  ;;  %v2838_v47 = vld [vmem:[#allocation4 + $0x1e8] sm:$0xff] }
 0x11e   : > { %746 = vrot.lane.b32.xlu1 %v5714_v48, %s5239_s21  ;;  %1638 = vrot.lane.b32.xlu0 %v5805_v50, %s5245_s9 }
 0x120   : > { %v1243_v59 = vpop.permute.xlu1 %1242  ;;  %v1241_v62 = vpop.permute.xlu0 %1240  ;;  %4734 = vmatpush1.bf16.msra.mxu1 %v4733_v2 }
 0x121   : > { %4735 = vmatprep.subr.bf16.mxu1 %v5246_v38  ;;  %v1849_v28 = vsel %vm1843_vm6, %v1816_v19, %v1243_v59  ;;  %v2825_v59 = vld [vmem:[#allocation4 + $0x180] sm:$0xff] }
 0x122   : > { %874 = vrot.lane.b32.xlu1 %v5728_v57, %s5238_s20  ;;  %872 = vrot.lane.b32.xlu0 %v5722_v54, %s5238_s20  ;;  %v4736_v54 = vpack.c.bf16 %v2818_v5, %v2817_v0  ;;  %v1749_v57 = vsel %vm1744_vm3, %v1716_v6, %v857_v33  ;;  %v2828_v0 = vld [vmem:[#allocation4 + $0x198] sm:$0xff]  ;;  %v5890_v6 = vld [vmem:[#allocation2 + $0xca] sm:$0xff] }
 0x123   : > { %v1782_v7 = vsel %vm1777_vm4, %v1749_v57, %v985_v42 }
 0x124   : > { %v1371_v3 = vpop.permute.xlu1 %1370  ;;  %v1369_v48 = vpop.permute.xlu0 %1368  ;;  %4737 = vmatpush1.bf16.msra.mxu1 %v4736_v54  ;;  %v1815_v9 = vsel %vm1810_vm5, %v1782_v7, %v1113_v55  ;;  %v5872_v55 = vld [vmem:[#allocation2 + $0xc9] sm:$0xff]  ;;  %v2829_v7 = vld [vmem:[#allocation4 + $0x1a0] sm:$0xff] }
 0x125   : > { %4738 = vmatprep.subr.bf16.mxu1 %v5246_v38  ;;  %v1848_v11 = vsel %vm1843_vm6, %v1815_v9, %v1241_v62  ;;  %v1882_v33 = vsel %vm1876_vm7, %v1849_v28, %v1371_v3  ;;  %v2826_v62 = vld [vmem:[#allocation4 + $0x188] sm:$0xff] }
 0x126   : > { %1002 = vrot.lane.b32.xlu1 %v5773_v20, %s5240_s15  ;;  %1000 = vrot.lane.b32.xlu0 %v5775_v23, %s5240_s15  ;;  %v1881_v15 = vsel %vm1876_vm7, %v1848_v11, %v1369_v48  ;;  %v4748_v63 = vpack.c.bf16 %v2826_v62, %v2825_v59  ;;  %v2827_v48 = vld [vmem:[#allocation4 + $0x190] sm:$0xff]  ;;  %v5941_v59 = vld [vmem:[#allocation2 + $0xe0] sm:$0xff]  ;;  %v5943_v62 = vld [vmem:[#allocation2 + $0xd8] sm:$0xff] }
 0x127   : > { %v4751_v5 = vpack.c.bf16 %v2828_v0, %v2827_v48  ;;  %v2839_v0 = vld [vmem:[#allocation4 + $0x1f0] sm:$0xff] }
 0x128   : > { %v1499_v4 = vpop.permute.xlu1 %1498  ;;  %v1497_v8 = vpop.permute.xlu0 %1496  ;;  %4740 = vmatpush1.bf16.msra.mxu1 %v4739_v12  ;;  %v2833_v12 = vld [vmem:[#allocation4 + $0x1c0] sm:$0xff] }
 0x129   : > { %v1914_v16 = vsel %vm1909_vm8, %v1881_v15, %v1497_v8  ;;  %4741 = vmatprep.subr.bf16.mxu1 %v5246_v38  ;;  %v1915_v36 = vsel %vm1909_vm8, %v1882_v33, %v1499_v4  ;;  %v2830_v4 = vld [vmem:[#allocation4 + $0x1a8] sm:$0xff] }
 0x12a   : > { %1130 = vrot.lane.b32.xlu1 %v5786_v29, %s5241_s16  ;;  %1128 = vrot.lane.b32.xlu0 %v5788_v31, %s5241_s16 }
 0x12c   : > { %v5846_v17 = vpop.permute.xlu1 %732  ;;  %v1625_v18 = vpop.permute.xlu0 %1624  ;;  %4743 = vmatpush1.bf16.msra.mxu1 %v4742_v32 }
 0x12d   : > { %v1947_v24 = vsel %vm1942_vm9, %v1914_v16, %v1625_v18  ;;  %4744 = vmatprep.subr.bf16.mxu1 %v5246_v38  ;;  %v1718_v13 = vsel %vm292_vm0, %v5590_v45, %v5846_v17  ;;  %v2835_v45 = vld [vmem:[#allocation4 + $0x1d0] sm:$0xff]  ;;  %v2836_v17 = vld [vmem:[#allocation4 + $0x1d8] sm:$0xff] }
 0x12e   : > { %1258 = vrot.lane.b32.xlu1 %v5805_v50, %s5242_s18  ;;  %1256 = vrot.lane.b32.xlu0 %v5796_v37, %s5242_s18 }
 0x12f   : > { %4537 = vmatprep.mubr.msk.f32.mxu0 %vm1984_vm10, %v1947_v24  ;;  %v4763_v24 = vpack.c.bf16 %v2836_v17, %v2835_v45 }
 0x130   : > { %v5863_v39 = vpop.permute.xlu1 %734  ;;  %v1627_v42 = vpop.permute.xlu0 %1626  ;;  %4746 = vmatpush1.bf16.msra.mxu1 %v4745_v51 }
 0x131   : > { %v1948_v43 = vsel %vm1942_vm9, %v1915_v36, %v1627_v42  ;;  %4747 = vmatprep.subr.bf16.mxu1 %v5246_v38  ;;  %v1719_v18 = vsel %vm292_vm0, %v5588_v44, %v5863_v39 }
 0x132   : > { %1386 = vrot.lane.b32.xlu1 %v5858_v34, %s5243_s22  ;;  %1384 = vrot.lane.b32.xlu0 %v5860_v35, %s5243_s22 }
 0x133   : > { %4538 = vmatmul.mubr.msk.f32.gmra.mrb[4].mxu0 %vm1984_vm10, %v1948_v43 }
 0x134   : > { %v5876_v58 = vpop.permute.xlu1 %862  ;;  %v861_v49 = vpop.permute.xlu0 %860  ;;  %4749 = vmatpush1.bf16.msra.mxu1 %v4748_v63 }
 0x135   : > { %4750 = vmatprep.subr.bf16.mxu1 %v5246_v38  ;;  %v1752_v28 = vsel %vm1744_vm3, %v1719_v18, %v5876_v58  ;;  %v4766_v58 = vpack.c.bf16 %v2838_v47, %v2837_v46  ;;  %v6024_v46 = vld [vmem:[#allocation2 + $0xf1] sm:$0xff] }
 0x136   : > { %1514 = vrot.lane.b32.xlu1 %v5872_v55, %s5244_s8  ;;  %1512 = vrot.lane.b32.xlu0 %v5874_v56, %s5244_s8 }
 0x138   : > { %v991_v2 = vpop.permute.xlu1 %990  ;;  %v989_v3 = vpop.permute.xlu0 %988  ;;  %4752 = vmatpush1.bf16.msra.mxu1 %v4751_v5  ;;  %v2840_v5 = vld [vmem:[#allocation4 + $0x1f8] sm:$0xff] }
 0x139   : > { %4753 = vmatprep.subr.bf16.mxu1 %v5246_v38  ;;  %v1785_v44 = vsel %vm1777_vm4, %v1752_v28, %v991_v2 }
 0x13a   : > { %748 = vrot.lane.b32.xlu1 %v5788_v31, %s5239_s21  ;;  %1640 = vrot.lane.b32.xlu0 %v5883_v1, %s5245_s9  ;;  %v4754_v31 = vpack.c.bf16 %v2830_v4, %v2829_v7  ;;  %v5955_v7 = vld [vmem:[#allocation2 + $0xd9] sm:$0xff] }
 0x13c   : > { %v1119_v54 = vpop.permute.xlu1 %1118  ;;  %v1117_v57 = vpop.permute.xlu0 %1116  ;;  %4755 = vmatpush1.bf16.msra.mxu1 %v4754_v31 }
 0x13d   : > { %4756 = vmatprep.subr.bf16.mxu1 %v5246_v38  ;;  %v1818_v42 = vsel %vm1810_vm5, %v1785_v44, %v1119_v54  ;;  %v4769_v54 = vpack.c.bf16 %v2840_v5, %v2839_v0  ;;  %v6013_v44 = vld [vmem:[#allocation2 + $0xf0] sm:$0xff] }
 0x13e   : > { %750 = vrot.lane.b32.xlu1 %v5786_v29, %s5239_s21  ;;  %1642 = vrot.lane.b32.xlu0 %v5890_v6, %s5245_s9 }
 0x140   : > { %v1247_v8 = vpop.permute.xlu1 %1246  ;;  %v1245_v9 = vpop.permute.xlu0 %1244  ;;  %4758 = vmatpush1.bf16.msra.mxu1 %v4757_v10 }
 0x141   : > { %4759 = vmatprep.subr.bf16.mxu1 %v5246_v38  ;;  %v1851_v51 = vsel %vm1843_vm6, %v1818_v42, %v1247_v8  ;;  %v5962_v8 = vld [vmem:[#allocation2 + $0xda] sm:$0xff] }
 0x142   : > { %878 = vrot.lane.b32.xlu1 %v5805_v50, %s5238_s20  ;;  %876 = vrot.lane.b32.xlu0 %v5796_v37, %s5238_s20  ;;  %v4760_v37 = vpack.c.bf16 %v2834_v21, %v2833_v12  ;;  %v1751_v50 = vsel %vm1744_vm3, %v1718_v13, %v861_v49 }
 0x143   : > { %v1784_v14 = vsel %vm1777_vm4, %v1751_v50, %v989_v3 }
 0x144   : > { %v1375_v11 = vpop.permute.xlu1 %1374  ;;  %v1373_v29 = vpop.permute.xlu0 %1372  ;;  %4761 = vmatpush1.bf16.msra.mxu1 %v4760_v37  ;;  %v1817_v16 = vsel %vm1810_vm5, %v1784_v14, %v1117_v57  ;;  %v5953_v57 = vld [vmem:[#allocation2 + $0xe1] sm:$0xff] }
 0x145   : > { %4762 = vmatprep.subr.bf16.mxu1 %v5246_v38  ;;  %v1850_v19 = vsel %vm1843_vm6, %v1817_v16, %v1245_v9  ;;  %v1884_v49 = vsel %vm1876_vm7, %v1851_v51, %v1375_v11 }
 0x146   : > { %1006 = vrot.lane.b32.xlu1 %v5858_v34, %s5240_s15  ;;  %1004 = vrot.lane.b32.xlu0 %v5860_v35, %s5240_s15  ;;  %v1883_v32 = vsel %vm1876_vm7, %v1850_v19, %v1373_v29 }
 0x148   : > { %v1503_v15 = vpop.permute.xlu1 %1502  ;;  %v1501_v27 = vpop.permute.xlu0 %1500  ;;  %4764 = vmatpush1.bf16.msra.mxu1 %v4763_v24 }
 0x149   : > { %v1916_v33 = vsel %vm1909_vm8, %v1883_v32, %v1501_v27  ;;  %4765 = vmatprep.subr.bf16.mxu1 %v5246_v38  ;;  %v1917_v63 = vsel %vm1909_vm8, %v1884_v49, %v1503_v15  ;;  %v362_v27 = vld [vmem:[%s5491_s19 + $0xd8] sm:$0xff] }
 0x14a   : > { %1134 = vrot.lane.b32.xlu1 %v5872_v55, %s5241_s16  ;;  %1132 = vrot.lane.b32.xlu0 %v5874_v56, %s5241_s16  ;;  %394 = vst.msk [vmem:[#allocation2 + $0x159] sm:$0xff] %vm292_vm0, %v362_v27  ;;  %v6011_v32 = vld [vmem:[#allocation2 + $0xf8] sm:$0xff] }
 0x14c   : > { %v737_v36 = vpop.permute.xlu1 %736  ;;  %v1629_v39 = vpop.permute.xlu0 %1628  ;;  %4767 = vmatpush1.bf16.msra.mxu1 %v4766_v58  ;;  %v6030_v58 = vld [vmem:[#allocation2 + $0xf2] sm:$0xff] }
 0x14d   : > { %v1949_v43 = vsel %vm1942_vm9, %v1916_v33, %v1629_v39  ;;  %4768 = vmatprep.subr.bf16.mxu1 %v5246_v38  ;;  %v1720_v13 = vsel %vm292_vm0, %v5618_v53, %v737_v36  ;;  %v361_v53 = vld [vmem:[%s5491_s19 + $0xd0] sm:$0xff] }
 0x14e   : > { %1262 = vrot.lane.b32.xlu1 %v5890_v6, %s5242_s18  ;;  %1260 = vrot.lane.b32.xlu0 %v5883_v1, %s5242_s18  ;;  %393 = vst.msk [vmem:[#allocation2 + $0x151] sm:$0xff] %vm292_vm0, %v361_v53 }
 0x14f   : > { %4540 = vmatprep.mubr.msk.f32.mxu0 %vm1984_vm10, %v1949_v43  ;;  %v6022_v43 = vld [vmem:[#allocation2 + $0xf9] sm:$0xff] }
 0x150   : > { %v739_v2 = vpop.permute.xlu1 %738  ;;  %v1631_v3 = vpop.permute.xlu0 %1630  ;;  %4770 = vmatpush1.bf16.msra.mxu1 %v4769_v54 }
 0x151   : > { %v1950_v48 = vsel %vm1942_vm9, %v1917_v63, %v1631_v3  ;;  %4771 = vmatprep.subr.bf16.mxu1 %v5246_v38  ;;  %v1721_v14 = vsel %vm292_vm0, %v5616_v52, %v739_v2  ;;  %v6036_v2 = vld [vmem:[#allocation2 + $0xfa] sm:$0xff] }
 0x152   : > { %1390 = vrot.lane.b32.xlu1 %v5941_v59, %s5243_s22  ;;  %1388 = vrot.lane.b32.xlu0 %v5943_v62, %s5243_s22 }
 0x153   : > { %4541 = vmatmul.mubr.msk.f32.gmra.mrb[6].mxu0 %vm1984_vm10, %v1950_v48 }
 0x154   : > { %v867_v4 = vpop.permute.xlu1 %866  ;;  %v865_v31 = vpop.permute.xlu0 %864 }
 0x155   : > { %v1754_v16 = vsel %vm1744_vm3, %v1721_v14, %v867_v4  ;;  %v6081_v14 = vld [vmem:[#allocation2 + $0x108] sm:$0xff] }
 0x156   : > { %1518 = vrot.lane.b32.xlu1 %v5953_v57, %s5244_s8  ;;  %1516 = vrot.lane.b32.xlu0 %v5955_v7, %s5244_s8 }
 0x158   : > { %v995_v9 = vpop.permute.xlu1 %994  ;;  %v993_v30 = vpop.permute.xlu0 %992 }
 0x159   : > { %v1787_v52 = vsel %vm1777_vm4, %v1754_v16, %v995_v9 }
 0x15a   : > { %752 = vrot.lane.b32.xlu1 %v5874_v56, %s5239_s21  ;;  %1644 = vrot.lane.b32.xlu0 %v5962_v8, %s5245_s9 }
 0x15c   : > { %v1123_v10 = vpop.permute.xlu1 %1122  ;;  %v1121_v11 = vpop.permute.xlu0 %1120 }
 0x15d   : > { %v1820_v24 = vsel %vm1810_vm5, %v1787_v52, %v1123_v10  ;;  %v6092_v52 = vld [vmem:[#allocation2 + $0x109] sm:$0xff] }
 0x15e   : > { %754 = vrot.lane.b32.xlu1 %v5872_v55, %s5239_s21  ;;  %1646 = vrot.lane.b32.xlu0 %v5968_v22, %s5245_s9  ;;  %v1753_v55 = vsel %vm1744_vm3, %v1720_v13, %v865_v31 }
 0x160   : > { %v1251_v29 = vpop.permute.xlu1 %1250  ;;  %v1249_v12 = vpop.permute.xlu0 %1248 }
 0x161   : > { %v1853_v26 = vsel %vm1843_vm6, %v1820_v24, %v1251_v29 }
 0x162   : > { %882 = vrot.lane.b32.xlu1 %v5890_v6, %s5238_s20  ;;  %880 = vrot.lane.b32.xlu0 %v5883_v1, %s5238_s20  ;;  %v1786_v6 = vsel %vm1777_vm4, %v1753_v55, %v993_v30 }
 0x163   : > { %v1819_v1 = vsel %vm1810_vm5, %v1786_v6, %v1121_v11  ;;  %v364_v11 = vld [vmem:[%s5491_s19 + $0xe8] sm:$0xff] }
 0x164   : > { %v1379_v56 = vpop.permute.xlu1 %1378  ;;  %v1377_v21 = vpop.permute.xlu0 %1376  ;;  %v1852_v15 = vsel %vm1843_vm6, %v1819_v1, %v1249_v12  ;;  %396 = vst.msk [vmem:[#allocation2 + $0x171] sm:$0xff] %vm292_vm0, %v364_v11  ;;  %v6079_v1 = vld [vmem:[#allocation2 + $0x110] sm:$0xff] }
 0x165   : > { %v1885_v45 = vsel %vm1876_vm7, %v1852_v15, %v1377_v21  ;;  %v1886_v28 = vsel %vm1876_vm7, %v1853_v26, %v1379_v56  ;;  %v6104_v26 = vld [vmem:[#allocation2 + $0x112] sm:$0xff] }
 0x166   : > { %1010 = vrot.lane.b32.xlu1 %v5941_v59, %s5240_s15  ;;  %1008 = vrot.lane.b32.xlu0 %v5943_v62, %s5240_s15 }
 0x168   : > { %v1507_v37 = vpop.permute.xlu1 %1506  ;;  %v1505_v50 = vpop.permute.xlu0 %1504 }
 0x169   : > { %v1918_v17 = vsel %vm1909_vm8, %v1885_v45, %v1505_v50  ;;  %v1919_v33 = vsel %vm1909_vm8, %v1886_v28, %v1507_v37  ;;  %v6090_v45 = vld [vmem:[#allocation2 + $0x111] sm:$0xff] }
 0x16a   : > { %1138 = vrot.lane.b32.xlu1 %v5953_v57, %s5241_s16  ;;  %1136 = vrot.lane.b32.xlu0 %v5955_v7, %s5241_s16 }
 0x16c   : > { %v741_v18 = vpop.permute.xlu1 %740  ;;  %v1633_v19 = vpop.permute.xlu0 %1632 }
 0x16d   : > { %v1951_v25 = vsel %vm1942_vm9, %v1918_v17, %v1633_v19  ;;  %v1722_v4 = vsel %vm292_vm0, %v5646_v61, %v741_v18  ;;  %v363_v61 = vld [vmem:[%s5491_s19 + $0xe0] sm:$0xff]  ;;  %v6098_v19 = vld [vmem:[#allocation2 + $0x10a] sm:$0xff] }
 0x16e   : > { %1266 = vrot.lane.b32.xlu1 %v5968_v22, %s5242_s18  ;;  %1264 = vrot.lane.b32.xlu0 %v5962_v8, %s5242_s18  ;;  %395 = vst.msk [vmem:[#allocation2 + $0x169] sm:$0xff] %vm292_vm0, %v363_v61 }
 0x16f   : > { %4543 = vmatprep.mubr.msk.f32.mxu0 %vm1984_vm10, %v1951_v25 }
 0x170   : > { %v743_v36 = vpop.permute.xlu1 %742  ;;  %v1635_v39 = vpop.permute.xlu0 %1634 }
 0x171   : > { %v1952_v42 = vsel %vm1942_vm9, %v1919_v33, %v1635_v39 }
 0x172   : > { %1394 = vrot.lane.b32.xlu1 %v6011_v32, %s5243_s22  ;;  %1392 = vrot.lane.b32.xlu0 %v6013_v44, %s5243_s22 }
 0x173   : > { %4544 = vmatmul.mubr.msk.f32.gmra.mrb[8].mxu0 %vm1984_vm10, %v1952_v42 }
 0x174   : > { %v871_v47 = vpop.permute.xlu1 %870  ;;  %v869_v51 = vpop.permute.xlu0 %868 }
 0x176   : > { %1522 = vrot.lane.b32.xlu1 %v6022_v43, %s5244_s8  ;;  %1520 = vrot.lane.b32.xlu0 %v6024_v46, %s5244_s8 }
 0x178   : > { %v999_v49 = vpop.permute.xlu1 %998  ;;  %v997_v63 = vpop.permute.xlu0 %996 }
 0x17a   : > { %756 = vrot.lane.b32.xlu1 %v5955_v7, %s5239_s21  ;;  %1648 = vrot.lane.b32.xlu0 %v6030_v58, %s5245_s9 }
 0x17c   : > { %v1127_v3 = vpop.permute.xlu1 %1126  ;;  %v1125_v48 = vpop.permute.xlu0 %1124 }
 0x17e   : > { %758 = vrot.lane.b32.xlu1 %v5953_v57, %s5239_s21  ;;  %1650 = vrot.lane.b32.xlu0 %v6036_v2, %s5245_s9  ;;  %v1755_v57 = vsel %vm1744_vm3, %v1722_v4, %v869_v51 }
 0x17f   : > { %v1788_v31 = vsel %vm1777_vm4, %v1755_v57, %v997_v63 }
 0x180   : > { %v1255_v0 = vpop.permute.xlu1 %1254  ;;  %v1253_v5 = vpop.permute.xlu0 %1252 }
 0x182   : > { %886 = vrot.lane.b32.xlu1 %v5968_v22, %s5238_s20  ;;  %884 = vrot.lane.b32.xlu0 %v5962_v8, %s5238_s20  ;;  %v1821_v8 = vsel %vm1810_vm5, %v1788_v31, %v1125_v48  ;;  %v1723_v22 = vsel %vm292_vm0, %v5644_v60, %v743_v36  ;;  %v366_v48 = vld [vmem:[%s5491_s19 + $0xf8] sm:$0xff] }
 0x183   : > { %v1854_v10 = vsel %vm1843_vm6, %v1821_v8, %v1253_v5  ;;  %v1756_v29 = vsel %vm1744_vm3, %v1723_v22, %v871_v47  ;;  %398 = vst.msk [vmem:[#allocation2 + $0x189] sm:$0xff] %vm292_vm0, %v366_v48  ;;  %v6147_v8 = vld [vmem:[#allocation2 + $0x128] sm:$0xff]  ;;  %v6149_v22 = vld [vmem:[#allocation2 + $0x120] sm:$0xff] }
 0x184   : > { %v1383_v54 = vpop.permute.xlu1 %1382  ;;  %v1381_v7 = vpop.permute.xlu0 %1380  ;;  %v1789_v60 = vsel %vm1777_vm4, %v1756_v29, %v999_v49 }
 0x185   : > { %v1887_v12 = vsel %vm1876_vm7, %v1854_v10, %v1381_v7  ;;  %v1822_v55 = vsel %vm1810_vm5, %v1789_v60, %v1127_v3  ;;  %v6160_v60 = vld [vmem:[#allocation2 + $0x121] sm:$0xff] }
 0x186   : > { %1014 = vrot.lane.b32.xlu1 %v6011_v32, %s5240_s15  ;;  %1012 = vrot.lane.b32.xlu0 %v6013_v44, %s5240_s15  ;;  %v1855_v37 = vsel %vm1843_vm6, %v1822_v55, %v1255_v0 }
 0x187   : > { %v1888_v50 = vsel %vm1876_vm7, %v1855_v37, %v1383_v54  ;;  %v6172_v37 = vld [vmem:[#allocation2 + $0x12a] sm:$0xff] }
 0x188   : > { %v1511_v9 = vpop.permute.xlu1 %1510  ;;  %v1509_v30 = vpop.permute.xlu0 %1508 }
 0x189   : > { %v1920_v56 = vsel %vm1909_vm8, %v1887_v12, %v1509_v30  ;;  %v1921_v15 = vsel %vm1909_vm8, %v1888_v50, %v1511_v9  ;;  %v6158_v12 = vld [vmem:[#allocation2 + $0x129] sm:$0xff] }
 0x18a   : > { %1142 = vrot.lane.b32.xlu1 %v6022_v43, %s5241_s16  ;;  %1140 = vrot.lane.b32.xlu0 %v6024_v46, %s5241_s16 }
 0x18c   : > { %v745_v21 = vpop.permute.xlu1 %744  ;;  %v1637_v13 = vpop.permute.xlu0 %1636 }
 0x18d   : > { %v1953_v6 = vsel %vm1942_vm9, %v1920_v56, %v1637_v13  ;;  %v1724_v47 = vsel %vm292_vm0, %v5705_v41, %v745_v21  ;;  %v365_v41 = vld [vmem:[%s5491_s19 + $0xf0] sm:$0xff]  ;;  %v6166_v13 = vld [vmem:[#allocation2 + $0x122] sm:$0xff] }
 0x18e   : > { %1270 = vrot.lane.b32.xlu1 %v6036_v2, %s5242_s18  ;;  %1268 = vrot.lane.b32.xlu0 %v6030_v58, %s5242_s18  ;;  %397 = vst.msk [vmem:[#allocation2 + $0x181] sm:$0xff] %vm292_vm0, %v365_v41 }
 0x18f   : > { %4546 = vmatprep.mubr.msk.f32.mxu0 %vm1984_vm10, %v1953_v6 }
 0x190   : > { %v747_v53 = vpop.permute.xlu1 %746  ;;  %v1639_v27 = vpop.permute.xlu0 %1638 }
 0x191   : > { %v1954_v16 = vsel %vm1942_vm9, %v1921_v15, %v1639_v27 }
 0x192   : > { %1398 = vrot.lane.b32.xlu1 %v6079_v1, %s5243_s22  ;;  %1396 = vrot.lane.b32.xlu0 %v6081_v14, %s5243_s22 }
 0x193   : > { %4547 = vmatmul.mubr.msk.f32.gmra.mrb[10].mxu0 %vm1984_vm10, %v1954_v16 }
 0x194   : > { %v875_v17 = vpop.permute.xlu1 %874  ;;  %v873_v18 = vpop.permute.xlu0 %872 }
 0x196   : > { %1526 = vrot.lane.b32.xlu1 %v6090_v45, %s5244_s8  ;;  %1524 = vrot.lane.b32.xlu0 %v6092_v52, %s5244_s8 }
 0x198   : > { %v1003_v24 = vpop.permute.xlu1 %1002  ;;  %v1001_v25 = vpop.permute.xlu0 %1000 }
 0x19a   : > { %760 = vrot.lane.b32.xlu1 %v6024_v46, %s5239_s21  ;;  %1652 = vrot.lane.b32.xlu0 %v6098_v19, %s5245_s9 }
 0x19c   : > { %v1131_v28 = vpop.permute.xlu1 %1130  ;;  %v1129_v33 = vpop.permute.xlu0 %1128 }
 0x19e   : > { %762 = vrot.lane.b32.xlu1 %v6022_v43, %s5239_s21  ;;  %1654 = vrot.lane.b32.xlu0 %v6104_v26, %s5245_s9  ;;  %v1757_v43 = vsel %vm1744_vm3, %v1724_v47, %v873_v18 }
 0x19f   : > { %v1790_v51 = vsel %vm1777_vm4, %v1757_v43, %v1001_v25 }
 0x1a0   : > { %v1259_v36 = vpop.permute.xlu1 %1258  ;;  %v1257_v39 = vpop.permute.xlu0 %1256 }
 0x1a2   : > { %890 = vrot.lane.b32.xlu1 %v6036_v2, %s5238_s20  ;;  %888 = vrot.lane.b32.xlu0 %v6030_v58, %s5238_s20  ;;  %v1823_v58 = vsel %vm1810_vm5, %v1790_v51, %v1129_v33  ;;  %v1725_v2 = vsel %vm292_vm0, %v5703_v40, %v747_v53 }
 0x1a3   : > { %v1856_v3 = vsel %vm1843_vm6, %v1823_v58, %v1257_v39  ;;  %v1758_v0 = vsel %vm1744_vm3, %v1725_v2, %v875_v17  ;;  %v6185_v17 = vld [vmem:[%s7607_s2] ss:$0 sm:$0xff] }
 0x1a4   : > { %v1387_v42 = vpop.permute.xlu1 %1386  ;;  %v1385_v46 = vpop.permute.xlu0 %1384  ;;  %v1791_v40 = vsel %vm1777_vm4, %v1758_v0, %v1003_v24  ;;  %v6192_v24 = vld [vmem:[%s7608_s3] ss:$0 sm:$0xff] }
 0x1a5   : > { %v1889_v5 = vsel %vm1876_vm7, %v1856_v3, %v1385_v46  ;;  %v1824_v57 = vsel %vm1810_vm5, %v1791_v40, %v1131_v28 }
 0x1a6   : > { %1018 = vrot.lane.b32.xlu1 %v6079_v1, %s5240_s15  ;;  %1016 = vrot.lane.b32.xlu0 %v6081_v14, %s5240_s15  ;;  %v1857_v9 = vsel %vm1843_vm6, %v1824_v57, %v1259_v36 }
 0x1a7   : > { %v1890_v30 = vsel %vm1876_vm7, %v1857_v9, %v1387_v42 }
 0x1a8   : > { %v1515_v49 = vpop.permute.xlu1 %1514  ;;  %v1513_v63 = vpop.permute.xlu0 %1512 }
 0x1a9   : > { %v1922_v54 = vsel %vm1909_vm8, %v1889_v5, %v1513_v63  ;;  %v1923_v10 = vsel %vm1909_vm8, %v1890_v30, %v1515_v49  ;;  %v6236_v30 = vld [vmem:[#allocation2 + $0x141] sm:$0xff] }
 0x1aa   : > { %1146 = vrot.lane.b32.xlu1 %v6090_v45, %s5241_s16  ;;  %1144 = vrot.lane.b32.xlu0 %v6092_v52, %s5241_s16 }
 0x1ac   : > { %v749_v7 = vpop.permute.xlu1 %748  ;;  %v1641_v4 = vpop.permute.xlu0 %1640 }
 0x1ad   : > { %v1955_v31 = vsel %vm1942_vm9, %v1922_v54, %v1641_v4  ;;  %v6225_v54 = vld [vmem:[#allocation2 + $0x140] sm:$0xff] }
 0x1ae   : > { %1274 = vrot.lane.b32.xlu1 %v6104_v26, %s5242_s18  ;;  %1272 = vrot.lane.b32.xlu0 %v6098_v19, %s5242_s18 }
 0x1af   : > { %4549 = vmatprep.mubr.msk.f32.mxu0 %vm1984_vm10, %v1955_v31 }
 0x1b0   : > { %v751_v61 = vpop.permute.xlu1 %750  ;;  %v1643_v11 = vpop.permute.xlu0 %1642 }
 0x1b1   : > { %v1956_v29 = vsel %vm1942_vm9, %v1923_v10, %v1643_v11  ;;  %v1727_v46 = vsel %vm292_vm0, %v5773_v20, %v751_v61  ;;  %v6238_v11 = vld [vmem:[#allocation2 + $0x139] sm:$0xff] }
 0x1b2   : > { %1402 = vrot.lane.b32.xlu1 %v6147_v8, %s5243_s22  ;;  %1400 = vrot.lane.b32.xlu0 %v6149_v22, %s5243_s22 }
 0x1b3   : > { %4550 = vmatmul.mubr.msk.f32.gmra.mrb[12].mxu0 %vm1984_vm10, %v1956_v29  ;;  %v2552_v29 = vld [vmem:[#allocation3 + $0x2] sm:$0xff] }
 0x1b4   : > { %v879_v56 = vpop.permute.xlu1 %878  ;;  %v877_v21 = vpop.permute.xlu0 %876 }
 0x1b5   : > { %v1760_v51 = vsel %vm1744_vm3, %v1727_v46, %v879_v56 }
 0x1b6   : > { %1530 = vrot.lane.b32.xlu1 %v6158_v12, %s5244_s8  ;;  %1528 = vrot.lane.b32.xlu0 %v6160_v60, %s5244_s8 }
 0x1b8   : > { %v1007_v55 = vpop.permute.xlu1 %1006  ;;  %v1005_v6 = vpop.permute.xlu0 %1004 }
 0x1b9   : > { %v1793_v58 = vsel %vm1777_vm4, %v1760_v51, %v1007_v55 }
 0x1ba   : > { %764 = vrot.lane.b32.xlu1 %v6092_v52, %s5239_s21  ;;  %1656 = vrot.lane.b32.xlu0 %v6166_v13, %s5245_s9 }
 0x1bc   : > { %v1135_v50 = vpop.permute.xlu1 %1134  ;;  %v1133_v15 = vpop.permute.xlu0 %1132 }
 0x1bd   : > { %v1826_v48 = vsel %vm1810_vm5, %v1793_v58, %v1135_v50  ;;  %v6244_v50 = vld [vmem:[#allocation2 + $0x13a] sm:$0xff] }
 0x1be   : > { %766 = vrot.lane.b32.xlu1 %v6090_v45, %s5239_s21  ;;  %1658 = vrot.lane.b32.xlu0 %v6172_v37, %s5245_s9  ;;  %v1726_v45 = vsel %vm292_vm0, %v5775_v23, %v749_v7  ;;  %v6227_v7 = vld [vmem:[#allocation2 + $0x138] sm:$0xff] }
 0x1c0   : > { %v1263_v53 = vpop.permute.xlu1 %1262  ;;  %v1261_v27 = vpop.permute.xlu0 %1260 }
 0x1c1   : > { %v1859_v5 = vsel %vm1843_vm6, %v1826_v48, %v1263_v53 }
 0x1c2   : > { %894 = vrot.lane.b32.xlu1 %v6104_v26, %s5238_s20  ;;  %892 = vrot.lane.b32.xlu0 %v6098_v19, %s5238_s20  ;;  %v1759_v19 = vsel %vm1744_vm3, %v1726_v45, %v877_v21 }
 0x1c3   : > { %v1792_v28 = vsel %vm1777_vm4, %v1759_v19, %v1005_v6 }
 0x1c4   : > { %v1391_v16 = vpop.permute.xlu1 %1390  ;;  %v1389_v52 = vpop.permute.xlu0 %1388  ;;  %v1825_v39 = vsel %vm1810_vm5, %v1792_v28, %v1133_v15  ;;  %v2553_v15 = vld [vmem:[#allocation3 + $0xa] sm:$0xff] }
 0x1c5   : > { %v1858_v47 = vsel %vm1843_vm6, %v1825_v39, %v1261_v27  ;;  %v1892_v40 = vsel %vm1876_vm7, %v1859_v5, %v1391_v16  ;;  %v6250_v16 = vld [vmem:[#allocation2 + $0x142] sm:$0xff] }
 0x1c6   : > { %v4533_v18 = vpop.f32.mrb[0].mxu0  ;;  %1022 = vrot.lane.b32.xlu1 %v6147_v8, %s5240_s15  ;;  %1020 = vrot.lane.b32.xlu0 %v6149_v22, %s5240_s15  ;;  %v1891_v49 = vsel %vm1876_vm7, %v1858_v47, %v1389_v52 }
 0x1c7   : > { %v2314_v25 = vmul.f32 %v4533_v18, %v6185_v17  ;;  %v2147_v26 = vpop.f32.mrb[1].mxu0 }
 0x1c8   : > { %v2313_v23 = vmul.f32 %v6185_v17, %v2147_v26  ;;  %v1519_v33 = vpop.permute.xlu1 %1518  ;;  %v1517_v36 = vpop.permute.xlu0 %1516 }
 0x1c9   : > { %v2353_v42 = vadd.f32 %v6192_v24, %v2314_v25  ;;  %v1924_v20 = vsel %vm1909_vm8, %v1891_v49, %v1517_v36  ;;  %v1925_v4 = vsel %vm1909_vm8, %v1892_v40, %v1519_v33 }
 0x1ca   : > { %v2352_v43 = vadd.f32 %v6192_v24, %v2313_v23  ;;  %1150 = vrot.lane.b32.xlu1 %v6158_v12, %s5241_s16  ;;  %1148 = vrot.lane.b32.xlu0 %v6160_v60, %s5241_s16 }
 0x1cb   : > { %v2385_v63 = vmax.f32 %v2353_v42, 0.0 }
 0x1cc   : > { %v2384_v2 = vmax.f32 %v2352_v43, 0.0  ;;  %v753_v3 = vpop.permute.xlu1 %752  ;;  %v1645_v41 = vpop.permute.xlu0 %1644 }
 0x1cd   : > { %2457 = vst [vmem:[#allocation3 + $0x21] sm:$0xff] %v2385_v63  ;;  %v1957_v0 = vsel %vm1942_vm9, %v1924_v20, %v1645_v41  ;;  %v1728_v19 = vsel %vm292_vm0, %v5860_v35, %v753_v3 }
 0x1ce   : > { %2456 = vst [vmem:[#allocation3 + $0x19] sm:$0xff] %v2384_v2  ;;  %1278 = vrot.lane.b32.xlu1 %v6172_v37, %s5242_s18  ;;  %1276 = vrot.lane.b32.xlu0 %v6166_v13, %s5242_s18 }
 0x1cf   : > { %4552 = vmatprep.mubr.msk.f32.mxu0 %vm1984_vm10, %v1957_v0  ;;  %v6293_v0 = vld [vmem:[#allocation2 + $0x158] sm:$0xff] }
 0x1d0   : > { %v755_v57 = vpop.permute.xlu1 %754  ;;  %v1647_v31 = vpop.permute.xlu0 %1646 }
 0x1d1   : > { %v1958_v9 = vsel %vm1942_vm9, %v1925_v4, %v1647_v31  ;;  %v1729_v39 = vsel %vm292_vm0, %v5858_v34, %v755_v57  ;;  %v6296_v57 = vld [vmem:[#allocation2 + $0x150] sm:$0xff] }
 0x1d2   : > { %1406 = vrot.lane.b32.xlu1 %v6225_v54, %s5243_s22  ;;  %1404 = vrot.lane.b32.xlu0 %v6227_v7, %s5243_s22 }
 0x1d3   : > { %4553 = vmatmul.mubr.msk.f32.gmra.mrb[14].mxu0 %vm1984_vm10, %v1958_v9  ;;  %v6304_v9 = vld [vmem:[#allocation2 + $0x159] sm:$0xff] }
 0x1d4   : > { %v883_v10 = vpop.permute.xlu1 %882  ;;  %v881_v61 = vpop.permute.xlu0 %880 }
 0x1d5   : > { %v2584_v56 = vld [vmem:[#allocation3 + $0x18] sm:$0xff]  ;;  %v2585_v21 = vld [vmem:[#allocation3 + $0x20] sm:$0xff]  ;;  %v1762_v47 = vsel %vm1744_vm3, %v1729_v39, %v883_v10 }
 0x1d6   : > { %3210 = vmatprep.mubr.f32.mxu1 %v2584_v56  ;;  %1534 = vrot.lane.b32.xlu1 %v6236_v30, %s5244_s8 }
 0x1d7   : > { %1532 = vrot.lane.b32.xlu0 %v6238_v11, %s5244_s8  ;;  %3211 = vmatmul.mubr.f32.vlgmr.msra.gmra.mrb[0].mxu1 %v2552_v29  ;;  %v6306_v29 = vld [vmem:[#allocation2 + $0x151] sm:$0xff] }
 0x1d8   : > { %3215 = vmatprep.mubr.f32.mxu1 %v2585_v21  ;;  %v1011_v55 = vpop.permute.xlu1 %1010  ;;  %v1009_v6 = vpop.permute.xlu0 %1008  ;;  %v2554_v21 = vld [vmem:[#allocation3 + $0x1a] sm:$0xff] }
 0x1d9   : > { %v1795_v49 = vsel %vm1777_vm4, %v1762_v47, %v1011_v55 }
 0x1da   : > { %768 = vrot.lane.b32.xlu1 %v6160_v60, %s5239_s21 }
 0x1db   : > { %1660 = vrot.lane.b32.xlu0 %v6244_v50, %s5245_s9  ;;  %3216 = vmatmul.mubr.f32.gmra.mrb[2].mxu1 %v2553_v15 }
 0x1dc   : > { %v1139_v53 = vpop.permute.xlu1 %1138  ;;  %v1137_v27 = vpop.permute.xlu0 %1136 }
 0x1dd   : > { %v1828_v20 = vsel %vm1810_vm5, %v1795_v49, %v1139_v53  ;;  %v6312_v53 = vld [vmem:[#allocation2 + $0x152] sm:$0xff] }
 0x1de   : > { %770 = vrot.lane.b32.xlu1 %v6158_v12, %s5239_s21  ;;  %v1761_v12 = vsel %vm1744_vm3, %v1728_v19, %v881_v61 }
 0x1df   : > { %1662 = vrot.lane.b32.xlu0 %v6250_v16, %s5245_s9  ;;  %v1794_v28 = vsel %vm1777_vm4, %v1761_v12, %v1009_v6 }
 0x1e0   : > { %v1267_v52 = vpop.permute.xlu1 %1266  ;;  %v1265_v45 = vpop.permute.xlu0 %1264  ;;  %v1827_v35 = vsel %vm1810_vm5, %v1794_v28, %v1137_v27  ;;  %v2555_v27 = vld [vmem:[#allocation3 + $0x22] sm:$0xff] }
 0x1e1   : > { %v1860_v42 = vsel %vm1843_vm6, %v1827_v35, %v1265_v45  ;;  %v1861_v41 = vsel %vm1843_vm6, %v1828_v20, %v1267_v52 }
 0x1e2   : > { %898 = vrot.lane.b32.xlu1 %v6172_v37, %s5238_s20 }
 0x1e3   : > { %896 = vrot.lane.b32.xlu0 %v6166_v13, %s5238_s20 }
 0x1e4   : > { %v1395_v60 = vpop.permute.xlu1 %1394  ;;  %v1393_v18 = vpop.permute.xlu0 %1392 }
 0x1e5   : > { %v1893_v43 = vsel %vm1876_vm7, %v1860_v42, %v1393_v18  ;;  %v1894_v48 = vsel %vm1876_vm7, %v1861_v41, %v1395_v60  ;;  %v6318_v60 = vld [vmem:[#allocation2 + $0x15a] sm:$0xff] }
 0x1e6   : > { %v4536_v25 = vpop.f32.mrb[2].mxu0  ;;  %1026 = vrot.lane.b32.xlu1 %v6225_v54, %s5240_s15 }
 0x1e7   : > { %v2316_v26 = vmul.f32 %v4536_v25, %v6185_v17  ;;  %1024 = vrot.lane.b32.xlu0 %v6227_v7, %s5240_s15  ;;  %v2157_v37 = vpop.f32.mrb[3].mxu0 }
 0x1e8   : > { %v2315_v13 = vmul.f32 %v6185_v17, %v2157_v37  ;;  %v1523_v23 = vpop.permute.xlu1 %1522  ;;  %v1521_v33 = vpop.permute.xlu0 %1520 }
 0x1e9   : > { %v2355_v36 = vadd.f32 %v6192_v24, %v2316_v26  ;;  %v1926_v34 = vsel %vm1909_vm8, %v1893_v43, %v1521_v33  ;;  %v1927_v5 = vsel %vm1909_vm8, %v1894_v48, %v1523_v23 }
 0x1ea   : > { %v2354_v46 = vadd.f32 %v6192_v24, %v2315_v13  ;;  %1154 = vrot.lane.b32.xlu1 %v6236_v30, %s5241_s16 }
 0x1eb   : > { %v2387_v51 = vmax.f32 %v2355_v36, 0.0  ;;  %1152 = vrot.lane.b32.xlu0 %v6238_v11, %s5241_s16 }
 0x1ec   : > { %v2386_v63 = vmax.f32 %v2354_v46, 0.0  ;;  %v757_v58 = vpop.permute.xlu1 %756  ;;  %v1649_v2 = vpop.permute.xlu0 %1648 }
 0x1ed   : > { %2459 = vst [vmem:[#allocation3 + $0x39] sm:$0xff] %v2387_v51  ;;  %v1959_v3 = vsel %vm1942_vm9, %v1926_v34, %v1649_v2  ;;  %v1730_v12 = vsel %vm292_vm0, %v5943_v62, %v757_v58 }
 0x1ee   : > { %2458 = vst [vmem:[#allocation3 + $0x31] sm:$0xff] %v2386_v63  ;;  %1282 = vrot.lane.b32.xlu1 %v6250_v16, %s5242_s18  ;;  %4555 = vmatprep.mubr.msk.f32.mxu0 %vm1984_vm10, %v1959_v3  ;;  %v6363_v3 = vld [vmem:[#allocation2 + $0x170] sm:$0xff] }
 0x1ef   : > { %1280 = vrot.lane.b32.xlu0 %v6244_v50, %s5242_s18 }
 0x1f0   : > { %v759_v40 = vpop.permute.xlu1 %758  ;;  %v1651_v4 = vpop.permute.xlu0 %1650 }
 0x1f1   : > { %v1960_v31 = vsel %vm1942_vm9, %v1927_v5, %v1651_v4  ;;  %v1731_v35 = vsel %vm292_vm0, %v5941_v59, %v759_v40  ;;  %v6368_v40 = vld [vmem:[#allocation2 + $0x168] sm:$0xff] }
 0x1f2   : > { %1410 = vrot.lane.b32.xlu1 %v6293_v0, %s5243_s22  ;;  %4556 = vmatmul.mubr.msk.f32.gmra.mrb[16].mxu0 %vm1984_vm10, %v1960_v31  ;;  %v2777_v31 = vld [vmem:[#allocation4] sm:$0xff] }
 0x1f3   : > { %1408 = vrot.lane.b32.xlu0 %v6296_v57, %s5243_s22 }
 0x1f4   : > { %v887_v10 = vpop.permute.xlu1 %886  ;;  %v885_v61 = vpop.permute.xlu0 %884 }
 0x1f5   : > { %v2586_v56 = vld [vmem:[#allocation3 + $0x30] sm:$0xff]  ;;  %v2587_v55 = vld [vmem:[#allocation3 + $0x38] sm:$0xff]  ;;  %v1764_v42 = vsel %vm1744_vm3, %v1731_v35, %v887_v10 }
 0x1f6   : > { %3220 = vmatprep.mubr.f32.mxu1 %v2586_v56  ;;  %1538 = vrot.lane.b32.xlu1 %v6304_v9, %s5244_s8  ;;  %v2778_v10 = vld [vmem:[#allocation4 + $0x8] sm:$0xff] }
 0x1f7   : > { %1536 = vrot.lane.b32.xlu0 %v6306_v29, %s5244_s8  ;;  %3221 = vmatmul.mubr.f32.gmra.mrb[4].mxu1 %v2554_v21  ;;  %v4676_v56 = vpack.c.bf16 %v2778_v10, %v2777_v31  ;;  %v2789_v10 = vld [vmem:[#allocation4 + $0x60] sm:$0xff] }
 0x1f8   : > { %3225 = vmatprep.mubr.f32.mxu1 %v2587_v55  ;;  %v1015_v6 = vpop.permute.xlu1 %1014  ;;  %v1013_v15 = vpop.permute.xlu0 %1012 }
 0x1f9   : > { %v1797_v43 = vsel %vm1777_vm4, %v1764_v42, %v1015_v6  ;;  %v6380_v6 = vld [vmem:[#allocation2 + $0x169] sm:$0xff]  ;;  %4677 = vmatpush1.bf16.msra.mxu0 %v4676_v56 }
 0x1fa   : > { %772 = vrot.lane.b32.xlu1 %v6238_v11, %s5239_s21  ;;  %4678 = vmatprep.subr.bf16.mxu0 %v5246_v38  ;;  %v2790_v56 = vld [vmem:[#allocation4 + $0x68] sm:$0xff] }
 0x1fb   : > { %1664 = vrot.lane.b32.xlu0 %v6312_v53, %s5245_s9  ;;  %3226 = vmatmul.mubr.f32.gmra.mrb[6].mxu1 %v2555_v27  ;;  %v2556_v27 = vld [vmem:[#allocation3 + $0x32] sm:$0xff] }
 0x1fc   : > { %v1143_v52 = vpop.permute.xlu1 %1142  ;;  %v1141_v45 = vpop.permute.xlu0 %1140 }
 0x1fd   : > { %v1830_v34 = vsel %vm1810_vm5, %v1797_v43, %v1143_v52  ;;  %v2779_v52 = vld [vmem:[#allocation4 + $0x10] sm:$0xff] }
 0x1fe   : > { %774 = vrot.lane.b32.xlu1 %v6236_v30, %s5239_s21  ;;  %v1763_v30 = vsel %vm1744_vm3, %v1730_v12, %v885_v61  ;;  %v6376_v61 = vld [vmem:[#allocation2 + $0x171] sm:$0xff] }
 0x1ff   : > { %1666 = vrot.lane.b32.xlu0 %v6318_v60, %s5245_s9  ;;  %v1796_v28 = vsel %vm1777_vm4, %v1763_v30, %v1013_v15  ;;  %v6388_v12 = vld [vmem:[#allocation2 + $0x16a] sm:$0xff]  ;;  %v2781_v30 = vld [vmem:[#allocation4 + $0x20] sm:$0xff] }
 0x200   : > { %v1271_v18 = vpop.permute.xlu1 %1270  ;;  %v1269_v19 = vpop.permute.xlu0 %1268  ;;  %v1829_v62 = vsel %vm1810_vm5, %v1796_v28, %v1141_v45  ;;  %v2780_v45 = vld [vmem:[#allocation4 + $0x18] sm:$0xff] }
 0x201   : > { %v1862_v36 = vsel %vm1843_vm6, %v1829_v62, %v1269_v19  ;;  %v1863_v2 = vsel %vm1843_vm6, %v1830_v34, %v1271_v18  ;;  %v4679_v19 = vpack.c.bf16 %v2780_v45, %v2779_v52 }
 0x202   : > { %902 = vrot.lane.b32.xlu1 %v6250_v16, %s5238_s20 }
 0x203   : > { %900 = vrot.lane.b32.xlu0 %v6244_v50, %s5238_s20  ;;  %4680 = vmatpush1.bf16.msra.mxu0 %v4679_v19 }
 0x204   : > { %v1399_v11 = vpop.permute.xlu1 %1398  ;;  %v1397_v25 = vpop.permute.xlu0 %1396  ;;  %4681 = vmatprep.subr.bf16.mxu0 %v5246_v38 }
 0x205   : > { %v1895_v46 = vsel %vm1876_vm7, %v1862_v36, %v1397_v25  ;;  %v1896_v20 = vsel %vm1876_vm7, %v1863_v2, %v1399_v11  ;;  %v2785_v36 = vld [vmem:[#allocation4 + $0x40] sm:$0xff] }
 0x206   : > { %v4539_v26 = vpop.f32.mrb[4].mxu0  ;;  %1030 = vrot.lane.b32.xlu1 %v6293_v0, %s5240_s15 }
 0x207   : > { %v2318_v37 = vmul.f32 %v4539_v26, %v6185_v17  ;;  %1028 = vrot.lane.b32.xlu0 %v6296_v57, %s5240_s15  ;;  %v2167_v16 = vpop.f32.mrb[5].mxu0  ;;  %v2557_v26 = vld [vmem:[#allocation3 + $0x3a] sm:$0xff] }
 0x208   : > { %v2317_v50 = vmul.f32 %v6185_v17, %v2167_v16  ;;  %v1527_v13 = vpop.permute.xlu1 %1526  ;;  %v1525_v23 = vpop.permute.xlu0 %1524 }
 0x209   : > { %v2357_v33 = vadd.f32 %v6192_v24, %v2318_v37  ;;  %v1928_v59 = vsel %vm1909_vm8, %v1895_v46, %v1525_v23  ;;  %v1929_v41 = vsel %vm1909_vm8, %v1896_v20, %v1527_v13  ;;  %v2782_v37 = vld [vmem:[#allocation4 + $0x28] sm:$0xff]  ;;  %v6396_v13 = vld [vmem:[#allocation2 + $0x172] sm:$0xff] }
 0x20a   : > { %v2356_v39 = vadd.f32 %v6192_v24, %v2317_v50  ;;  %1158 = vrot.lane.b32.xlu1 %v6304_v9, %s5241_s16  ;;  %v4682_v16 = vpack.c.bf16 %v2782_v37, %v2781_v30  ;;  %v2784_v23 = vld [vmem:[#allocation4 + $0x38] sm:$0xff] }
 0x20b   : > { %v2389_v47 = vmax.f32 %v2357_v33, 0.0  ;;  %1156 = vrot.lane.b32.xlu0 %v6306_v29, %s5241_s16  ;;  %v2792_v30 = vld [vmem:[#allocation4 + $0x78] sm:$0xff] }
 0x20c   : > { %v2388_v51 = vmax.f32 %v2356_v39, 0.0  ;;  %v6352_v49 = vpop.permute.xlu1 %760  ;;  %v1653_v63 = vpop.permute.xlu0 %1652  ;;  %4683 = vmatpush1.bf16.msra.mxu0 %v4682_v16  ;;  %v2786_v39 = vld [vmem:[#allocation4 + $0x48] sm:$0xff] }
 0x20d   : > { %2461 = vst [vmem:[#allocation3 + $0x51] sm:$0xff] %v2389_v47  ;;  %v1961_v58 = vsel %vm1942_vm9, %v1928_v59, %v1653_v63  ;;  %4684 = vmatprep.subr.bf16.mxu0 %v5246_v38  ;;  %v1732_v47 = vsel %vm292_vm0, %v6013_v44, %v6352_v49  ;;  %v6459_v16 = vld [vmem:[#allocation2 + $0x188] sm:$0xff] }
 0x20e   : > { %2460 = vst [vmem:[#allocation3 + $0x49] sm:$0xff] %v2388_v51  ;;  %1286 = vrot.lane.b32.xlu1 %v6318_v60, %s5242_s18  ;;  %4558 = vmatprep.mubr.msk.f32.mxu0 %vm1984_vm10, %v1961_v58  ;;  %v2788_v51 = vld [vmem:[#allocation4 + $0x58] sm:$0xff] }
 0x20f   : > { %1284 = vrot.lane.b32.xlu0 %v6312_v53, %s5242_s18 }
 0x210   : > { %v6366_v48 = vpop.permute.xlu1 %762  ;;  %v1655_v5 = vpop.permute.xlu0 %1654 }
 0x211   : > { %v1962_v4 = vsel %vm1942_vm9, %v1929_v41, %v1655_v5  ;;  %v1733_v5 = vsel %vm292_vm0, %v6011_v32, %v6366_v48  ;;  %v4694_v32 = vpack.c.bf16 %v2790_v56, %v2789_v10  ;;  %v685_v56 = vld [vmem:[#allocation2 + $0x18a] sm:$0xff] }
 0x212   : > { %1414 = vrot.lane.b32.xlu1 %v6363_v3, %s5243_s22  ;;  %4559 = vmatmul.mubr.msk.f32.gmra.mrb[18].mxu0 %vm1984_vm10, %v1962_v4 }
 0x213   : > { %1412 = vrot.lane.b32.xlu0 %v6368_v40, %s5243_s22 }
 0x214   : > { %v6378_v21 = vpop.permute.xlu1 %890  ;;  %v889_v55 = vpop.permute.xlu0 %888 }
 0x215   : > { %v2588_v15 = vld [vmem:[#allocation3 + $0x48] sm:$0xff]  ;;  %v2589_v18 = vld [vmem:[#allocation3 + $0x50] sm:$0xff]  ;;  %v1765_v59 = vsel %vm1744_vm3, %v1732_v47, %v889_v55  ;;  %v1766_v55 = vsel %vm1744_vm3, %v1733_v5, %v6378_v21 }
 0x216   : > { %3230 = vmatprep.mubr.f32.mxu1 %v2588_v15  ;;  %1542 = vrot.lane.b32.xlu1 %v6376_v61, %s5244_s8  ;;  %v6478_v47 = vld [vmem:[#allocation2 + $0x181] sm:$0xff] }
 0x217   : > { %1540 = vrot.lane.b32.xlu0 %v6380_v6, %s5244_s8  ;;  %3231 = vmatmul.mubr.f32.gmra.mrb[8].mxu1 %v2556_v27 }
 0x218   : > { %3235 = vmatprep.mubr.f32.mxu1 %v2589_v18  ;;  %v6386_v11 = vpop.permute.xlu1 %1018  ;;  %v1017_v25 = vpop.permute.xlu0 %1016 }
 0x219   : > { %v1798_v58 = vsel %vm1777_vm4, %v1765_v59, %v1017_v25  ;;  %v1799_v48 = vsel %vm1777_vm4, %v1766_v55, %v6386_v11  ;;  %v2791_v11 = vld [vmem:[#allocation4 + $0x70] sm:$0xff]  ;;  %v2796_v59 = vld [vmem:[#allocation4 + $0x98] sm:$0xff] }
 0x21a   : > { %776 = vrot.lane.b32.xlu1 %v6306_v29, %s5239_s21  ;;  %v2783_v29 = vld [vmem:[#allocation4 + $0x30] sm:$0xff]  ;;  %v2800_v55 = vld [vmem:[#allocation4 + $0xb8] sm:$0xff] }
 0x21b   : > { %1668 = vrot.lane.b32.xlu0 %v6388_v12, %s5245_s9  ;;  %3236 = vmatmul.mubr.f32.gmra.mrb[10].mxu1 %v2557_v26  ;;  %v4685_v62 = vpack.c.bf16 %v2784_v23, %v2783_v29 }
 0x21c   : > { %v1147_v28 = vpop.permute.xlu1 %1146  ;;  %v1145_v50 = vpop.permute.xlu0 %1144 }
 0x21d   : > { %4686 = vmatpush1.bf16.msra.mxu0 %v4685_v62  ;;  %v1831_v20 = vsel %vm1810_vm5, %v1798_v58, %v1145_v50  ;;  %v1832_v21 = vsel %vm1810_vm5, %v1799_v48, %v1147_v28  ;;  %v4697_v28 = vpack.c.bf16 %v2792_v30, %v2791_v11  ;;  %v6465_v62 = vld [vmem:[#allocation2 + $0x180] sm:$0xff]  ;;  %v2803_v11 = vld [vmem:[#allocation4 + $0xd0] sm:$0xff]  ;;  %v2804_v30 = vld [vmem:[#allocation4 + $0xd8] sm:$0xff] }
 0x21e   : > { %778 = vrot.lane.b32.xlu1 %v6304_v9, %s5239_s21  ;;  %4687 = vmatprep.subr.bf16.mxu0 %v5246_v38  ;;  %v4688_v9 = vpack.c.bf16 %v2786_v39, %v2785_v36  ;;  %v2794_v36 = vld [vmem:[#allocation4 + $0x88] sm:$0xff] }
 0x21f   : > { %1670 = vrot.lane.b32.xlu0 %v6396_v13, %s5245_s9  ;;  %v6473_v39 = vld [vmem:[#allocation2 + $0x189] sm:$0xff] }
 0x220   : > { %v1275_v33 = vpop.permute.xlu1 %1274  ;;  %v1273_v35 = vpop.permute.xlu0 %1272 }
 0x221   : > { %4689 = vmatpush1.bf16.msra.mxu0 %v4688_v9  ;;  %v1864_v4 = vsel %vm1843_vm6, %v1831_v20, %v1273_v35  ;;  %v1865_v26 = vsel %vm1843_vm6, %v1832_v21, %v1275_v33  ;;  %v2793_v35 = vld [vmem:[#allocation4 + $0x80] sm:$0xff]  ;;  %v2798_v20 = vld [vmem:[#allocation4 + $0xa8] sm:$0xff] }
 0x222   : > { %906 = vrot.lane.b32.xlu1 %v6318_v60, %s5238_s20  ;;  %4690 = vmatprep.subr.bf16.mxu0 %v5246_v38  ;;  %v2787_v60 = vld [vmem:[#allocation4 + $0x50] sm:$0xff]  ;;  %v4700_v9 = vpack.c.bf16 %v2794_v36, %v2793_v35 }
 0x223   : > { %904 = vrot.lane.b32.xlu0 %v6312_v53, %s5238_s20  ;;  %v4691_v34 = vpack.c.bf16 %v2788_v51, %v2787_v60  ;;  %v2558_v60 = vld [vmem:[#allocation3 + $0x4a] sm:$0xff]  ;;  %v2795_v51 = vld [vmem:[#allocation4 + $0x90] sm:$0xff] }
 0x224   : > { %v1403_v42 = vpop.permute.xlu1 %1402  ;;  %v1401_v46 = vpop.permute.xlu0 %1400 }
 0x225   : > { %4692 = vmatpush1.bf16.msra.mxu0 %v4691_v34  ;;  %v1897_v15 = vsel %vm1876_vm7, %v1864_v4, %v1401_v46  ;;  %v1898_v37 = vsel %vm1876_vm7, %v1865_v26, %v1403_v42 }
 0x226   : > { %v4542_v43 = vpop.f32.mrb[6].mxu0  ;;  %1034 = vrot.lane.b32.xlu1 %v6363_v3, %s5240_s15  ;;  %4693 = vmatprep.subr.bf16.mxu0 %v5246_v38 }
 0x227   : > { %v2320_v53 = vmul.f32 %v4542_v43, %v6185_v17  ;;  %1032 = vrot.lane.b32.xlu0 %v6368_v40, %s5240_s15  ;;  %v2177_v63 = vpop.f32.mrb[7].mxu0 }
 0x228   : > { %v2319_v44 = vmul.f32 %v6185_v17, %v2177_v63  ;;  %v1531_v49 = vpop.permute.xlu1 %1530  ;;  %v1529_v2 = vpop.permute.xlu0 %1528  ;;  %v4703_v63 = vpack.c.bf16 %v2796_v59, %v2795_v51 }
 0x229   : > { %v6422_v41 = vadd.f32 %v6192_v24, %v2320_v53  ;;  %v1930_v45 = vsel %vm1909_vm8, %v1897_v15, %v1529_v2  ;;  %4695 = vmatpush1.bf16.msra.mxu0 %v4694_v32  ;;  %v1931_v50 = vsel %vm1909_vm8, %v1898_v37, %v1531_v49  ;;  %v2559_v49 = vld [vmem:[#allocation3 + $0x52] sm:$0xff] }
 0x22a   : > { %v6429_v31 = vadd.f32 %v6192_v24, %v2319_v44  ;;  %1162 = vrot.lane.b32.xlu1 %v6376_v61, %s5241_s16  ;;  %4696 = vmatprep.subr.bf16.mxu0 %v5246_v38  ;;  %v6492_v44 = vld [vmem:[#allocation2 + $0x182] sm:$0xff] }
 0x22b   : > { %v2391_v27 = vmax.f32 %v6422_v41, 0.0  ;;  %1160 = vrot.lane.b32.xlu0 %v6380_v6, %s5241_s16  ;;  %v2797_v2 = vld [vmem:[#allocation4 + $0xa0] sm:$0xff] }
 0x22c   : > { %v2390_v52 = vmax.f32 %v6429_v31, 0.0  ;;  %v6444_v18 = vpop.permute.xlu1 %764  ;;  %v1657_v19 = vpop.permute.xlu0 %1656  ;;  %v4706_v5 = vpack.c.bf16 %v2798_v20, %v2797_v2  ;;  %v2807_v20 = vld [vmem:[#allocation4 + $0xf0] sm:$0xff] }
 0x22d   : > { %2463 = vst [vmem:[#allocation3 + $0x69] sm:$0xff] %v2391_v27  ;;  %v1963_v25 = vsel %vm1942_vm9, %v1930_v45, %v1657_v19  ;;  %4698 = vmatpush1.bf16.msra.mxu0 %v4697_v28  ;;  %v2801_v45 = vld [vmem:[#allocation4 + $0xc0] sm:$0xff]  ;;  %v2802_v19 = vld [vmem:[#allocation4 + $0xc8] sm:$0xff]  ;;  %v4715_v28 = vpack.c.bf16 %v2804_v30, %v2803_v11 }
 0x22e   : > { %2462 = vst [vmem:[#allocation3 + $0x61] sm:$0xff] %v2390_v52  ;;  %1290 = vrot.lane.b32.xlu1 %v6396_v13, %s5242_s18  ;;  %4561 = vmatprep.mubr.msk.f32.mxu0 %vm1984_vm10, %v1963_v25  ;;  %v687_v11 = vld [vmem:[#allocation2 + $0x1a2] sm:$0xff] }
 0x22f   : > { %1288 = vrot.lane.b32.xlu0 %v6388_v12, %s5242_s18  ;;  %4699 = vmatprep.subr.bf16.mxu0 %v5246_v38 }
 0x230   : > { %v6463_v29 = vpop.permute.xlu1 %766  ;;  %v1659_v23 = vpop.permute.xlu0 %1658 }
 0x231   : > { %v1964_v33 = vsel %vm1942_vm9, %v1931_v50, %v1659_v23  ;;  %4701 = vmatpush1.bf16.msra.mxu0 %v4700_v9  ;;  %v2806_v9 = vld [vmem:[#allocation4 + $0xe8] sm:$0xff] }
 0x232   : > { %1418 = vrot.lane.b32.xlu1 %v6459_v16, %s5243_s22  ;;  %4562 = vmatmul.mubr.msk.f32.gmra.mrb[20].mxu0 %vm1984_vm10, %v1964_v33 }
 0x233   : > { %1416 = vrot.lane.b32.xlu0 %v6465_v62, %s5243_s22  ;;  %4702 = vmatprep.subr.bf16.mxu0 %v5246_v38 }
 0x234   : > { %v6476_v42 = vpop.permute.xlu1 %894  ;;  %v893_v46 = vpop.permute.xlu0 %892 }
 0x235   : > { %v6480_v43 = vld [vmem:[#allocation3 + $0x60] sm:$0xff]  ;;  %v6487_v53 = vld [vmem:[#allocation3 + $0x68] sm:$0xff]  ;;  %4704 = vmatpush1.bf16.msra.mxu0 %v4703_v63 }
 0x236   : > { %3240 = vmatprep.mubr.f32.mxu1 %v6480_v43  ;;  %1546 = vrot.lane.b32.xlu1 %v6473_v39, %s5244_s8 }
 0x237   : > { %1544 = vrot.lane.b32.xlu0 %v6478_v47, %s5244_s8  ;;  %3241 = vmatmul.mubr.f32.gmra.mrb[12].mxu1 %v2558_v60 }
 0x238   : > { %3245 = vmatprep.mubr.f32.mxu1 %v6487_v53  ;;  %v6490_v34 = vpop.permute.xlu1 %1022  ;;  %v1021_v58 = vpop.permute.xlu0 %1020  ;;  %4705 = vmatprep.subr.bf16.mxu0 %v5246_v38 }
 0x239   : > { %4707 = vmatpush1.bf16.msra.mxu0 %v4706_v5 }
 0x23a   : > { %780 = vrot.lane.b32.xlu1 %v6380_v6, %s5239_s21  ;;  %4708 = vmatprep.subr.bf16.mxu0 %v5246_v38  ;;  %v2799_v6 = vld [vmem:[#allocation4 + $0xb0] sm:$0xff] }
 0x23b   : > { %1672 = vrot.lane.b32.xlu0 %v6492_v44, %s5245_s9  ;;  %3246 = vmatmul.mubr.f32.gmra.mrb[14].mxu1 %v2559_v49  ;;  %v4709_v15 = vpack.c.bf16 %v2800_v55, %v2799_v6 }
 0x23c   : > { %v1151_v4 = vpop.permute.xlu1 %1150  ;;  %v1149_v10 = vpop.permute.xlu0 %1148 }
 0x23d   : > { %4710 = vmatpush1.bf16.msra.mxu0 %v4709_v15  ;;  %v622_v15 = vld [vmem:[#allocation2 + $0x198] sm:$0xff] }
 0x23e   : > { %782 = vrot.lane.b32.xlu1 %v6376_v61, %s5239_s21  ;;  %4711 = vmatprep.subr.bf16.mxu0 %v5246_v38  ;;  %v4712_v61 = vpack.c.bf16 %v2802_v19, %v2801_v45  ;;  %v654_v19 = vld [vmem:[#allocation2 + $0x199] sm:$0xff] }
 0x23f   : > { %1674 = vrot.lane.b32.xlu0 %v685_v56, %s5245_s9 }
 0x240   : > { %v1279_v32 = vpop.permute.xlu1 %1278  ;;  %v1277_v48 = vpop.permute.xlu0 %1276 }
 0x241   : > { %4713 = vmatpush1.bf16.msra.mxu0 %v4712_v61 }
 0x242   : > { %910 = vrot.lane.b32.xlu1 %v6396_v13, %s5238_s20  ;;  %4714 = vmatprep.subr.bf16.mxu0 %v5246_v38  ;;  %v1734_v13 = vsel %vm292_vm0, %v6081_v14, %v6444_v18 }
 0x243   : > { %908 = vrot.lane.b32.xlu0 %v6388_v12, %s5238_s20  ;;  %v1767_v50 = vsel %vm1744_vm3, %v1734_v13, %v893_v46  ;;  %v1735_v46 = vsel %vm292_vm0, %v6079_v1, %v6463_v29  ;;  %v686_v13 = vld [vmem:[#allocation2 + $0x19a] sm:$0xff] }
 0x244   : > { %v1407_v21 = vpop.permute.xlu1 %1406  ;;  %v1405_v25 = vpop.permute.xlu0 %1404  ;;  %v1800_v33 = vsel %vm1777_vm4, %v1767_v50, %v1021_v58  ;;  %v1768_v63 = vsel %vm1744_vm3, %v1735_v46, %v6476_v42 }
 0x245   : > { %4716 = vmatpush1.bf16.msra.mxu0 %v4715_v28  ;;  %v1833_v14 = vsel %vm1810_vm5, %v1800_v33, %v1149_v10  ;;  %v1801_v2 = vsel %vm1777_vm4, %v1768_v63, %v6490_v34  ;;  %v2808_v34 = vld [vmem:[#allocation4 + $0xf8] sm:$0xff]  ;;  %v623_v10 = vld [vmem:[#allocation2 + $0x1a0] sm:$0xff] }
 0x246   : > { %v4545_v26 = vpop.f32.mrb[8].mxu0  ;;  %1038 = vrot.lane.b32.xlu1 %v6459_v16, %s5240_s15  ;;  %4717 = vmatprep.subr.bf16.mxu0 %v5246_v38  ;;  %v1866_v60 = vsel %vm1843_vm6, %v1833_v14, %v1277_v48 }
 0x247   : > { %v2322_v37 = vmul.f32 %v4545_v26, %v6185_v17  ;;  %1036 = vrot.lane.b32.xlu0 %v6465_v62, %s5240_s15  ;;  %v2187_v12 = vpop.f32.mrb[9].mxu0  ;;  %v2805_v62 = vld [vmem:[#allocation4 + $0xe0] sm:$0xff] }
 0x248   : > { %v2321_v23 = vmul.f32 %v6185_v17, %v2187_v12  ;;  %v1535_v16 = vpop.permute.xlu1 %1534  ;;  %v4718_v59 = vpack.c.bf16 %v2806_v9, %v2805_v62  ;;  %v2561_v12 = vld [vmem:[#allocation3 + $0x6a] sm:$0xff] }
 0x249   : > { %v6522_v35 = vadd.f32 %v6192_v24, %v2322_v37  ;;  %v1533_v36 = vpop.permute.xlu0 %1532 }
 0x24a   : > { %v6526_v18 = vadd.f32 %v6192_v24, %v2321_v23  ;;  %1166 = vrot.lane.b32.xlu1 %v6473_v39, %s5241_s16  ;;  %v1899_v39 = vsel %vm1876_vm7, %v1866_v60, %v1405_v25  ;;  %4719 = vmatpush1.bf16.msra.mxu0 %v4718_v59  ;;  %v2560_v25 = vld [vmem:[#allocation3 + $0x62] sm:$0xff] }
 0x24b   : > { %v2393_v51 = vmax.f32 %v6522_v35, 0.0  ;;  %1164 = vrot.lane.b32.xlu0 %v6478_v47, %s5241_s16  ;;  %v1932_v1 = vsel %vm1909_vm8, %v1899_v39, %v1533_v36  ;;  %v1834_v47 = vsel %vm1810_vm5, %v1801_v2, %v1151_v4  ;;  %4720 = vmatprep.subr.bf16.mxu0 %v5246_v38  ;;  %v4721_v4 = vpack.c.bf16 %v2808_v34, %v2807_v20 }
 0x24c   : > { %v2392_v58 = vmax.f32 %v6526_v18, 0.0  ;;  %v769_v49 = vpop.permute.xlu1 %768  ;;  %v1867_v5 = vsel %vm1843_vm6, %v1834_v47, %v1279_v32  ;;  %v2890_v18 = vld [vmem:[#allocation4 + $0x388] sm:$0xff] }
 0x24d   : > { %2465 = vst [vmem:[#allocation3 + $0x81] sm:$0xff] %v2393_v51  ;;  %v1661_v29 = vpop.permute.xlu0 %1660  ;;  %v1900_v6 = vsel %vm1876_vm7, %v1867_v5, %v1407_v21  ;;  %v1736_v62 = vsel %vm292_vm0, %v6149_v22, %v769_v49 }
 0x24e   : > { %2464 = vst [vmem:[#allocation3 + $0x79] sm:$0xff] %v2392_v58  ;;  %v1965_v42 = vsel %vm1942_vm9, %v1932_v1, %v1661_v29  ;;  %1294 = vrot.lane.b32.xlu1 %v685_v56, %s5242_s18  ;;  %v1933_v48 = vsel %vm1909_vm8, %v1900_v6, %v1535_v16  ;;  %4722 = vmatpush1.bf16.msra.mxu0 %v4721_v4 }
 0x24f   : > { %1292 = vrot.lane.b32.xlu0 %v6492_v44, %s5242_s18  ;;  %4564 = vmatprep.mubr.msk.f32.mxu0 %vm1984_vm10, %v1965_v42  ;;  %v655_v44 = vld [vmem:[#allocation2 + $0x1a1] sm:$0xff]  ;;  %s7556_s18 = scalar_lea.hbm %s7612_s7, %s4423_s23 }
 0x250   : > { %v771_v55 = vpop.permute.xlu1 %770  ;;  %4819 = vmatprep.subr.bf16.mxu0 %v5246_v38 }
 0x251   : > { %v1663_v56 = vpop.permute.xlu0 %1662  ;;  %v1737_v22 = vsel %vm292_vm0, %v6147_v8, %v771_v55 }
 0x252   : > { %v1966_v45 = vsel %vm1942_vm9, %v1933_v48, %v1663_v56  ;;  %1422 = vrot.lane.b32.xlu1 %v623_v10, %s5243_s22 }
 0x253   : > { %1420 = vrot.lane.b32.xlu0 %v622_v15, %s5243_s22  ;;  %4565 = vmatmul.mubr.msk.f32.gmra.mrb[22].mxu0 %vm1984_vm10, %v1966_v45 }
 0x254   : > { %v899_v32 = vpop.permute.xlu1 %898 }
 0x255   : > { %v897_v61 = vpop.permute.xlu0 %896  ;;  %v6564_v21 = vld [vmem:[#allocation3 + $0x78] sm:$0xff]  ;;  %v6569_v26 = vld [vmem:[#allocation3 + $0x80] sm:$0xff]  ;;  %v1770_v20 = vsel %vm1744_vm3, %v1737_v22, %v899_v32 }
 0x256   : > { %3250 = vmatprep.mubr.f32.mxu1 %v6564_v21  ;;  %1550 = vrot.lane.b32.xlu1 %v655_v44, %s5244_s8  ;;  %v1769_v60 = vsel %vm1744_vm3, %v1736_v62, %v897_v61 }
 0x257   : > { %1548 = vrot.lane.b32.xlu0 %v654_v19, %s5244_s8  ;;  %3251 = vmatmul.mubr.f32.gmra.mrb[16].mxu1 %v2560_v25  ;;  %s284_s8 = sand.u32 1, %s5224_s25  }
 0x258   : > { %3255 = vmatprep.mubr.f32.mxu1 %v6569_v26  ;;  %v1027_v30 = vpop.permute.xlu1 %1026  ;;  %s7326_s17 = sshll.u32 %s284_s8, 8 }
 0x259   : > { %v1025_v37 = vpop.permute.xlu0 %1024  ;;  %v1803_v4 = vsel %vm1777_vm4, %v1770_v20, %v1027_v30  ;;  %v2562_v30 = vld [vmem:[#allocation3 + $0x7a] sm:$0xff]  ;;  %s7353_s13 = scalar_lea.vmem [#allocation7], %s7326_s17 }
 0x25a   : > { %1678 = vrot.lane.b32.xlu1 %v687_v11, %s5245_s9  ;;  %v1802_v39 = vsel %vm1777_vm4, %v1769_v60, %v1025_v37  ;;  %s4298_s20 = sshll.u32 %s7353_s13, 4  ;;  %s7558_s20 = int_to_ptr.vmem [resolvable:$true] %s4298_s20 }
 0x25b   : > { %1676 = vrot.lane.b32.xlu0 %v686_v13, %s5245_s9  ;;  %3256 = vmatmul.mubr.f32.gmra.mrb[18].mxu1 %v2561_v12  ;;  %s5166_s22 = scalar_lea.vmem %s7558_s20, 4096  ;;  %s5172_s9 = scalar_lea.vmem %s5171_s29, 8192 }
 0x25c   : > { %v1155_v28 = vpop.permute.xlu1 %1154  ;;  %p5167_p6 = scmp.ne.s32.totalorder %s7558_s20, %s5166_s22  ;;  %p5173_p2 = scmp.lt.s32.totalorder %s7558_s20, %s5171_s29 }
 0x25d   : > { %v1153_v50 = vpop.permute.xlu0 %1152  ;;  %v1836_v8 = vsel %vm1810_vm5, %v1803_v4, %v1155_v28  ;;  %v2563_v28 = vld [vmem:[#allocation3 + $0x82] sm:$0xff]  ;;  %p5174_p3 = scmp.lt.s32.totalorder %s5172_s9, %s5166_s22 }
 0x25e   : > { %v1835_v29 = vsel %vm1810_vm5, %v1802_v39, %v1153_v50  ;;  %p5168_p10 = pnand %p5167_p6, %p7635_p9 }
 0x25f   : > { %p5175_p4 = por %p5174_p3, %p5173_p2 }
 0x260   : > { %v1283_v23 = vpop.permute.xlu1 %1282  ;;  %p5169_p12 = pneg %p5168_p10 }
 0x261   : > { %v1281_v16 = vpop.permute.xlu0 %1280  ;;  %v1869_v48 = vsel %vm1843_vm6, %v1836_v8, %v1283_v23 }
 0x262   : > { %v1868_v49 = vsel %vm1843_vm6, %v1835_v29, %v1281_v16  ;;  %p5176_p7 = pnand %p5175_p4, %p5169_p12 }
 0x264   : > { %v1411_v33 = vpop.permute.xlu1 %1410 }
 0x265   : > { %v1409_v36 = vpop.permute.xlu0 %1408  ;;  %v1902_v56 = vsel %vm1876_vm7, %v1869_v48, %v1411_v33 }
 0x266   : > { %v4548_v14 = vpop.f32.mrb[10].mxu0  ;;  %v1901_v34 = vsel %vm1876_vm7, %v1868_v49, %v1409_v36 }
 0x267   : > { %v2324_v9 = vmul.f32 %v4548_v14, %v6185_v17  ;;  %v2197_v46 = vpop.f32.mrb[11].mxu0 }
 0x268   : > { %v2323_v59 = vmul.f32 %v6185_v17, %v2197_v46  ;;  %v1539_v63 = vpop.permute.xlu1 %1538 }
 0x269   : > { %v6581_v2 = vadd.f32 %v6192_v24, %v2324_v9  ;;  %v1537_v1 = vpop.permute.xlu0 %1536  ;;  %v1935_v44 = vsel %vm1909_vm8, %v1902_v56, %v1539_v63 }
 0x26a   : > { %v6585_v47 = vadd.f32 %v6192_v24, %v2323_v59  ;;  %v1934_v6 = vsel %vm1909_vm8, %v1901_v34, %v1537_v1 }
 0x26b   : > { %v2395_v42 = vmax.f32 %v6581_v2, 0.0 }
 0x26c   : > { %v2394_v5 = vmax.f32 %v6585_v47, 0.0  ;;  %v773_v10 = vpop.permute.xlu1 %772  ;;  %v2893_v47 = vld [vmem:[#allocation4 + $0x3a0] sm:$0xff] }
 0x26d   : > { %2467 = vst [vmem:[#allocation3 + $0x99] sm:$0xff] %v2395_v42  ;;  %v1665_v15 = vpop.permute.xlu0 %1664  ;;  %v1738_v9 = vsel %vm292_vm0, %v6227_v7, %v773_v10 }
 0x26e   : > { %2466 = vst [vmem:[#allocation3 + $0x91] sm:$0xff] %v2394_v5  ;;  %v1967_v55 = vsel %vm1942_vm9, %v1934_v6, %v1665_v15 }
 0x26f   : > { %4567 = vmatprep.mubr.msk.f32.mxu0 %vm1984_vm10, %v1967_v55 }
 0x270   : > { %v775_v45 = vpop.permute.xlu1 %774 }
 0x271   : > { %v1667_v32 = vpop.permute.xlu0 %1666  ;;  %v1739_v7 = vsel %vm292_vm0, %v6225_v54, %v775_v45 }
 0x272   : > { %v1968_v19 = vsel %vm1942_vm9, %v1935_v44, %v1667_v32 }
 0x273   : > { %4568 = vmatmul.mubr.msk.f32.gmra.mrb[24].mxu0 %vm1984_vm10, %v1968_v19 }
 0x274   : > { %v903_v61 = vpop.permute.xlu1 %902 }
 0x275   : > { %v901_v25 = vpop.permute.xlu0 %900  ;;  %v6608_v11 = vld [vmem:[#allocation3 + $0x90] sm:$0xff]  ;;  %v6611_v13 = vld [vmem:[#allocation3 + $0x98] sm:$0xff] }
 0x276   : > { %3260 = vmatprep.mubr.f32.mxu1 %v6608_v11  ;;  %v1771_v59 = vsel %vm1744_vm3, %v1738_v9, %v901_v25 }
 0x277   : > { %3261 = vmatmul.mubr.f32.gmra.mrb[20].mxu1 %v2562_v30 }
 0x278   : > { %3265 = vmatprep.mubr.f32.mxu1 %v6611_v13  ;;  %v1031_v37 = vpop.permute.xlu1 %1030 }
 0x279   : > { %v1029_v12 = vpop.permute.xlu0 %1028 }
 0x27a   : > { %v1804_v1 = vsel %vm1777_vm4, %v1771_v59, %v1029_v12  ;;  %v2564_v12 = vld [vmem:[#allocation3 + $0x92] sm:$0xff] }
 0x27b   : > { %3266 = vmatmul.mubr.f32.gmra.mrb[22].mxu1 %v2563_v28 }
 0x27c   : > { %v1159_v50 = vpop.permute.xlu1 %1158 }
 0x27d   : > { %v1157_v23 = vpop.permute.xlu0 %1156 }
 0x27e   : > { %v1837_v49 = vsel %vm1810_vm5, %v1804_v1, %v1157_v23 }
 0x280   : > { %v1287_v16 = vpop.permute.xlu1 %1286 }
 0x281   : > { %v1285_v33 = vpop.permute.xlu0 %1284 }
 0x282   : > { %v1870_v34 = vsel %vm1843_vm6, %v1837_v49, %v1285_v33 }
 0x284   : > { %v1415_v36 = vpop.permute.xlu1 %1414 }
 0x285   : > { %v1413_v14 = vpop.permute.xlu0 %1412 }
 0x286   : > { %v4551_v62 = vpop.f32.mrb[12].mxu0  ;;  %v1903_v4 = vsel %vm1876_vm7, %v1870_v34, %v1413_v14 }
 0x287   : > { %v2326_v46 = vmul.f32 %v4551_v62, %v6185_v17  ;;  %v2207_v60 = vpop.f32.mrb[13].mxu0 }
 0x288   : > { %v2325_v63 = vmul.f32 %v6185_v17, %v2207_v60  ;;  %v1543_v39 = vpop.permute.xlu1 %1542  ;;  %v1772_v17 = vsel %vm1744_vm3, %v1739_v7, %v903_v61 }
 0x289   : > { %v6621_v29 = vadd.f32 %v6192_v24, %v2326_v46  ;;  %v1541_v22 = vpop.permute.xlu0 %1540  ;;  %v1805_v8 = vsel %vm1777_vm4, %v1772_v17, %v1031_v37  ;;  %v6668_v17 = vld [vmem:[%s7608_s3] ss:$0 sm:$0xff] }
 0x28a   : > { %v6625_v20 = vadd.f32 %v6192_v24, %v2325_v63  ;;  %v1936_v24 = vsel %vm1909_vm8, %v1903_v4, %v1541_v22  ;;  %v1838_v54 = vsel %vm1810_vm5, %v1805_v8, %v1159_v50  ;;  %v6659_v63 = vld [vmem:[%s7607_s2] ss:$0 sm:$0xff] }
 0x28b   : > { %v2397_v10 = vmax.f32 %v6621_v29, 0.0  ;;  %v1871_v56 = vsel %vm1843_vm6, %v1838_v54, %v1287_v16  ;;  %v2565_v16 = vld [vmem:[#allocation3 + $0x9a] sm:$0xff] }
 0x28c   : > { %v2396_v6 = vmax.f32 %v6625_v20, 0.0  ;;  %v777_v15 = vpop.permute.xlu1 %776  ;;  %v1904_v45 = vsel %vm1876_vm7, %v1871_v56, %v1415_v36  ;;  %v2862_v20 = vld [vmem:[#allocation4 + $0x2a8] sm:$0xff] }
 0x28d   : > { %2469 = vst [vmem:[#allocation3 + $0xb1] sm:$0xff] %v2397_v10  ;;  %v1669_v55 = vpop.permute.xlu0 %1668  ;;  %v1937_v32 = vsel %vm1909_vm8, %v1904_v45, %v1543_v39  ;;  %v1740_v59 = vsel %vm292_vm0, %v6296_v57, %v777_v15 }
 0x28e   : > { %2468 = vst [vmem:[#allocation3 + $0xa9] sm:$0xff] %v2396_v6  ;;  %v1969_v48 = vsel %vm1942_vm9, %v1936_v24, %v1669_v55 }
 0x28f   : > { %4570 = vmatprep.mubr.msk.f32.mxu0 %vm1984_vm10, %v1969_v48 }
 0x290   : > { %v779_v44 = vpop.permute.xlu1 %778 }
 0x291   : > { %v1671_v19 = vpop.permute.xlu0 %1670  ;;  %v1741_v24 = vsel %vm292_vm0, %v6293_v0, %v779_v44 }
 0x292   : > { %v1970_v61 = vsel %vm1942_vm9, %v1937_v32, %v1671_v19 }
 0x293   : > { %4571 = vmatmul.mubr.msk.f32.gmra.mrb[26].mxu0 %vm1984_vm10, %v1970_v61 }
 0x294   : > { %v907_v25 = vpop.permute.xlu1 %906 }
 0x295   : > { %v905_v30 = vpop.permute.xlu0 %904  ;;  %v6648_v37 = vld [vmem:[#allocation3 + $0xa8] sm:$0xff]  ;;  %v6651_v28 = vld [vmem:[#allocation3 + $0xb0] sm:$0xff]  ;;  %v1774_v48 = vsel %vm1744_vm3, %v1741_v24, %v907_v25 }
 0x296   : > { %3270 = vmatprep.mubr.f32.mxu1 %v6648_v37  ;;  %v1773_v22 = vsel %vm1744_vm3, %v1740_v59, %v905_v30 }
 0x297   : > { %3271 = vmatmul.mubr.f32.gmra.mrb[24].mxu1 %v2564_v12 }
 0x298   : > { %3275 = vmatprep.mubr.f32.mxu1 %v6651_v28  ;;  %v1035_v50 = vpop.permute.xlu1 %1034 }
 0x299   : > { %v1033_v23 = vpop.permute.xlu0 %1032  ;;  %v1807_v19 = vsel %vm1777_vm4, %v1774_v48, %v1035_v50 }
 0x29a   : > { %v1806_v34 = vsel %vm1777_vm4, %v1773_v22, %v1033_v23  ;;  %v2842_v22 = vld [vmem:[#allocation4 + $0x208] sm:$0xff] }
 0x29b   : > { %3276 = vmatmul.mubr.f32.gmra.mrb[26].mxu1 %v2565_v16 }
 0x29c   : > { %v1163_v33 = vpop.permute.xlu1 %1162 }
 0x29d   : > { %v1161_v36 = vpop.permute.xlu0 %1160  ;;  %v1840_v0 = vsel %vm1810_vm5, %v1807_v19, %v1163_v33 }
 0x29e   : > { %v1839_v15 = vsel %vm1810_vm5, %v1806_v34, %v1161_v36 }
 0x2a0   : > { %v1291_v14 = vpop.permute.xlu1 %1290 }
 0x2a1   : > { %v1289_v62 = vpop.permute.xlu0 %1288  ;;  %v1873_v25 = vsel %vm1843_vm6, %v1840_v0, %v1291_v14 }
 0x2a2   : > { %v1872_v55 = vsel %vm1843_vm6, %v1839_v15, %v1289_v62 }
 0x2a4   : > { %v1419_v9 = vpop.permute.xlu1 %1418 }
 0x2a5   : > { %v1417_v46 = vpop.permute.xlu0 %1416  ;;  %v1906_v12 = vsel %vm1876_vm7, %v1873_v25, %v1419_v9 }
 0x2a6   : > { %v4554_v60 = vpop.f32.mrb[14].mxu0  ;;  %v1905_v56 = vsel %vm1876_vm7, %v1872_v55, %v1417_v46 }
 0x2a7   : > { %v2328_v39 = vmul.f32 %v6659_v63, %v4554_v60  ;;  %v2217_v1 = vpop.f32.mrb[15].mxu0  ;;  %v2566_v60 = vld [vmem:[#allocation3 + $0xaa] sm:$0xff] }
 0x2a8   : > { %v2327_v49 = vmul.f32 %v6659_v63, %v2217_v1  ;;  %v1547_v7 = vpop.permute.xlu1 %1546  ;;  %v2841_v1 = vld [vmem:[#allocation4 + $0x200] sm:$0xff] }
 0x2a9   : > { %v6671_v57 = vadd.f32 %v6668_v17, %v2328_v39  ;;  %v1545_v4 = vpop.permute.xlu0 %1544  ;;  %v1939_v23 = vsel %vm1909_vm8, %v1906_v12, %v1547_v7  ;;  %v2567_v39 = vld [vmem:[#allocation3 + $0xb2] sm:$0xff]  ;;  %v4772_v34 = vpack.c.bf16 %v2842_v22, %v2841_v1 }
 0x2aa   : > { %v6675_v8 = vadd.f32 %v6668_v17, %v2327_v49  ;;  %v1938_v61 = vsel %vm1909_vm8, %v1905_v56, %v1545_v4  ;;  %v2843_v49 = vld [vmem:[#allocation4 + $0x210] sm:$0xff]  ;;  %v2844_v4 = vld [vmem:[#allocation4 + $0x218] sm:$0xff] }
 0x2ab   : > { %v2399_v54 = vmax.f32 %v6671_v57, 0.0  ;;  %4773 = vmatpush1.bf16.msra.mxu1 %v4772_v34  ;;  %v4775_v24 = vpack.c.bf16 %v2844_v4, %v2843_v49 }
 0x2ac   : > { %v2398_v45 = vmax.f32 %v6675_v8, 0.0  ;;  %v781_v32 = vpop.permute.xlu1 %780  ;;  %4774 = vmatprep.subr.bf16.mxu1 %v5246_v38 }
 0x2ad   : > { %2471 = vst [vmem:[#allocation3 + $0xc9] sm:$0xff] %v2399_v54  ;;  %v1673_v30 = vpop.permute.xlu0 %1672  ;;  %v1742_v25 = vsel %vm292_vm0, %v6368_v40, %v781_v32 }
 0x2ae   : > { %2470 = vst [vmem:[#allocation3 + $0xc1] sm:$0xff] %v2398_v45  ;;  %v1971_v44 = vsel %vm1942_vm9, %v1938_v61, %v1673_v30 }
 0x2af   : > { %4573 = vmatprep.mubr.msk.f32.mxu0 %vm1984_vm10, %v1971_v44  ;;  %4776 = vmatpush1.bf16.msra.mxu1 %v4775_v24 }
 0x2b0   : > { %v783_v50 = vpop.permute.xlu1 %782  ;;  %4777 = vmatprep.subr.bf16.mxu1 %v5246_v38 }
 0x2b1   : > { %v1675_v16 = vpop.permute.xlu0 %1674  ;;  %v1743_v30 = vsel %vm292_vm0, %v6363_v3, %v783_v50 }
 0x2b2   : > { %v1972_v36 = vsel %vm1942_vm9, %v1939_v23, %v1675_v16 }
 0x2b3   : > { %4574 = vmatmul.mubr.msk.f32.gmra.mrb[28].mxu0 %vm1984_vm10, %v1972_v36 }
 0x2b4   : > { %v911_v33 = vpop.permute.xlu1 %910 }
 0x2b5   : > { %v909_v62 = vpop.permute.xlu0 %908  ;;  %v6698_v46 = vld [vmem:[#allocation3 + $0xc0] sm:$0xff]  ;;  %v6701_v14 = vld [vmem:[#allocation3 + $0xc8] sm:$0xff]  ;;  %v1776_v12 = vsel %vm1744_vm3, %v1743_v30, %v911_v33  ;;  %v2873_v30 = vld [vmem:[#allocation4 + $0x300] sm:$0xff] }
 0x2b6   : > { %3280 = vmatprep.mubr.f32.mxu1 %v6698_v46  ;;  %v1775_v16 = vsel %vm1744_vm3, %v1742_v25, %v909_v62  ;;  %v2848_v25 = vld [vmem:[#allocation4 + $0x238] sm:$0xff] }
 0x2b7   : > { %3281 = vmatmul.mubr.f32.gmra.mrb[28].mxu1 %v2566_v60 }
 0x2b8   : > { %3285 = vmatprep.mubr.f32.mxu1 %v6701_v14  ;;  %v1039_v9 = vpop.permute.xlu1 %1038 }
 0x2b9   : > { %v1037_v59 = vpop.permute.xlu0 %1036  ;;  %v1809_v36 = vsel %vm1777_vm4, %v1776_v12, %v1039_v9  ;;  %v2521_v12 = vld [vmem:[#allocation3 + $0x9] sm:$0xff] }
 0x2ba   : > { %v1808_v3 = vsel %vm1777_vm4, %v1775_v16, %v1037_v59 }
 0x2bb   : > { %3286 = vmatmul.mubr.f32.gmra.mrb[30].mxu1 %v2567_v39 }
 0x2bc   : > { %v1167_v7 = vpop.permute.xlu1 %1166 }
 0x2bd   : > { %v1165_v15 = vpop.permute.xlu0 %1164  ;;  %v1842_v50 = vsel %vm1810_vm5, %v1809_v36, %v1167_v7  ;;  %v5135_v36 = vld [vmem:[#allocation3] sm:$0xff] }
 0x2be   : > { %v1841_v32 = vsel %vm1810_vm5, %v1808_v3, %v1165_v15  ;;  %v2568_v3 = vld [vmem:[#allocation3 + $0xc2] sm:$0xff] }
 0x2c0   : > { %v1295_v55 = vpop.permute.xlu1 %1294 }
 0x2c1   : > { %v1293_v48 = vpop.permute.xlu0 %1292  ;;  %v1875_v33 = vsel %vm1843_vm6, %v1842_v50, %v1295_v55 }
 0x2c2   : > { %v1874_v9 = vsel %vm1843_vm6, %v1841_v32, %v1293_v48  ;;  %v2520_v48 = vld [vmem:[#allocation3 + $0x1] sm:$0xff]  ;;  %v2569_v32 = vld [vmem:[#allocation3 + $0xca] sm:$0xff] }
 0x2c4   : > { %v1423_v56 = vpop.permute.xlu1 %1422 }
 0x2c5   : > { %v1421_v19 = vpop.permute.xlu0 %1420  ;;  %v4557_v61 = vpop.f32.mrb[16].mxu0  ;;  %v1908_v22 = vsel %vm1876_vm7, %v1875_v33, %v1423_v56  ;;  %v2845_v56 = vld [vmem:[#allocation4 + $0x220] sm:$0xff]  ;;  %v2490_v33 = vld [vmem:[#allocation3 + $0x18] sm:$0xff] }
 0x2c6   : > { %v2330_v0 = vmul.f32 %v6659_v63, %v4557_v61  ;;  %v2227_v44 = vpop.f32.mrb[17].mxu0  ;;  %v1907_v59 = vsel %vm1876_vm7, %v1874_v9, %v1421_v19  ;;  %v2846_v61 = vld [vmem:[#allocation4 + $0x228] sm:$0xff]  ;;  %v6755_v9 = vld [vmem:[#allocation3 + $0x21] sm:$0xff] }
 0x2c7   : > { %v2329_v23 = vmul.f32 %v6659_v63, %v2227_v44  ;;  %v4778_v19 = vpack.c.bf16 %v2846_v61, %v2845_v56  ;;  %v2847_v44 = vld [vmem:[#allocation4 + $0x230] sm:$0xff]  ;;  %v2878_v56 = vld [vmem:[#allocation4 + $0x328] sm:$0xff] }
 0x2c8   : > { %v6716_v60 = vadd.f32 %v6668_v17, %v2330_v0  ;;  %v1551_v39 = vpop.permute.xlu1 %1550  ;;  %v2874_v0 = vld [vmem:[#allocation4 + $0x308] sm:$0xff]  ;;  %v4781_v16 = vpack.c.bf16 %v2848_v25, %v2847_v44  ;;  %v6768_v44 = vld [vmem:[#allocation3 + $0x30] sm:$0xff] }
 0x2c9   : > { %v6721_v1 = vadd.f32 %v6668_v17, %v2329_v23  ;;  %v1549_v40 = vpop.permute.xlu0 %1548  ;;  %v1941_v7 = vsel %vm1909_vm8, %v1908_v22, %v1551_v39  ;;  %4779 = vmatpush1.bf16.msra.mxu1 %v4778_v19  ;;  %v6741_v23 = vpack.c.bf16 %v2874_v0, %v2873_v30  ;;  %v2849_v22 = vld [vmem:[#allocation4 + $0x240] sm:$0xff]  ;;  %v2491_v19 = vld [vmem:[#allocation3 + $0x20] sm:$0xff] }
 0x2ca   : > { %v7617_v62 = vmax.f32 %v6716_v60, 0.0  ;;  %v1940_v4 = vsel %vm1909_vm8, %v1907_v59, %v1549_v40  ;;  %4780 = vmatprep.subr.bf16.mxu1 %v5246_v38  ;;  %v6750_v40 = vld [vmem:[#allocation3 + $0x19] sm:$0xff]  ;;  %v6764_v0 = vld [vmem:[#allocation3 + $0x31] sm:$0xff] }
 0x2cb   : > { %v7618_v49 = vmax.f32 %v6721_v1, 0.0  ;;  %v2850_v59 = vld [vmem:[#allocation4 + $0x248] sm:$0xff]  ;;  %v7627_v57 = vmax.f32 %v6721_v1, 0.0  ;;  %v7628_v1 = vmax.f32 %v6716_v60, 0.0 }
 0x2cc   : > { %2473 = vst [vmem:[#allocation3 + $0xe1] sm:$0xff] %v7617_v62  ;;  %v1679_v34 = vpop.permute.xlu1 %1678  ;;  %v6773_v25 = vld [vmem:[#allocation3 + $0x39] sm:$0xff] }
 0x2cd   : > { %2472 = vst [vmem:[#allocation3 + $0xd9] sm:$0xff] %v7618_v49  ;;  %v1974_v15 = vsel %vm1942_vm9, %v1941_v7, %v1679_v34  ;;  %v1677_v24 = vpop.permute.xlu0 %1676  ;;  %4782 = vmatpush1.bf16.msra.mxu1 %v4781_v16  ;;  %v2875_v7 = vld [vmem:[#allocation4 + $0x310] sm:$0xff]  ;;  %v4784_v34 = vpack.c.bf16 %v2850_v59, %v2849_v22  ;;  %v6785_v22 = vld [vmem:[#allocation3 + $0x49] sm:$0xff] }
 0x2ce   : > { %v1973_v55 = vsel %vm1942_vm9, %v1940_v4, %v1677_v24  ;;  %4783 = vmatprep.subr.bf16.mxu1 %v5246_v38  ;;  %v2876_v4 = vld [vmem:[#allocation4 + $0x318] sm:$0xff]  ;;  %v2883_v62 = vld [vmem:[#allocation4 + $0x350] sm:$0xff] }
 0x2cf   : > { %4576 = vmatprep.mubr.msk.f32.mxu0 %vm1984_vm10, %v1973_v55  ;;  %v2852_v24 = vld [vmem:[#allocation4 + $0x258] sm:$0xff]  ;;  %v6758_v55 = vpack.c.bf16 %v2876_v4, %v2875_v7 }
 0x2d0   : > { %4577 = vmatmul.mubr.msk.f32.gmra.mrb[30].mxu0 %vm1984_vm10, %v1974_v15  ;;  %v2851_v15 = vld [vmem:[#allocation4 + $0x250] sm:$0xff]  ;;  %v2880_v4 = vld [vmem:[#allocation4 + $0x338] sm:$0xff] }
 0x2d1   : > { %2985 = vmatprep.mubr.f32.mxu0 %v2520_v48  ;;  %v2877_v48 = vld [vmem:[#allocation4 + $0x320] sm:$0xff]  ;;  %4785 = vmatpush1.bf16.msra.mxu1 %v4784_v34  ;;  %v4787_v61 = vpack.c.bf16 %v2852_v24, %v2851_v15  ;;  %v2879_v34 = vld [vmem:[#allocation4 + $0x330] sm:$0xff]  ;;  %v6793_v24 = vld [vmem:[#allocation3 + $0x48] sm:$0xff] }
 0x2d2   : > { %4786 = vmatprep.subr.bf16.mxu1 %v5246_v38  ;;  %v6762_v30 = vpack.c.bf16 %v2878_v56, %v2877_v48  ;;  %v6795_v48 = vpack.c.bf16 %v2880_v4, %v2879_v34  ;;  %v6800_v56 = vld [vmem:[#allocation3 + $0x51] sm:$0xff]  ;;  %v2884_v49 = vld [vmem:[#allocation4 + $0x358] sm:$0xff] }
 0x2d3   : > { %v5136_v34 = vld [vmem:[#allocation3 + $0x50] sm:$0xff]  ;;  %v2571_v41 = vld [vmem:[#allocation3 + $0xe2] sm:$0xff] }
 0x2d4   : > { %2986 = vmatmul.mubr.f32.vlgmr.msra.gmra.mrb[32].mxu0 %v5135_v36  ;;  %v6743_v39 = vld [vmem:[#allocation3 + $0xd8] sm:$0xff]  ;;  %v6746_v50 = vld [vmem:[#allocation3 + $0xe0] sm:$0xff] }
 0x2d5   : > { %3290 = vmatprep.mubr.f32.mxu1 %v6743_v39  ;;  %2990 = vmatprep.mubr.f32.mxu0 %v2521_v12  ;;  %v2570_v31 = vld [vmem:[#allocation3 + $0xda] sm:$0xff] }
 0x2d6   : > { %3291 = vmatmul.mubr.f32.gmra.mrb[32].mxu1 %v2568_v3  ;;  %4821 = vmatpush1.bf16.msra.mxu0 %v6741_v23 }
 0x2d7   : > { %3295 = vmatprep.mubr.f32.mxu1 %v6746_v50  ;;  %4822 = vmatprep.subr.bf16.mxu0 %v5246_v38 }
 0x2d8   : > { %2991 = vmatmul.mubr.f32.gmra.mrb[34].mxu0 %v5135_v36  ;;  %4788 = vmatpush1.bf16.msra.mxu1 %v4787_v61  ;;  %v2853_v61 = vld [vmem:[#allocation4 + $0x260] sm:$0xff] }
 0x2d9   : > { %2995 = vmatprep.mubr.f32.mxu0 %v6750_v40  ;;  %4789 = vmatprep.subr.bf16.mxu1 %v5246_v38 }
 0x2da   : > { %3296 = vmatmul.mubr.f32.gmra.mrb[34].mxu1 %v2569_v32  ;;  %4824 = vmatpush1.bf16.msra.mxu0 %v6758_v55  ;;  %v6779_v32 = vld [vmem:[#allocation3 + $0x38] sm:$0xff] }
 0x2db   : > { %4825 = vmatprep.subr.bf16.mxu0 %v5246_v38 }
 0x2dc   : > { %2996 = vmatmul.mubr.f32.gmra.mrb[36].mxu0 %v2490_v33 }
 0x2dd   : > { %3000 = vmatprep.mubr.f32.mxu0 %v6755_v9 }
 0x2de   : > { %4827 = vmatpush1.bf16.msra.mxu0 %v6762_v30 }
 0x2df   : > { %4828 = vmatprep.subr.bf16.mxu0 %v5246_v38 }
 0x2e0   : > { %3001 = vmatmul.mubr.f32.gmra.mrb[38].mxu0 %v2491_v19  ;;  %v2854_v19 = vld [vmem:[#allocation4 + $0x268] sm:$0xff] }
 0x2e1   : > { %3005 = vmatprep.mubr.f32.mxu0 %v6764_v0 }
 0x2e2   : > { %4830 = vmatpush1.bf16.msra.mxu0 %v6795_v48 }
 0x2e3   : > { %4831 = vmatprep.subr.bf16.mxu0 %v5246_v38 }
 0x2e4   : > { %3006 = vmatmul.mubr.f32.gmra.mrb[40].mxu0 %v6768_v44 }
 0x2e5   : > { %3010 = vmatprep.mubr.f32.mxu0 %v6773_v25  ;;  %v4560_v12 = vpop.f32.mrb[18].mxu0 }
 0x2e6   : > { %v2332_v16 = vmul.f32 %v6659_v63, %v4560_v12  ;;  %v2237_v36 = vpop.f32.mrb[19].mxu0  ;;  %v2881_v12 = vld [vmem:[#allocation4 + $0x340] sm:$0xff] }
 0x2e7   : > { %v2331_v3 = vmul.f32 %v6659_v63, %v2237_v36  ;;  %v2882_v36 = vld [vmem:[#allocation4 + $0x348] sm:$0xff] }
 0x2e8   : > { %v6782_v33 = vadd.f32 %v6668_v17, %v2332_v16  ;;  %3011 = vmatmul.mubr.f32.gmra.mrb[42].mxu0 %v6779_v32  ;;  %v4790_v16 = vpack.c.bf16 %v2854_v19, %v2853_v61  ;;  %v6807_v4 = vpack.c.bf16 %v2882_v36, %v2881_v12  ;;  %v2857_v12 = vld [vmem:[#allocation4 + $0x280] sm:$0xff] }
 0x2e9   : > { %v6788_v59 = vadd.f32 %v6668_v17, %v2331_v3  ;;  %3015 = vmatprep.mubr.f32.mxu0 %v6785_v22  ;;  %v2855_v3 = vld [vmem:[#allocation4 + $0x270] sm:$0xff] }
 0x2ea   : > { %v7616_v7 = vmax.f32 %v6782_v33, 0.0  ;;  %4791 = vmatpush1.bf16.msra.mxu1 %v4790_v16  ;;  %4833 = vmatpush1.bf16.msra.mxu0 %v6807_v4  ;;  %v2858_v16 = vld [vmem:[#allocation4 + $0x288] sm:$0xff] }
 0x2eb   : > { %v7619_v15 = vmax.f32 %v6788_v59, 0.0  ;;  %4792 = vmatprep.subr.bf16.mxu1 %v5246_v38  ;;  %4834 = vmatprep.subr.bf16.mxu0 %v5246_v38 }
 0x2ec   : > { %2475 = vst [vmem:[#allocation3 + $0xf9] sm:$0xff] %v7616_v7  ;;  %3016 = vmatmul.mubr.f32.gmra.mrb[44].mxu0 %v6793_v24  ;;  %v2856_v7 = vld [vmem:[#allocation4 + $0x278] sm:$0xff] }
 0x2ed   : > { %2474 = vst [vmem:[#allocation3 + $0xf1] sm:$0xff] %v7619_v15  ;;  %3020 = vmatprep.mubr.f32.mxu0 %v6800_v56  ;;  %v6813_v15 = vpack.c.bf16 %v2884_v49, %v2883_v62  ;;  %v4793_v61 = vpack.c.bf16 %v2856_v7, %v2855_v3  ;;  %v2885_v62 = vld [vmem:[#allocation4 + $0x360] sm:$0xff]  ;;  %v2886_v49 = vld [vmem:[#allocation4 + $0x368] sm:$0xff]  ;;  %v4796_v3 = vpack.c.bf16 %v2858_v16, %v2857_v12  ;;  %v2896_v12 = vld [vmem:[#allocation4 + $0x3b8] sm:$0xff] }
 0x2ee   : > { %v6826_v7 = vpack.c.bf16 %v2886_v49, %v2885_v62  ;;  %v2891_v62 = vld [vmem:[#allocation4 + $0x390] sm:$0xff]  ;;  %v2892_v49 = vld [vmem:[#allocation4 + $0x398] sm:$0xff] }
 0x2ef   : > { %4836 = vmatpush1.bf16.msra.mxu0 %v6813_v15  ;;  %4794 = vmatpush1.bf16.msra.mxu1 %v4793_v61  ;;  %v6849_v35 = vpack.c.bf16 %v2892_v49, %v2891_v62  ;;  %v2900_v62 = vld [vmem:[#allocation4 + $0x3d8] sm:$0xff]  ;;  %v2901_v49 = vld [vmem:[#allocation4 + $0x3e0] sm:$0xff] }
 0x2f0   : > { %3021 = vmatmul.mubr.f32.gmra.mrb[46].mxu0 %v5136_v34  ;;  %4837 = vmatprep.subr.bf16.mxu0 %v5246_v38  ;;  %v2860_v34 = vld [vmem:[#allocation4 + $0x298] sm:$0xff] }
 0x2f1   : > { %3025 = vmatprep.mubr.f32.mxu0 %v2390_v52  ;;  %4795 = vmatprep.subr.bf16.mxu1 %v5246_v38 }
 0x2f3   : > { %4839 = vmatpush1.bf16.msra.mxu0 %v6826_v7  ;;  %4797 = vmatpush1.bf16.msra.mxu1 %v4796_v3 }
 0x2f4   : > { %3026 = vmatmul.mubr.f32.gmra.mrb[48].mxu0 %v6480_v43  ;;  %v6817_v19 = vld [vmem:[#allocation3 + $0xf0] sm:$0xff]  ;;  %v6822_v52 = vld [vmem:[#allocation3 + $0xf8] sm:$0xff]  ;;  %v2888_v43 = vld [vmem:[#allocation4 + $0x378] sm:$0xff]  ;;  %4840 = vmatprep.subr.bf16.mxu0 %v5246_v38 }
 0x2f5   : > { %3030 = vmatprep.mubr.f32.mxu0 %v2391_v27  ;;  %3300 = vmatprep.mubr.f32.mxu1 %v6817_v19  ;;  %v2887_v27 = vld [vmem:[#allocation4 + $0x370] sm:$0xff]  ;;  %v2572_v8 = vld [vmem:[#allocation3 + $0xf2] sm:$0xff] }
 0x2f6   : > { %3301 = vmatmul.mubr.f32.gmra.mrb[36].mxu1 %v2570_v31  ;;  %v6835_v36 = vpack.c.bf16 %v2888_v43, %v2887_v27  ;;  %4798 = vmatprep.subr.bf16.mxu1 %v5246_v38 }
 0x2f7   : > { %3305 = vmatprep.mubr.f32.mxu1 %v6822_v52 }
 0x2f8   : > { %3031 = vmatmul.mubr.f32.gmra.mrb[50].mxu0 %v6487_v53  ;;  %v2889_v53 = vld [vmem:[#allocation4 + $0x380] sm:$0xff] }
 0x2f9   : > { %3035 = vmatprep.mubr.f32.mxu0 %v2392_v58  ;;  %v2859_v58 = vld [vmem:[#allocation4 + $0x290] sm:$0xff]  ;;  %4842 = vmatpush1.bf16.msra.mxu0 %v6835_v36  ;;  %v6841_v61 = vpack.c.bf16 %v2890_v18, %v2889_v53  ;;  %v2898_v18 = vld [vmem:[#allocation4 + $0x3c8] sm:$0xff] }
 0x2fa   : > { %3306 = vmatmul.mubr.f32.gmra.mrb[38].mxu1 %v2571_v41  ;;  %v4799_v31 = vpack.c.bf16 %v2860_v34, %v2859_v58  ;;  %4843 = vmatprep.subr.bf16.mxu0 %v5246_v38  ;;  %v2863_v58 = vld [vmem:[#allocation4 + $0x2b0] sm:$0xff] }
 0x2fc   : > { %3036 = vmatmul.mubr.f32.gmra.mrb[52].mxu0 %v6564_v21  ;;  %4800 = vmatpush1.bf16.msra.mxu1 %v4799_v31  ;;  %v2899_v31 = vld [vmem:[#allocation4 + $0x3d0] sm:$0xff] }
 0x2fd   : > { %3040 = vmatprep.mubr.f32.mxu0 %v2393_v51  ;;  %4845 = vmatpush1.bf16.msra.mxu0 %v6841_v61  ;;  %v6893_v29 = vpack.c.bf16 %v2900_v62, %v2899_v31 }
 0x2fe   : > { %4846 = vmatprep.subr.bf16.mxu0 %v5246_v38  ;;  %4801 = vmatprep.subr.bf16.mxu1 %v5246_v38 }
 0x300   : > { %3041 = vmatmul.mubr.f32.gmra.mrb[54].mxu0 %v6569_v26 }
 0x301   : > { %3045 = vmatprep.mubr.f32.mxu0 %v2394_v5  ;;  %4848 = vmatpush1.bf16.msra.mxu0 %v6849_v35  ;;  %v2894_v5 = vld [vmem:[#allocation4 + $0x3a8] sm:$0xff] }
 0x302   : > { %4849 = vmatprep.subr.bf16.mxu0 %v5246_v38  ;;  %v6860_v27 = vpack.c.bf16 %v2894_v5, %v2893_v47  ;;  %v2865_v47 = vld [vmem:[#allocation4 + $0x2c0] sm:$0xff]  ;;  %v2866_v5 = vld [vmem:[#allocation4 + $0x2c8] sm:$0xff] }
 0x304   : > { %3046 = vmatmul.mubr.f32.gmra.mrb[56].mxu0 %v6608_v11  ;;  %v2895_v11 = vld [vmem:[#allocation4 + $0x3b0] sm:$0xff] }
 0x305   : > { %3050 = vmatprep.mubr.f32.mxu0 %v2395_v42  ;;  %v4563_v51 = vpop.f32.mrb[20].mxu0  ;;  %4851 = vmatpush1.bf16.msra.mxu0 %v6860_v27  ;;  %v6875_v53 = vpack.c.bf16 %v2896_v12, %v2895_v11  ;;  %v7629_v11 = vmax.f32 %v6788_v59, 0.0  ;;  %v7630_v12 = vmax.f32 %v6782_v33, 0.0  ;;  %v2869_v33 = vld [vmem:[#allocation4 + $0x2e0] sm:$0xff] }
 0x306   : > { %v2334_v21 = vmul.f32 %v6659_v63, %v4563_v51  ;;  %v2247_v26 = vpop.f32.mrb[21].mxu0  ;;  %4852 = vmatprep.subr.bf16.mxu0 %v5246_v38  ;;  %v2902_v51 = vld [vmem:[#allocation4 + $0x3e8] sm:$0xff] }
 0x307   : > { %v2333_v41 = vmul.f32 %v6659_v63, %v2247_v26  ;;  %v2904_v26 = vld [vmem:[#allocation4 + $0x3f8] sm:$0xff] }
 0x308   : > { %v6863_v43 = vadd.f32 %v6668_v17, %v2334_v21  ;;  %3051 = vmatmul.mubr.f32.gmra.mrb[58].mxu0 %v6611_v13  ;;  %v2861_v13 = vld [vmem:[#allocation4 + $0x2a0] sm:$0xff]  ;;  %v6903_v21 = vpack.c.bf16 %v2902_v51, %v2901_v49 }
 0x309   : > { %v6867_v2 = vadd.f32 %v6668_v17, %v2333_v41  ;;  %3055 = vmatprep.mubr.f32.mxu0 %v2396_v6  ;;  %4854 = vmatpush1.bf16.msra.mxu0 %v6875_v53  ;;  %v2897_v6 = vld [vmem:[#allocation4 + $0x3c0] sm:$0xff]  ;;  %v4802_v3 = vpack.c.bf16 %v2862_v20, %v2861_v13 }
 0x30a   : > { %v2405_v42 = vmax.f32 %v6863_v43, 0.0  ;;  %4855 = vmatprep.subr.bf16.mxu0 %v5246_v38  ;;  %v6887_v34 = vpack.c.bf16 %v2898_v18, %v2897_v6 }
 0x30b   : > { %v2404_v16 = vmax.f32 %v6867_v2, 0.0  ;;  %4803 = vmatpush1.bf16.msra.mxu1 %v4802_v3  ;;  %v2868_v3 = vld [vmem:[#allocation4 + $0x2d8] sm:$0xff]  ;;  %v2871_v2 = vld [vmem:[#allocation4 + $0x2f0] sm:$0xff] }
 0x30c   : > { %2477 = vst [vmem:[#allocation3 + $0x111] sm:$0xff] %v2405_v42  ;;  %3056 = vmatmul.mubr.f32.gmra.mrb[60].mxu0 %v6648_v37  ;;  %v2864_v37 = vld [vmem:[#allocation4 + $0x2b8] sm:$0xff]  ;;  %4804 = vmatprep.subr.bf16.mxu1 %v5246_v38 }
 0x30d   : > { %2476 = vst [vmem:[#allocation3 + $0x109] sm:$0xff] %v2404_v16  ;;  %3060 = vmatprep.mubr.f32.mxu0 %v2397_v10  ;;  %4857 = vmatpush1.bf16.msra.mxu0 %v6887_v34  ;;  %v4805_v10 = vpack.c.bf16 %v2864_v37, %v2863_v58  ;;  %v2870_v37 = vld [vmem:[#allocation4 + $0x2e8] sm:$0xff] }
 0x30e   : > { %4858 = vmatprep.subr.bf16.mxu0 %v5246_v38 }
 0x30f   : > { %4806 = vmatpush1.bf16.msra.mxu1 %v4805_v10 }
 0x310   : > { %3061 = vmatmul.mubr.f32.gmra.mrb[62].mxu0 %v6651_v28  ;;  %4807 = vmatprep.subr.bf16.mxu1 %v5246_v38 }
 0x311   : > { %3065 = vmatprep.mubr.f32.mxu0 %v2398_v45  ;;  %4860 = vmatpush1.bf16.msra.mxu0 %v6893_v29 }
 0x312   : > { %4861 = vmatprep.subr.bf16.mxu0 %v5246_v38 }
 0x313   : > { %v2575_v10 = vld [vmem:[#allocation3 + $0x112] sm:$0xff] }
 0x314   : > { %3066 = vmatmul.mubr.f32.gmra.mrb[64].mxu0 %v6698_v46  ;;  %v6897_v28 = vld [vmem:[#allocation3 + $0x108] sm:$0xff]  ;;  %v2605_v45 = vld [vmem:[#allocation3 + $0x110] sm:$0xff]  ;;  %v2903_v46 = vld [vmem:[#allocation4 + $0x3f0] sm:$0xff] }
 0x315   : > { %3070 = vmatprep.mubr.f32.mxu0 %v2399_v54  ;;  %3310 = vmatprep.mubr.f32.mxu1 %v6897_v28  ;;  %v2573_v54 = vld [vmem:[#allocation3 + $0xfa] sm:$0xff]  ;;  %v6912_v41 = vpack.c.bf16 %v2904_v26, %v2903_v46  ;;  %v2574_v43 = vld [vmem:[#allocation3 + $0x10a] sm:$0xff] }
 0x316   : > { %3311 = vmatmul.mubr.f32.gmra.mrb[40].mxu1 %v2572_v8  ;;  %4863 = vmatpush1.bf16.msra.mxu0 %v6903_v21 }
 0x317   : > { %3315 = vmatprep.mubr.f32.mxu1 %v2605_v45  ;;  %4864 = vmatprep.subr.bf16.mxu0 %v5246_v38 }
 0x318   : > { %3071 = vmatmul.mubr.f32.gmra.mrb[66].mxu0 %v6701_v14  ;;  %v4808_v14 = vpack.c.bf16 %v2866_v5, %v2865_v47  ;;  %v2905_v47 = vld [vmem:[#allocation4 + $0x400] sm:$0xff]  ;;  %v2906_v5 = vld [vmem:[#allocation4 + $0x408] sm:$0xff] }
 0x319   : > { %3075 = vmatprep.mubr.f32.mxu0 %v7627_v57 }
 0x31a   : > { %3316 = vmatmul.mubr.f32.gmra.mrb[42].mxu1 %v2573_v54  ;;  %4866 = vmatpush1.bf16.msra.mxu0 %v6912_v41 }
 0x31b   : > { %4809 = vmatpush1.bf16.msra.mxu1 %v4808_v14  ;;  %v6950_v14 = vpack.c.bf16 %v2906_v5, %v2905_v47  ;;  %v2909_v5 = vld [vmem:[#allocation4 + $0x420] sm:$0xff] }
 0x31c   : > { %3076 = vmatmul.mubr.f32.gmra.mrb[68].mxu0 %v6743_v39  ;;  %4810 = vmatprep.subr.bf16.mxu1 %v5246_v38 }
 0x31d   : > { %3080 = vmatprep.mubr.f32.mxu0 %v7628_v1  ;;  %4868 = vmatprep.subr.bf16.mxu0 %v6950_v14 }
 0x320   : > { %3081 = vmatmul.mubr.f32.gmra.mrb[70].mxu0 %v6746_v50 }
 0x321   : > { %3085 = vmatprep.mubr.f32.mxu0 %v7629_v11 }
 0x324   : > { %3086 = vmatmul.mubr.f32.gmra.mrb[72].mxu0 %v6817_v19  ;;  %v2867_v19 = vld [vmem:[#allocation4 + $0x2d0] sm:$0xff] }
 0x325   : > { %3090 = vmatprep.mubr.f32.mxu0 %v7630_v12  ;;  %v4811_v58 = vpack.c.bf16 %v2868_v3, %v2867_v19 }
 0x326   : > { %v4566_v39 = vpop.f32.mrb[22].mxu0 }
 0x327   : > { %v2336_v13 = vmul.f32 %v6659_v63, %v4566_v39  ;;  %v2257_v60 = vpop.f32.mrb[23].mxu0  ;;  %4812 = vmatpush1.bf16.msra.mxu1 %v4811_v58 }
 0x328   : > { %v2335_v20 = vmul.f32 %v6659_v63, %v2257_v60  ;;  %3091 = vmatmul.mubr.f32.gmra.mrb[74].mxu0 %v6822_v52  ;;  %v4814_v52 = vpack.c.bf16 %v2870_v37, %v2869_v33  ;;  %4813 = vmatprep.subr.bf16.mxu1 %v5246_v38 }
 0x329   : > { %v2375_v6 = vadd.f32 %v6668_v17, %v2336_v13  ;;  %3095 = vmatprep.mubr.f32.mxu0 %v2404_v16  ;;  %v2872_v16 = vld [vmem:[#allocation4 + $0x2f8] sm:$0xff] }
 0x32a   : > { %v2374_v50 = vadd.f32 %v6668_v17, %v2335_v20  ;;  %v4817_v62 = vpack.c.bf16 %v2872_v16, %v2871_v2 }
 0x32b   : > { %v2407_v59 = vmax.f32 %v2375_v6, 0.0  ;;  %4815 = vmatpush1.bf16.msra.mxu1 %v4814_v52 }
 0x32c   : > { %v6932_v18 = vmax.f32 %v2374_v50, 0.0  ;;  %3096 = vmatmul.mubr.f32.gmra.mrb[76].mxu0 %v6897_v28  ;;  %4816 = vmatprep.subr.bf16.mxu1 %v5246_v38 }
 0x32d   : > { %2479 = vst [vmem:[#allocation3 + $0x129] sm:$0xff] %v2407_v59  ;;  %3100 = vmatprep.mubr.f32.mxu0 %v2405_v42 }
 0x32e   : > { %2478 = vst [vmem:[#allocation3 + $0x121] sm:$0xff] %v6932_v18 }
 0x32f   : > { %4818 = vmatpush1.bf16.msra.mxu1 %v4817_v62 }
 0x330   : > { %3101 = vmatmul.mubr.f32.gmra.mrb[78].mxu0 %v2605_v45  ;;  %4899 = vmatprep.subr.bf16.mxu1 %v5246_v38 }
 0x331   : > { %3105 = vmatprep.mubr.f32.mxu0 %v6932_v18 }
 0x334   : > { %v2577_v39 = vld [vmem:[#allocation3 + $0x12a] sm:$0xff] }
 0x335   : > { %v6941_v31 = vld [vmem:[#allocation3 + $0x120] sm:$0xff]  ;;  %v2607_v42 = vld [vmem:[#allocation3 + $0x128] sm:$0xff] }
 0x336   : > { %3320 = vmatprep.mubr.f32.mxu1 %v6941_v31  ;;  %3106 = vmatmul.mubr.f32.gmra.mrb[80].mxu0 %v6941_v31  ;;  %v2576_v11 = vld [vmem:[#allocation3 + $0x122] sm:$0xff] }
 0x337   : > { %3321 = vmatmul.mubr.f32.gmra.mrb[44].mxu1 %v2574_v43  ;;  %3110 = vmatprep.mubr.f32.mxu0 %v2407_v59 }
 0x338   : > { %3325 = vmatprep.mubr.f32.mxu1 %v2607_v42 }
 0x33a   : > { %3111 = vmatmul.mubr.f32.gmra.mrb[82].mxu0 %v2607_v42 }
 0x33b   : > { %3326 = vmatmul.mubr.f32.gmra.mrb[46].mxu1 %v2575_v10 }
 0x346   : > { %v4569_v8 = vpop.f32.mrb[24].mxu0 }
 0x347   : > { %v2338_v45 = vmul.f32 %v6659_v63, %v4569_v8  ;;  %v2267_v49 = vpop.f32.mrb[25].mxu0 }
 0x348   : > { %v2337_v51 = vmul.f32 %v6659_v63, %v2267_v49 }
 0x349   : > { %v2377_v57 = vadd.f32 %v6668_v17, %v2338_v45 }
 0x34a   : > { %v2376_v54 = vadd.f32 %v6668_v17, %v2337_v51 }
 0x34b   : > { %v2409_v46 = vmax.f32 %v2377_v57, 0.0 }
 0x34c   : > { %v2408_v26 = vmax.f32 %v2376_v54, 0.0  ;;  %v2907_v54 = vld [vmem:[#allocation4 + $0x410] sm:$0xff] }
 0x34d   : > { %2481 = vst [vmem:[#allocation3 + $0x141] sm:$0xff] %v2409_v46 }
 0x34e   : > { %2480 = vst [vmem:[#allocation3 + $0x139] sm:$0xff] %v2408_v26  ;;  %3115 = vmatprep.mubr.f32.mxu0 %v2408_v26 }
 0x354   : > { %v6960_v52 = vld [vmem:[#allocation3 + $0x142] sm:$0xff] }
 0x355   : > { %v2608_v1 = vld [vmem:[#allocation3 + $0x138] sm:$0xff]  ;;  %v2609_v12 = vld [vmem:[#allocation3 + $0x140] sm:$0xff] }
 0x356   : > { %3330 = vmatprep.mubr.f32.mxu1 %v2608_v1  ;;  %3116 = vmatmul.mubr.f32.gmra.mrb[84].mxu0 %v2608_v1  ;;  %v6957_v58 = vld [vmem:[#allocation3 + $0x13a] sm:$0xff] }
 0x357   : > { %3331 = vmatmul.mubr.f32.gmra.mrb[48].mxu1 %v2576_v11  ;;  %3120 = vmatprep.mubr.f32.mxu0 %v2409_v46  ;;  %v2908_v46 = vld [vmem:[#allocation4 + $0x418] sm:$0xff]  ;;  %v2910_v1 = vld [vmem:[#allocation4 + $0x428] sm:$0xff] }
 0x358   : > { %3335 = vmatprep.mubr.f32.mxu1 %v2609_v12  ;;  %v4871_v47 = vpack.c.bf16 %v2908_v46, %v2907_v54  ;;  %v4875_v11 = vpack.c.bf16 %v2910_v1, %v2909_v5  ;;  %v7014_v54 = vld [vmem:[#allocation3 + $0x69] sm:$0xff] }
 0x359   : > { %v2917_v46 = vld [vmem:[#allocation4 + $0x460] sm:$0xff] }
 0x35a   : > { %3121 = vmatmul.mubr.f32.gmra.mrb[86].mxu0 %v2609_v12  ;;  %v2911_v12 = vld [vmem:[#allocation4 + $0x430] sm:$0xff] }
 0x35b   : > { %3336 = vmatmul.mubr.f32.gmra.mrb[50].mxu1 %v2577_v39  ;;  %v2912_v39 = vld [vmem:[#allocation4 + $0x438] sm:$0xff] }
 0x366   : > { %v4572_v13 = vpop.f32.mrb[26].mxu0 }
 0x367   : > { %v2340_v60 = vmul.f32 %v6659_v63, %v4572_v13  ;;  %v2277_v20 = vpop.f32.mrb[27].mxu0 }
 0x368   : > { %v2339_v6 = vmul.f32 %v6659_v63, %v2277_v20 }
 0x369   : > { %v2379_v50 = vadd.f32 %v6668_v17, %v2340_v60 }
 0x36a   : > { %v2378_v59 = vadd.f32 %v6668_v17, %v2339_v6  ;;  %v4879_v6 = vpack.c.bf16 %v2912_v39, %v2911_v12  ;;  %v7019_v12 = vld [vmem:[#allocation3 + $0x79] sm:$0xff] }
 0x36b   : > { %v2411_v19 = vmax.f32 %v2379_v50, 0.0  ;;  %v2913_v50 = vld [vmem:[#allocation4 + $0x440] sm:$0xff] }
 0x36c   : > { %v2410_v3 = vmax.f32 %v2378_v59, 0.0  ;;  %v2914_v59 = vld [vmem:[#allocation4 + $0x448] sm:$0xff] }
 0x36d   : > { %2483 = vst [vmem:[#allocation3 + $0x159] sm:$0xff] %v2411_v19 }
 0x36e   : > { %2482 = vst [vmem:[#allocation3 + $0x151] sm:$0xff] %v2410_v3  ;;  %3125 = vmatprep.mubr.f32.mxu0 %v2410_v3 }
 0x374   : > { %v6986_v26 = vld [vmem:[#allocation3 + $0x15a] sm:$0xff] }
 0x375   : > { %v2610_v33 = vld [vmem:[#allocation3 + $0x150] sm:$0xff]  ;;  %v2611_v37 = vld [vmem:[#allocation3 + $0x158] sm:$0xff] }
 0x376   : > { %3340 = vmatprep.mubr.f32.mxu1 %v2610_v33  ;;  %3126 = vmatmul.mubr.f32.gmra.mrb[88].mxu0 %v2610_v33  ;;  %v6978_v51 = vld [vmem:[#allocation3 + $0x152] sm:$0xff] }
 0x377   : > { %3341 = vmatmul.mubr.f32.gmra.mrb[52].mxu1 %v6957_v58  ;;  %3130 = vmatprep.mubr.f32.mxu0 %v2411_v19 }
 0x378   : > { %3345 = vmatprep.mubr.f32.mxu1 %v2611_v37 }
 0x37a   : > { %3131 = vmatmul.mubr.f32.gmra.mrb[90].mxu0 %v2611_v37  ;;  %v4883_v37 = vpack.c.bf16 %v2914_v59, %v2913_v50 }
 0x37b   : > { %3346 = vmatmul.mubr.f32.gmra.mrb[54].mxu1 %v6960_v52 }
 0x386   : > { %v4575_v2 = vpop.f32.mrb[28].mxu0 }
 0x387   : > { %v2342_v16 = vmul.f32 %v6659_v63, %v4575_v2  ;;  %v2287_v62 = vpop.f32.mrb[29].mxu0 }
 0x388   : > { %v2341_v43 = vmul.f32 %v6659_v63, %v2287_v62  ;;  %v2916_v62 = vld [vmem:[#allocation4 + $0x458] sm:$0xff] }
 0x389   : > { %v2381_v42 = vadd.f32 %v6668_v17, %v2342_v16  ;;  %v2915_v16 = vld [vmem:[#allocation4 + $0x450] sm:$0xff] }
 0x38a   : > { %v2380_v10 = vadd.f32 %v6668_v17, %v2341_v43 }
 0x38b   : > { %v6967_v8 = vmax.f32 %v2381_v42, 0.0  ;;  %v4887_v42 = vpack.c.bf16 %v2916_v62, %v2915_v16  ;;  %v2648_v62 = vld [vmem:[#allocation3 + $0x1a] sm:$0xff] }
 0x38c   : > { %v6969_v45 = vmax.f32 %v2380_v10, 0.0  ;;  %v2685_v10 = vld [vmem:[#allocation3 + $0x60] sm:$0xff] }
 0x38d   : > { %2485 = vst [vmem:[#allocation3 + $0x171] sm:$0xff] %v6967_v8 }
 0x38e   : > { %2484 = vst [vmem:[#allocation3 + $0x169] sm:$0xff] %v6969_v45  ;;  %3135 = vmatprep.mubr.f32.mxu0 %v6969_v45 }
 0x395   : > { %v6974_v49 = vld [vmem:[#allocation3 + $0x168] sm:$0xff]  ;;  %v6982_v57 = vld [vmem:[#allocation3 + $0x170] sm:$0xff] }
 0x396   : > { %3350 = vmatprep.mubr.f32.mxu1 %v6974_v49  ;;  %3136 = vmatmul.mubr.f32.gmra.mrb[92].mxu0 %v6974_v49 }
 0x397   : > { %3351 = vmatmul.mubr.f32.gmra.mrb[56].mxu1 %v6978_v51  ;;  %3140 = vmatprep.mubr.f32.mxu0 %v6967_v8 }
 0x398   : > { %3355 = vmatprep.mubr.f32.mxu1 %v6982_v57 }
 0x39a   : > { %3141 = vmatmul.mubr.f32.gmra.mrb[94].mxu0 %v6982_v57 }
 0x39b   : > { %3356 = vmatmul.mubr.f32.gmra.mrb[58].mxu1 %v6986_v26  ;;  %3660 = vmatprep.mubr.f32.mxu0 %v6764_v0 }
 0x39e   : > { %3661 = vmatmul.mubr.f32.vlgmr.msra.gmra.mrb[96].mxu0 %v6768_v44 }
 0x39f   : > { %3665 = vmatprep.mubr.f32.mxu0 %v6773_v25  ;;  %4870 = vmatpush3.bf16.msra.mxu0 %v6950_v14 }
 0x3a0   : > { %4872 = vmatprep.subr.bf16.mxu0 %v4871_v47 }
 0x3a2   : > { %3666 = vmatmul.mubr.f32.gmra.mrb[98].mxu0 %v6779_v32 }
 0x3a3   : > { %v4578_v13 = vpop.f32.mrb[30].mxu0  ;;  %3670 = vmatprep.mubr.f32.mxu0 %v6785_v22  ;;  %4874 = vmatpush3.bf16.msra.mxu0 %v4871_v47  ;;  %v2918_v47 = vld [vmem:[#allocation4 + $0x468] sm:$0xff] }
 0x3a4   : > { %v2344_v60 = vmul.f32 %v6659_v63, %v4578_v13  ;;  %v2297_v20 = vpop.f32.mrb[31].mxu0  ;;  %4876 = vmatprep.subr.bf16.mxu0 %v4875_v11  ;;  %v4891_v39 = vpack.c.bf16 %v2918_v47, %v2917_v46  ;;  %v2649_v47 = vld [vmem:[#allocation3 + $0x22] sm:$0xff] }
 0x3a5   : > { %v2343_v44 = vmul.f32 %v6659_v63, %v2297_v20  ;;  %v2684_v63 = vld [vmem:[#allocation3 + $0x50] sm:$0xff]  ;;  %v2920_v20 = vld [vmem:[#allocation4 + $0x478] sm:$0xff] }
 0x3a6   : > { %v2383_v14 = vadd.f32 %v6668_v17, %v2344_v60  ;;  %3671 = vmatmul.mubr.f32.gmra.mrb[100].mxu0 %v6793_v24  ;;  %v7008_v24 = vld [vmem:[#allocation3 + $0x61] sm:$0xff] }
 0x3a7   : > { %v2382_v19 = vadd.f32 %v6668_v17, %v2343_v44  ;;  %3675 = vmatprep.mubr.f32.mxu0 %v6800_v56  ;;  %v7001_v32 = vpop.f32.mrb[32].mxu0  ;;  %4878 = vmatpush3.bf16.msra.mxu0 %v4875_v11  ;;  %v2686_v11 = vld [vmem:[#allocation3 + $0x68] sm:$0xff]  ;;  %v2919_v60 = vld [vmem:[#allocation4 + $0x470] sm:$0xff] }
 0x3a8   : > { %v7003_v3 = vmax.f32 %v2383_v14, 0.0  ;;  %v2989_v33 = vpop.f32.mrb[33].mxu0  ;;  %4880 = vmatprep.subr.bf16.mxu0 %v4879_v6  ;;  %v7026_v44 = vld [vmem:[#allocation3 + $0x16a] sm:$0xff]  ;;  %v2687_v14 = vld [vmem:[#allocation3 + $0x78] sm:$0xff] }
 0x3a9   : > { %v7005_v2 = vmax.f32 %v2382_v19, 0.0  ;;  %v4895_v19 = vpack.c.bf16 %v2920_v20, %v2919_v60  ;;  %v7033_v33 = vld [vmem:[#allocation3 + $0x81] sm:$0xff]  ;;  %v7055_v20 = vld [vmem:[#allocation3 + $0x32] sm:$0xff] }
 0x3aa   : > { %2487 = vst [vmem:[#allocation3 + $0x189] sm:$0xff] %v7003_v3  ;;  %3676 = vmatmul.mubr.f32.gmra.mrb[102].mxu0 %v2684_v63  ;;  %v7037_v63 = vld [vmem:[#allocation3 + $0x172] sm:$0xff] }
 0x3ab   : > { %2486 = vst [vmem:[#allocation3 + $0x181] sm:$0xff] %v7005_v2  ;;  %3680 = vmatprep.mubr.f32.mxu0 %v7008_v24  ;;  %v7012_v17 = vpop.f32.mrb[34].mxu0  ;;  %4882 = vmatpush3.bf16.msra.mxu0 %v4879_v6 }
 0x3ac   : > { %v2994_v43 = vpop.f32.mrb[35].mxu0  ;;  %4884 = vmatprep.subr.bf16.mxu0 %v4883_v37 }
 0x3ad   : > { %v2688_v43 = vld [vmem:[#allocation3 + $0x80] sm:$0xff] }
 0x3ae   : > { %3681 = vmatmul.mubr.f32.gmra.mrb[104].mxu0 %v2685_v10 }
 0x3af   : > { %v7016_v5 = vpop.f32.mrb[36].mxu0  ;;  %3685 = vmatprep.mubr.f32.mxu0 %v7014_v54  ;;  %4886 = vmatpush3.bf16.msra.mxu0 %v4883_v37 }
 0x3b0   : > { %v2999_v1 = vpop.f32.mrb[37].mxu0  ;;  %4888 = vmatprep.subr.bf16.mxu0 %v4887_v42 }
 0x3b1   : > { %v2689_v1 = vld [vmem:[#allocation3 + $0x90] sm:$0xff] }
 0x3b2   : > { %v7021_v13 = vld [vmem:[#allocation3 + $0x180] sm:$0xff]  ;;  %3686 = vmatmul.mubr.f32.gmra.mrb[106].mxu0 %v2686_v11  ;;  %v7030_v59 = vld [vmem:[#allocation3 + $0x188] sm:$0xff] }
 0x3b3   : > { %v7023_v6 = vpop.f32.mrb[38].mxu0  ;;  %3360 = vmatprep.mubr.f32.mxu1 %v7021_v13  ;;  %3690 = vmatprep.mubr.f32.mxu0 %v7019_v12  ;;  %v7048_v11 = vld [vmem:[#allocation3 + $0x99] sm:$0xff] }
 0x3b4   : > { %v3004_v50 = vpop.f32.mrb[39].mxu0  ;;  %3361 = vmatmul.mubr.f32.gmra.mrb[60].mxu1 %v7026_v44  ;;  %4890 = vmatpush3.bf16.msra.mxu0 %v4887_v42  ;;  %v7041_v42 = vld [vmem:[#allocation3 + $0x91] sm:$0xff] }
 0x3b5   : > { %3365 = vmatprep.mubr.f32.mxu1 %v7030_v59  ;;  %4892 = vmatprep.subr.bf16.mxu0 %v4891_v39 }
 0x3b6   : > { %3691 = vmatmul.mubr.f32.gmra.mrb[108].mxu0 %v2687_v14 }
 0x3b7   : > { %v7035_v37 = vpop.f32.mrb[40].mxu0  ;;  %3695 = vmatprep.mubr.f32.mxu0 %v7033_v33 }
 0x3b8   : > { %v3009_v16 = vpop.f32.mrb[41].mxu0  ;;  %3366 = vmatmul.mubr.f32.gmra.mrb[62].mxu1 %v7037_v63  ;;  %4894 = vmatpush3.bf16.msra.mxu0 %v4891_v39 }
 0x3b9   : > { %3435 = vmatprep.mubr.f32.mxu1 %v2648_v62  ;;  %4896 = vmatprep.subr.bf16.mxu0 %v4895_v19 }
 0x3ba   : > { %3696 = vmatmul.mubr.f32.gmra.mrb[110].mxu0 %v2688_v43  ;;  %v2692_v43 = vld [vmem:[#allocation3 + $0xb0] sm:$0xff] }
 0x3bb   : > { %v7043_v10 = vpop.f32.mrb[42].mxu0  ;;  %3700 = vmatprep.mubr.f32.mxu0 %v7041_v42 }
 0x3bc   : > { %v3014_v46 = vpop.f32.mrb[43].mxu0  ;;  %3436 = vmatmul.mubr.f32.vlgmr.msra.gmra.mrb[0].mxu1 %v6750_v40  ;;  %4898 = vmatpush3.bf16.msra.mxu0 %v4895_v19  ;;  %v2690_v40 = vld [vmem:[#allocation3 + $0x98] sm:$0xff]  ;;  %v2691_v19 = vld [vmem:[#allocation3 + $0xa8] sm:$0xff] }
 0x3bd   : > { %4915 = vmatpush1.bf16.msra.mxu1 %v6741_v23  ;;  %3440 = vmatprep.mubr.f32.mxu1 %v2649_v47  ;;  %v7059_v23 = vld [vmem:[#allocation3 + $0xa9] sm:$0xff] }
 0x3be   : > { %3701 = vmatmul.mubr.f32.gmra.mrb[112].mxu0 %v2689_v1  ;;  %4900 = vmatprep.subr.bf16.mxu1 %v5246_v38  ;;  %v2693_v1 = vld [vmem:[#allocation3 + $0xc0] sm:$0xff] }
 0x3bf   : > { %v7051_v39 = vpop.f32.mrb[44].mxu0  ;;  %3705 = vmatprep.mubr.f32.mxu0 %v7048_v11 }
 0x3c0   : > { %v3019_v60 = vpop.f32.mrb[45].mxu0  ;;  %3441 = vmatmul.mubr.f32.gmra.mrb[2].mxu1 %v6755_v9  ;;  %v7066_v9 = vld [vmem:[#allocation3 + $0x3a] sm:$0xff] }
 0x3c1   : > { %3445 = vmatprep.mubr.f32.mxu1 %v7055_v20  ;;  %4916 = vmatpush1.bf16.msra.mxu1 %v6758_v55  ;;  %v7070_v55 = vld [vmem:[#allocation3 + $0xb1] sm:$0xff] }
 0x3c2   : > { %3706 = vmatmul.mubr.f32.gmra.mrb[114].mxu0 %v2690_v40  ;;  %4901 = vmatprep.subr.bf16.mxu1 %v5246_v38 }
 0x3c3   : > { %v7062_v50 = vpop.f32.mrb[46].mxu0  ;;  %3710 = vmatprep.mubr.f32.mxu0 %v7059_v23 }
 0x3c4   : > { %v3024_v14 = vpop.f32.mrb[47].mxu0  ;;  %3446 = vmatmul.mubr.f32.gmra.mrb[4].mxu1 %v6764_v0  ;;  %v7077_v0 = vld [vmem:[#allocation3 + $0x4a] sm:$0xff] }
 0x3c5   : > { %3450 = vmatprep.mubr.f32.mxu1 %v7066_v9  ;;  %4917 = vmatpush1.bf16.msra.mxu1 %v6762_v30  ;;  %v7081_v30 = vld [vmem:[#allocation3 + $0xc1] sm:$0xff] }
 0x3c6   : > { %3711 = vmatmul.mubr.f32.gmra.mrb[116].mxu0 %v2691_v19  ;;  %4902 = vmatprep.subr.bf16.mxu1 %v5246_v38  ;;  %v2694_v14 = vld [vmem:[#allocation3 + $0xc8] sm:$0xff] }
 0x3c7   : > { %v7073_v16 = vpop.f32.mrb[48].mxu0  ;;  %3715 = vmatprep.mubr.f32.mxu0 %v7070_v55 }
 0x3c8   : > { %v3029_v62 = vpop.f32.mrb[49].mxu0  ;;  %3451 = vmatmul.mubr.f32.gmra.mrb[6].mxu1 %v6773_v25  ;;  %v7088_v25 = vld [vmem:[#allocation3 + $0x52] sm:$0xff] }
 0x3c9   : > { %3455 = vmatprep.mubr.f32.mxu1 %v7077_v0  ;;  %4918 = vmatpush1.bf16.msra.mxu1 %v6795_v48  ;;  %v7092_v48 = vld [vmem:[#allocation3 + $0xc9] sm:$0xff] }
 0x3ca   : > { %3716 = vmatmul.mubr.f32.gmra.mrb[118].mxu0 %v2692_v43  ;;  %4903 = vmatprep.subr.bf16.mxu1 %v5246_v38  ;;  %v2695_v43 = vld [vmem:[#allocation3 + $0xd8] sm:$0xff] }
 0x3cb   : > { %v7084_v46 = vpop.f32.mrb[50].mxu0  ;;  %3720 = vmatprep.mubr.f32.mxu0 %v7081_v30 }
 0x3cc   : > { %v3034_v47 = vpop.f32.mrb[51].mxu0  ;;  %3456 = vmatmul.mubr.f32.gmra.mrb[8].mxu1 %v6785_v22  ;;  %v7099_v22 = vld [vmem:[#allocation3 + $0x62] sm:$0xff] }
 0x3cd   : > { %3460 = vmatprep.mubr.f32.mxu1 %v7088_v25  ;;  %4919 = vmatpush1.bf16.msra.mxu1 %v6807_v4  ;;  %v7103_v4 = vld [vmem:[#allocation3 + $0xd9] sm:$0xff] }
 0x3ce   : > { %3721 = vmatmul.mubr.f32.gmra.mrb[120].mxu0 %v2693_v1  ;;  %4904 = vmatprep.subr.bf16.mxu1 %v5246_v38 }
 0x3cf   : > { %v7095_v60 = vpop.f32.mrb[52].mxu0  ;;  %3725 = vmatprep.mubr.f32.mxu0 %v7092_v48 }
 0x3d0   : > { %v3039_v40 = vpop.f32.mrb[53].mxu0  ;;  %3461 = vmatmul.mubr.f32.gmra.mrb[10].mxu1 %v6800_v56  ;;  %v7110_v56 = vld [vmem:[#allocation3 + $0x6a] sm:$0xff] }
 0x3d1   : > { %3465 = vmatprep.mubr.f32.mxu1 %v7099_v22  ;;  %4920 = vmatpush1.bf16.msra.mxu1 %v6813_v15  ;;  %v7114_v15 = vld [vmem:[#allocation3 + $0xe1] sm:$0xff] }
 0x3d2   : > { %3726 = vmatmul.mubr.f32.gmra.mrb[122].mxu0 %v2694_v14  ;;  %4905 = vmatprep.subr.bf16.mxu1 %v5246_v38  ;;  %v2696_v40 = vld [vmem:[#allocation3 + $0xe0] sm:$0xff] }
 0x3d3   : > { %v7106_v19 = vpop.f32.mrb[54].mxu0  ;;  %3730 = vmatprep.mubr.f32.mxu0 %v7103_v4 }
 0x3d4   : > { %v3044_v62 = vpop.f32.mrb[55].mxu0  ;;  %3466 = vmatmul.mubr.f32.gmra.mrb[12].mxu1 %v7008_v24  ;;  %v7121_v24 = vld [vmem:[#allocation3 + $0x7a] sm:$0xff] }
 0x3d5   : > { %3470 = vmatprep.mubr.f32.mxu1 %v7110_v56  ;;  %4921 = vmatpush1.bf16.msra.mxu1 %v6826_v7  ;;  %v7125_v7 = vld [vmem:[#allocation3 + $0xf1] sm:$0xff] }
 0x3d6   : > { %3731 = vmatmul.mubr.f32.gmra.mrb[124].mxu0 %v2695_v43  ;;  %4906 = vmatprep.subr.bf16.mxu1 %v5246_v38  ;;  %v2697_v43 = vld [vmem:[#allocation3 + $0xf0] sm:$0xff] }
 0x3d7   : > { %v7117_v47 = vpop.f32.mrb[56].mxu0  ;;  %3735 = vmatprep.mubr.f32.mxu0 %v7114_v15 }
 0x3d8   : > { %v3049_v1 = vpop.f32.mrb[57].mxu0  ;;  %3471 = vmatmul.mubr.f32.gmra.mrb[14].mxu1 %v7014_v54  ;;  %v7132_v54 = vld [vmem:[#allocation3 + $0x82] sm:$0xff] }
 0x3d9   : > { %3475 = vmatprep.mubr.f32.mxu1 %v7121_v24  ;;  %4922 = vmatpush1.bf16.msra.mxu1 %v6835_v36  ;;  %v7136_v36 = vld [vmem:[#allocation3 + $0xf9] sm:$0xff] }
 0x3da   : > { %3736 = vmatmul.mubr.f32.gmra.mrb[126].mxu0 %v2696_v40  ;;  %4907 = vmatprep.subr.bf16.mxu1 %v5246_v38 }
 0x3db   : > { %v7128_v14 = vpop.f32.mrb[58].mxu0  ;;  %3740 = vmatprep.mubr.f32.mxu0 %v7125_v7 }
 0x3dc   : > { %v3054_v62 = vpop.f32.mrb[59].mxu0  ;;  %3476 = vmatmul.mubr.f32.gmra.mrb[16].mxu1 %v7019_v12  ;;  %v7143_v12 = vld [vmem:[#allocation3 + $0x92] sm:$0xff] }
 0x3dd   : > { %3480 = vmatprep.mubr.f32.mxu1 %v7132_v54  ;;  %4923 = vmatpush1.bf16.msra.mxu1 %v6841_v61  ;;  %v2698_v62 = vld [vmem:[#allocation3 + $0xf8] sm:$0xff]  ;;  %v7147_v61 = vld [vmem:[#allocation3 + $0x109] sm:$0xff] }
 0x3de   : > { %3741 = vmatmul.mubr.f32.gmra.mrb[128].mxu0 %v2697_v43  ;;  %4908 = vmatprep.subr.bf16.mxu1 %v5246_v38 }
 0x3df   : > { %v7139_v1 = vpop.f32.mrb[60].mxu0  ;;  %3745 = vmatprep.mubr.f32.mxu0 %v7136_v36 }
 0x3e0   : > { %7631 = vst [vmem:[#allocation10_spill] sm:$0xff] %v7139_v1  ;;  %v3059_v40 = vpop.f32.mrb[61].mxu0  ;;  %3481 = vmatmul.mubr.f32.gmra.mrb[18].mxu1 %v7033_v33  ;;  %v7154_v33 = vld [vmem:[#allocation3 + $0x9a] sm:$0xff] }
 0x3e1   : > { %3485 = vmatprep.mubr.f32.mxu1 %v7143_v12  ;;  %4924 = vmatpush1.bf16.msra.mxu1 %v6849_v35  ;;  %v7159_v35 = vld [vmem:[#allocation3 + $0x111] sm:$0xff] }
 0x3e2   : > { %3746 = vmatmul.mubr.f32.gmra.mrb[130].mxu0 %v2698_v62  ;;  %4909 = vmatprep.subr.bf16.mxu1 %v5246_v38 }
 0x3e3   : > { %v7150_v43 = vpop.f32.mrb[62].mxu0  ;;  %3750 = vmatprep.mubr.f32.mxu0 %v7147_v61 }
 0x3e4   : > { %v3064_v1 = vpop.f32.mrb[63].mxu0  ;;  %3486 = vmatmul.mubr.f32.gmra.mrb[20].mxu1 %v7041_v42  ;;  %v2660_v42 = vld [vmem:[#allocation3 + $0xaa] sm:$0xff] }
 0x3e5   : > { %3490 = vmatprep.mubr.f32.mxu1 %v7154_v33  ;;  %4925 = vmatpush1.bf16.msra.mxu1 %v6860_v27  ;;  %v2700_v1 = vld [vmem:[#allocation3 + $0x110] sm:$0xff] }
 0x3e6   : > { %3751 = vmatmul.mubr.f32.gmra.mrb[132].mxu0 %v6897_v28  ;;  %4910 = vmatprep.subr.bf16.mxu1 %v5246_v38 }
 0x3e7   : > { %v7162_v40 = vpop.f32.mrb[64].mxu0  ;;  %3755 = vmatprep.mubr.f32.mxu0 %v7159_v35 }
 0x3e8   : > { %7632 = vst [vmem:[#allocation11_spill] sm:$0xff] %v7162_v40  ;;  %v3069_v62 = vpop.f32.mrb[65].mxu0  ;;  %3491 = vmatmul.mubr.f32.gmra.mrb[22].mxu1 %v7048_v11  ;;  %v2661_v40 = vld [vmem:[#allocation3 + $0xb2] sm:$0xff] }
 0x3e9   : > { %3495 = vmatprep.mubr.f32.mxu1 %v2660_v42  ;;  %4926 = vmatpush1.bf16.msra.mxu1 %v6875_v53  ;;  %v2662_v62 = vld [vmem:[#allocation3 + $0xc2] sm:$0xff] }
 0x3ea   : > { %3756 = vmatmul.mubr.f32.gmra.mrb[134].mxu0 %v2700_v1  ;;  %4911 = vmatprep.subr.bf16.mxu1 %v5246_v38 }
 0x3eb   : > { %v7168_v27 = vpop.f32.mrb[66].mxu0  ;;  %3760 = vmatprep.mubr.f32.mxu0 %v6932_v18 }
 0x3ec   : > { %v3074_v28 = vpop.f32.mrb[67].mxu0  ;;  %3496 = vmatmul.mubr.f32.gmra.mrb[24].mxu1 %v7059_v23  ;;  %v2664_v23 = vld [vmem:[#allocation3 + $0xda] sm:$0xff] }
 0x3ed   : > { %3500 = vmatprep.mubr.f32.mxu1 %v2661_v40  ;;  %4927 = vmatpush1.bf16.msra.mxu1 %v6887_v34 }
 0x3ee   : > { %3761 = vmatmul.mubr.f32.gmra.mrb[136].mxu0 %v6941_v31  ;;  %4912 = vmatprep.subr.bf16.mxu1 %v5246_v38  ;;  %v2663_v31 = vld [vmem:[#allocation3 + $0xca] sm:$0xff] }
 0x3ef   : > { %v7175_v11 = vpop.f32.mrb[68].mxu0  ;;  %4611 = vmatprep.mubr.f32.mxu0 %v7055_v20 }
 0x3f0   : > { %v3079_v53 = vpop.f32.mrb[69].mxu0  ;;  %3501 = vmatmul.mubr.f32.gmra.mrb[26].mxu1 %v7070_v55 }
 0x3f1   : > { %3505 = vmatprep.mubr.f32.mxu1 %v2662_v62  ;;  %4928 = vmatpush1.bf16.msra.mxu1 %v6893_v29  ;;  %v2776_v53 = vld [vmem:[#allocation3 + $0x1a2] sm:$0xff] }
 0x3f2   : > { %4612 = vmatmul.mubr.f32.vlgmr.msra.gmra.mrb[138].mxu0 %v7066_v9  ;;  %4913 = vmatprep.subr.bf16.mxu1 %v5246_v38 }
 0x3f3   : > { %v7182_v34 = vpop.f32.mrb[70].mxu0  ;;  %4614 = vmatprep.mubr.f32.mxu0 %v7077_v0 }
 0x3f4   : > { %v3084_v18 = vpop.f32.mrb[71].mxu0  ;;  %3506 = vmatmul.mubr.f32.gmra.mrb[28].mxu1 %v7081_v30 }
 0x3f5   : > { %3510 = vmatprep.mubr.f32.mxu1 %v2663_v31  ;;  %4929 = vmatpush1.bf16.msra.mxu1 %v6903_v21  ;;  %v2703_v18 = vld [vmem:[#allocation3 + $0x138] sm:$0xff] }
 0x3f6   : > { %4615 = vmatmul.mubr.f32.gmra.mrb[140].mxu0 %v7088_v25  ;;  %4914 = vmatprep.subr.bf16.mxu1 %v5246_v38  ;;  %v2665_v38 = vld [vmem:[#allocation3 + $0xe2] sm:$0xff] }
 0x3f7   : > { %v7189_v29 = vpop.f32.mrb[72].mxu0  ;;  %4617 = vmatprep.mubr.f32.mxu0 %v7099_v22  ;;  %v2668_v22 = vld [vmem:[#allocation3 + $0x10a] sm:$0xff] }
 0x3f8   : > { %v3089_v20 = vpop.f32.mrb[73].mxu0  ;;  %3511 = vmatmul.mubr.f32.gmra.mrb[30].mxu1 %v7092_v48  ;;  %v2667_v48 = vld [vmem:[#allocation3 + $0xfa] sm:$0xff] }
 0x3f9   : > { %3515 = vmatprep.mubr.f32.mxu1 %v2664_v23  ;;  %4930 = vmatpush1.bf16.msra.mxu1 %v6912_v41  ;;  %v2666_v41 = vld [vmem:[#allocation3 + $0xf2] sm:$0xff] }
 0x3fa   : > { %4618 = vmatmul.mubr.f32.gmra.mrb[142].mxu0 %v7110_v56  ;;  %v2706_v20 = vld [vmem:[#allocation3 + $0x158] sm:$0xff] }
 0x3fb   : > { %v7195_v9 = vpop.f32.mrb[74].mxu0  ;;  %4620 = vmatprep.mubr.f32.mxu0 %v7121_v24 }
 0x3fc   : > { %v3094_v21 = vpop.f32.mrb[75].mxu0  ;;  %3516 = vmatmul.mubr.f32.gmra.mrb[32].mxu1 %v7103_v4 }
 0x3fd   : > { %3520 = vmatprep.mubr.f32.mxu1 %v2665_v38 }
 0x3fe   : > { %4621 = vmatmul.mubr.f32.gmra.mrb[144].mxu0 %v7132_v54  ;;  %v2670_v54 = vld [vmem:[#allocation3 + $0x122] sm:$0xff] }
 0x3ff   : > { %v7200_v55 = vpop.f32.mrb[76].mxu0  ;;  %4623 = vmatprep.mubr.f32.mxu0 %v7143_v12  ;;  %v2671_v12 = vld [vmem:[#allocation3 + $0x12a] sm:$0xff] }
 0x400   : > { %v3099_v0 = vpop.f32.mrb[77].mxu0  ;;  %3521 = vmatmul.mubr.f32.gmra.mrb[34].mxu1 %v7114_v15  ;;  %v2669_v15 = vld [vmem:[#allocation3 + $0x112] sm:$0xff] }
 0x401   : > { %3525 = vmatprep.mubr.f32.mxu1 %v2666_v41  ;;  %v2740_v0 = vld [vmem:[#allocation3 + $0x171] sm:$0xff] }
 0x402   : > { %4624 = vmatmul.mubr.f32.gmra.mrb[146].mxu0 %v7154_v33  ;;  %v2639_v33 = vld [vmem:[#allocation3 + $0x129] sm:$0xff] }
 0x403   : > { %v7205_v30 = vpop.f32.mrb[78].mxu0  ;;  %4626 = vmatprep.mubr.f32.mxu0 %v2660_v42  ;;  %v2643_v42 = vld [vmem:[#allocation3 + $0x159] sm:$0xff] }
 0x404   : > { %v3104_v25 = vpop.f32.mrb[79].mxu0  ;;  %3526 = vmatmul.mubr.f32.gmra.mrb[36].mxu1 %v7125_v7 }
 0x405   : > { %3530 = vmatprep.mubr.f32.mxu1 %v2667_v48  ;;  %v2744_v25 = vld [vmem:[#allocation3 + $0x1a1] sm:$0xff] }
 0x406   : > { %4627 = vmatmul.mubr.f32.gmra.mrb[148].mxu0 %v2661_v40  ;;  %v2642_v40 = vld [vmem:[#allocation3 + $0x151] sm:$0xff] }
 0x407   : > { %4629 = vmatprep.mubr.f32.mxu0 %v2662_v62 }
 0x408   : > { %3531 = vmatmul.mubr.f32.gmra.mrb[38].mxu1 %v7136_v36  ;;  %v2638_v36 = vld [vmem:[#allocation3 + $0x121] sm:$0xff] }
 0x409   : > { %3535 = vmatprep.mubr.f32.mxu1 %v2668_v22  ;;  %v7209_v4 = vpop.f32.mrb[80].mxu0 }
 0x40a   : > { %v3109_v56 = vpop.f32.mrb[81].mxu0  ;;  %4630 = vmatmul.mubr.f32.gmra.mrb[150].mxu0 %v2663_v31 }
 0x40b   : > { %4632 = vmatprep.mubr.f32.mxu0 %v2664_v23  ;;  %v2739_v23 = vld [vmem:[#allocation3 + $0x169] sm:$0xff] }
 0x40c   : > { %3536 = vmatmul.mubr.f32.gmra.mrb[40].mxu1 %v7147_v61  ;;  %v2640_v61 = vld [vmem:[#allocation3 + $0x139] sm:$0xff] }
 0x40d   : > { %3540 = vmatprep.mubr.f32.mxu1 %v2669_v15  ;;  %v7212_v24 = vpop.f32.mrb[82].mxu0 }
 0x40e   : > { %v3114_v7 = vpop.f32.mrb[83].mxu0  ;;  %4633 = vmatmul.mubr.f32.gmra.mrb[152].mxu0 %v2665_v38 }
 0x40f   : > { %4635 = vmatprep.mubr.f32.mxu0 %v2666_v41  ;;  %v2743_v41 = vld [vmem:[#allocation3 + $0x199] sm:$0xff] }
 0x410   : > { %3541 = vmatmul.mubr.f32.gmra.mrb[42].mxu1 %v7159_v35  ;;  %v2641_v35 = vld [vmem:[#allocation3 + $0x141] sm:$0xff] }
 0x411   : > { %3545 = vmatprep.mubr.f32.mxu1 %v2670_v54 }
 0x412   : > { %4636 = vmatmul.mubr.f32.gmra.mrb[154].mxu0 %v2667_v48  ;;  %v5137_v48 = vld [vmem:[#allocation3] sm:$0xff] }
 0x413   : > { %4638 = vmatprep.mubr.f32.mxu0 %v2668_v22 }
 0x414   : > { %3546 = vmatmul.mubr.f32.gmra.mrb[44].mxu1 %v2638_v36 }
 0x415   : > { %3550 = vmatprep.mubr.f32.mxu1 %v2671_v12 }
 0x416   : > { %4639 = vmatmul.mubr.f32.gmra.mrb[156].mxu0 %v2669_v15 }
 0x417   : > { %4641 = vmatprep.mubr.f32.mxu0 %v2670_v54 }
 0x418   : > { %3551 = vmatmul.mubr.f32.gmra.mrb[46].mxu1 %v2639_v33 }
 0x419   : > { %3555 = vmatprep.mubr.f32.mxu1 %v6957_v58 }
 0x41a   : > { %4642 = vmatmul.mubr.f32.gmra.mrb[158].mxu0 %v2671_v12 }
 0x41b   : > { %4644 = vmatprep.mubr.f32.mxu0 %v6957_v58  ;;  %v2773_v58 = vld [vmem:[#allocation3 + $0x182] sm:$0xff] }
 0x41c   : > { %3556 = vmatmul.mubr.f32.gmra.mrb[48].mxu1 %v2640_v61 }
 0x41d   : > { %3560 = vmatprep.mubr.f32.mxu1 %v6960_v52 }
 0x41e   : > { %4645 = vmatmul.mubr.f32.gmra.mrb[160].mxu0 %v6960_v52  ;;  %v2775_v52 = vld [vmem:[#allocation3 + $0x19a] sm:$0xff] }
 0x41f   : > { %4647 = vmatprep.mubr.f32.mxu0 %v6978_v51 }
 0x420   : > { %3561 = vmatmul.mubr.f32.gmra.mrb[50].mxu1 %v2641_v35 }
 0x421   : > { %3565 = vmatprep.mubr.f32.mxu1 %v6978_v51  ;;  %v2774_v51 = vld [vmem:[#allocation3 + $0x18a] sm:$0xff] }
 0x422   : > { %4648 = vmatmul.mubr.f32.gmra.mrb[162].mxu0 %v6986_v26 }
 0x423   : > { %4650 = vmatprep.mubr.f32.mxu0 %v7026_v44 }
 0x424   : > { %3566 = vmatmul.mubr.f32.gmra.mrb[52].mxu1 %v2642_v40 }
 0x425   : > { %3570 = vmatprep.mubr.f32.mxu1 %v6986_v26 }
 0x426   : > { %4651 = vmatmul.mubr.f32.gmra.mrb[164].mxu0 %v7037_v63 }
 0x427   : > { %4653 = vmatprep.mubr.f32.mxu0 %v2773_v58 }
 0x428   : > { %3571 = vmatmul.mubr.f32.gmra.mrb[54].mxu1 %v2643_v42 }
 0x429   : > { %3575 = vmatprep.mubr.f32.mxu1 %v7026_v44  ;;  %v7226_v1 = vpop.f32.mrb[84].mxu0  ;;  %v2702_v44 = vld [vmem:[#allocation3 + $0x128] sm:$0xff] }
 0x42a   : > { %v3119_v28 = vpop.f32.mrb[85].mxu0  ;;  %4654 = vmatmul.mubr.f32.gmra.mrb[166].mxu0 %v2774_v51 }
 0x42b   : > { %4656 = vmatprep.mubr.f32.mxu0 %v2775_v52 }
 0x42c   : > { %3576 = vmatmul.mubr.f32.gmra.mrb[56].mxu1 %v6969_v45  ;;  %v2704_v45 = vld [vmem:[#allocation3 + $0x140] sm:$0xff] }
 0x42d   : > { %3580 = vmatprep.mubr.f32.mxu1 %v7037_v63  ;;  %v7230_v26 = vpop.f32.mrb[86].mxu0  ;;  %v2705_v63 = vld [vmem:[#allocation3 + $0x150] sm:$0xff] }
 0x42e   : > { %v3124_v62 = vpop.f32.mrb[87].mxu0  ;;  %4657 = vmatmul.mubr.f32.gmra.mrb[168].mxu0 %v2776_v53 }
 0x430   : > { %3581 = vmatmul.mubr.f32.gmra.mrb[58].mxu1 %v6967_v8 }
 0x431   : > { %3585 = vmatprep.mubr.f32.mxu1 %v2773_v58 }
 0x434   : > { %3586 = vmatmul.mubr.f32.gmra.mrb[60].mxu1 %v7005_v2 }
 0x435   : > { %3590 = vmatprep.mubr.f32.mxu1 %v2774_v51 }
 0x438   : > { %3591 = vmatmul.mubr.f32.gmra.mrb[62].mxu1 %v7003_v3 }
 0x439   : > { %3765 = vmatprep.mubr.f32.mxu1 %v2639_v33 }
 0x43c   : > { %3766 = vmatmul.mubr.f32.vlgmr.msra.gmra.mrb[42].mxu1 %v2702_v44 }
 0x43d   : > { %3770 = vmatprep.mubr.f32.mxu1 %v2640_v61 }
 0x440   : > { %3771 = vmatmul.mubr.f32.gmra.mrb[44].mxu1 %v2703_v18 }
 0x441   : > { %3775 = vmatprep.mubr.f32.mxu1 %v2641_v35 }
 0x444   : > { %3776 = vmatmul.mubr.f32.gmra.mrb[46].mxu1 %v2704_v45 }
 0x445   : > { %3780 = vmatprep.mubr.f32.mxu1 %v2642_v40 }
 0x448   : > { %3781 = vmatmul.mubr.f32.gmra.mrb[48].mxu1 %v2705_v63 }
 0x449   : > { %3785 = vmatprep.mubr.f32.mxu1 %v2643_v42  ;;  %v7235_v8 = vpop.f32.mrb[88].mxu0 }
 0x44a   : > { %v3129_v31 = vpop.f32.mrb[89].mxu0 }
 0x44c   : > { %3786 = vmatmul.mubr.f32.gmra.mrb[50].mxu1 %v2706_v20 }
 0x44d   : > { %3790 = vmatprep.mubr.f32.mxu1 %v2739_v23  ;;  %v7237_v21 = vpop.f32.mrb[90].mxu0 }
 0x44e   : > { %v3134_v38 = vpop.f32.mrb[91].mxu0 }
 0x450   : > { %3791 = vmatmul.mubr.f32.gmra.mrb[52].mxu1 %v6974_v49 }
 0x451   : > { %3795 = vmatprep.mubr.f32.mxu1 %v2740_v0 }
 0x454   : > { %3796 = vmatmul.mubr.f32.gmra.mrb[54].mxu1 %v6982_v57 }
 0x455   : > { %3800 = vmatprep.mubr.f32.mxu1 %v7005_v2 }
 0x458   : > { %3801 = vmatmul.mubr.f32.gmra.mrb[56].mxu1 %v7021_v13 }
 0x459   : > { %3805 = vmatprep.mubr.f32.mxu1 %v7003_v3 }
 0x45c   : > { %3806 = vmatmul.mubr.f32.gmra.mrb[58].mxu1 %v7030_v59 }
 0x45d   : > { %3810 = vmatprep.mubr.f32.mxu1 %v2743_v41 }
 0x460   : > { %3811 = vmatmul.mubr.f32.gmra.mrb[60].mxu1 %v5137_v48 }
 0x461   : > { %3815 = vmatprep.mubr.f32.mxu1 %v2744_v25 }
 0x464   : > { %3816 = vmatmul.mubr.f32.gmra.mrb[62].mxu1 %v5137_v48 }
 0x469   : > { %v7245_v49 = vpop.f32.mrb[92].mxu0 }
 0x46a   : > { %v3139_v22 = vpop.f32.mrb[93].mxu0 }
 0x46d   : > { %v7247_v56 = vpop.f32.mrb[94].mxu0 }
 0x46e   : > { %v3144_v57 = vpop.f32.mrb[95].mxu0 }
 0x471   : > { %v3662_v2 = vpop.f32.mrb[96].mxu0 }
 0x472   : > { %v3664_v15 = vpop.f32.mrb[97].mxu0 }
 0x475   : > { %v3667_v13 = vpop.f32.mrb[98].mxu0 }
 0x476   : > { %v3669_v7 = vpop.f32.mrb[99].mxu0 }
 0x479   : > { %v3672_v3 = vpop.f32.mrb[100].mxu0 }
 0x47a   : > { %v3674_v54 = vpop.f32.mrb[101].mxu0 }
 0x47d   : > { %v3677_v36 = vpop.f32.mrb[102].mxu0 }
 0x47e   : > { %v3679_v59 = vpop.f32.mrb[103].mxu0 }
 0x481   : > { %v3682_v12 = vpop.f32.mrb[104].mxu0 }
 0x482   : > { %v3684_v33 = vpop.f32.mrb[105].mxu0 }
 0x485   : > { %v3687_v61 = vpop.f32.mrb[106].mxu0 }
 0x486   : > { %v3689_v35 = vpop.f32.mrb[107].mxu0 }
 0x489   : > { %v3692_v40 = vpop.f32.mrb[108].mxu0 }
 0x48a   : > { %v3694_v58 = vpop.f32.mrb[109].mxu0 }
 0x48d   : > { %v3697_v42 = vpop.f32.mrb[110].mxu0 }
 0x48e   : > { %v3699_v52 = vpop.f32.mrb[111].mxu0 }
 0x48f   : > { %v3437_v51 = vpop.f32.mrb[0].mxu1 }
 0x490   : > { %v4931_v28 = vadd.f32 %v3437_v51, %v7001_v32  ;;  %v3439_v53 = vpop.f32.mrb[1].mxu1 }
 0x491   : > { %v3702_v62 = vpop.f32.mrb[112].mxu0 }
 0x492   : > { %v3704_v44 = vpop.f32.mrb[113].mxu0  ;;  %v7250_v18 = vadd.f32 %v4931_v28, %v3662_v2 }
 0x493   : > { %v3442_v45 = vpop.f32.mrb[2].mxu1 }
 0x494   : > { %v4933_v63 = vadd.f32 %v3442_v45, %v7012_v17  ;;  %v3444_v31 = vpop.f32.mrb[3].mxu1 }
 0x495   : > { %v3707_v20 = vpop.f32.mrb[114].mxu0 }
 0x496   : > { %v3709_v23 = vpop.f32.mrb[115].mxu0  ;;  %v7253_v38 = vadd.f32 %v4933_v63, %v3667_v13 }
 0x497   : > { %v3447_v0 = vpop.f32.mrb[4].mxu1 }
 0x498   : > { %v4935_v41 = vadd.f32 %v3447_v0, %v7016_v5  ;;  %v3449_v25 = vpop.f32.mrb[5].mxu1 }
 0x499   : > { %v3712_v48 = vpop.f32.mrb[116].mxu0 }
 0x49a   : > { %v3714_v22 = vpop.f32.mrb[117].mxu0  ;;  %v7256_v32 = vadd.f32 %v4935_v41, %v3672_v3 }
 0x49b   : > { %v3452_v57 = vpop.f32.mrb[6].mxu1 }
 0x49c   : > { %v4937_v2 = vadd.f32 %v3452_v57, %v7023_v6  ;;  %v3454_v15 = vpop.f32.mrb[7].mxu1 }
 0x49d   : > { %v3717_v7 = vpop.f32.mrb[118].mxu0 }
 0x49e   : > { %v3719_v54 = vpop.f32.mrb[119].mxu0  ;;  %v7259_v17 = vadd.f32 %v4937_v2, %v3677_v36 }
 0x49f   : > { %v3457_v59 = vpop.f32.mrb[8].mxu1 }
 0x4a0   : > { %v4939_v13 = vadd.f32 %v3457_v59, %v7035_v37  ;;  %v3459_v33 = vpop.f32.mrb[9].mxu1 }
 0x4a1   : > { %v3722_v35 = vpop.f32.mrb[120].mxu0 }
 0x4a2   : > { %v3724_v58 = vpop.f32.mrb[121].mxu0  ;;  %v7262_v5 = vadd.f32 %v4939_v13, %v3682_v12 }
 0x4a3   : > { %v3462_v52 = vpop.f32.mrb[10].mxu1 }
 0x4a4   : > { %v4941_v3 = vadd.f32 %v3462_v52, %v7043_v10  ;;  %v3464_v51 = vpop.f32.mrb[11].mxu1 }
 0x4a5   : > { %v3727_v28 = vpop.f32.mrb[122].mxu0 }
 0x4a6   : > { %v3729_v53 = vpop.f32.mrb[123].mxu0  ;;  %v7265_v6 = vadd.f32 %v4941_v3, %v3687_v61 }
 0x4a7   : > { %v3467_v44 = vpop.f32.mrb[12].mxu1 }
 0x4a8   : > { %v4943_v36 = vadd.f32 %v3467_v44, %v7051_v39  ;;  %v3469_v45 = vpop.f32.mrb[13].mxu1 }
 0x4a9   : > { %v7268_v63 = vpop.f32.mrb[124].mxu0 }
 0x4aa   : > { %v3734_v37 = vpop.f32.mrb[125].mxu0  ;;  %v7270_v31 = vadd.f32 %v4943_v36, %v3692_v40 }
 0x4ab   : > { %v3472_v23 = vpop.f32.mrb[14].mxu1 }
 0x4ac   : > { %v4945_v12 = vadd.f32 %v3472_v23, %v7062_v50  ;;  %v3474_v0 = vpop.f32.mrb[15].mxu1 }
 0x4ad   : > { %v7273_v41 = vpop.f32.mrb[126].mxu0 }
 0x4ae   : > { %v3739_v10 = vpop.f32.mrb[127].mxu0  ;;  %v7275_v25 = vadd.f32 %v4945_v12, %v3697_v42 }
 0x4af   : > { %v3477_v61 = vpop.f32.mrb[16].mxu1 }
 0x4b0   : > { %v4947_v22 = vadd.f32 %v3477_v61, %v7073_v16  ;;  %v3479_v57 = vpop.f32.mrb[17].mxu1 }
 0x4b1   : > { %v7278_v39 = vpop.f32.mrb[128].mxu0 }
 0x4b2   : > { %v3744_v2 = vpop.f32.mrb[129].mxu0  ;;  %v7280_v15 = vadd.f32 %v4947_v22, %v3702_v62  ;;  %v4125_v22 = vld [vmem:[%s5491_s19 + $0x8] sm:$0xff] }
 0x4b3   : > { %v3482_v40 = vpop.f32.mrb[18].mxu1 }
 0x4b4   : > { %v4949_v54 = vadd.f32 %v3482_v40, %v7084_v46  ;;  %v3484_v59 = vpop.f32.mrb[19].mxu1 }
 0x4b5   : > { %v7283_v50 = vpop.f32.mrb[130].mxu0 }
 0x4b6   : > { %v3749_v13 = vpop.f32.mrb[131].mxu0  ;;  %v7285_v33 = vadd.f32 %v4949_v54, %v3707_v20  ;;  %v4124_v54 = vld [vmem:[%s5491_s19] sm:$0xff] }
 0x4b7   : > { %v3487_v42 = vpop.f32.mrb[20].mxu1  ;;  %v7633_v13 = vld [vmem:[#allocation10_spill] sm:$0xff] }
 0x4b8   : > { %v4951_v58 = vadd.f32 %v3487_v42, %v7095_v60  ;;  %v3489_v52 = vpop.f32.mrb[21].mxu1 }
 0x4b9   : > { %v7288_v16 = vpop.f32.mrb[132].mxu0 }
 0x4ba   : > { %v3754_v3 = vpop.f32.mrb[133].mxu0  ;;  %v7290_v51 = vadd.f32 %v4951_v58, %v3712_v48 }
 0x4bb   : > { %v3492_v62 = vpop.f32.mrb[22].mxu1 }
 0x4bc   : > { %v4953_v53 = vadd.f32 %v3492_v62, %v7106_v19  ;;  %v3494_v44 = vpop.f32.mrb[23].mxu1  ;;  %v4156_v62 = vsel %vm292_vm0, %v4124_v54, 0.0  ;;  %v4129_v54 = vld [vmem:[%s5491_s19 + $0x28] sm:$0xff] }
 0x4bd   : > { %v7293_v46 = vpop.f32.mrb[134].mxu0 }
 0x4be   : > { %v3759_v36 = vpop.f32.mrb[135].mxu0  ;;  %v7295_v45 = vadd.f32 %v4953_v53, %v3717_v7  ;;  %v7306_v7 = vld [vmem:[%s7610_s5] ss:$0 sm:$0xff]  ;;  %v4127_v53 = vld [vmem:[%s5491_s19 + $0x18] sm:$0xff] }
 0x4bf   : > { %v3497_v20 = vpop.f32.mrb[24].mxu1  ;;  %v4126_v36 = vld [vmem:[%s5491_s19 + $0x10] sm:$0xff] }
 0x4c0   : > { %v4955_v60 = vadd.f32 %v3497_v20, %v7117_v47  ;;  %v3499_v37 = vpop.f32.mrb[25].mxu1 }
 0x4c1   : > { %v7298_v23 = vpop.f32.mrb[136].mxu0 }
 0x4c2   : > { %v3764_v48 = vpop.f32.mrb[137].mxu0  ;;  %v7300_v12 = vadd.f32 %v4955_v60, %v3722_v35 }
 0x4c3   : > { %v3502_v0 = vpop.f32.mrb[26].mxu1 }
 0x4c4   : > { %v4957_v19 = vadd.f32 %v3502_v0, %v7128_v14  ;;  %v3504_v10 = vpop.f32.mrb[27].mxu1  ;;  %v7316_v14 = vld [vmem:[%s7611_s6] ss:$0 sm:$0xff] }
 0x4c5   : > { %v4613_v61 = vpop.f32.mrb[138].mxu0 }
 0x4c6   : > { %v3893_v47 = vadd.f32 %v7253_v38, %v4613_v61  ;;  %v3887_v57 = vpop.f32.mrb[139].mxu0  ;;  %v7310_v2 = vadd.f32 %v4957_v19, %v3727_v28  ;;  %v4157_v28 = vsel %vm292_vm0, %v4125_v22, 0.0  ;;  %v4158_v22 = vsel %vm292_vm0, %v4126_v36, 0.0 }
 0x4c7   : > { %v3507_v35 = vpop.f32.mrb[28].mxu1  ;;  %v3888_v40 = vadd.f32 %v7250_v18, %v3887_v57 }
 0x4c8   : > { %v4054_v59 = vmul.f32 %v7306_v7, %v3893_v47  ;;  %v4959_v38 = vadd.f32 %v3507_v35, %v7633_v13  ;;  %v3509_v42 = vpop.f32.mrb[29].mxu1  ;;  %v4159_v47 = vsel %vm292_vm0, %v4127_v53, 0.0  ;;  %v4128_v13 = vld [vmem:[%s5491_s19 + $0x20] sm:$0xff]  ;;  %v4161_v53 = vsel %vm292_vm0, %v4129_v54, 0.0 }
 0x4c9   : > { %v4053_v58 = vmul.f32 %v7306_v7, %v3888_v40  ;;  %v4616_v52 = vpop.f32.mrb[140].mxu0 }
 0x4ca   : > { %v4093_v3 = vadd.f32 %v7316_v14, %v4054_v59  ;;  %v3903_v18 = vadd.f32 %v7259_v17, %v4616_v52  ;;  %v3897_v44 = vpop.f32.mrb[141].mxu0  ;;  %v7334_v20 = vadd.f32 %v4959_v38, %v7268_v63 }
 0x4cb   : > { %v4092_v60 = vadd.f32 %v7316_v14, %v4053_v58  ;;  %v3512_v37 = vpop.f32.mrb[30].mxu1  ;;  %v3898_v48 = vadd.f32 %v7256_v32, %v3897_v44  ;;  %v4160_v44 = vsel %vm292_vm0, %v4128_v13, 0.0 }
 0x4cc   : > { %v4189_v0 = vadd.f32 %v4157_v28, %v4093_v3  ;;  %v4056_v19 = vmul.f32 %v7306_v7, %v3903_v18  ;;  %v4961_v10 = vadd.f32 %v3512_v37, %v7150_v43  ;;  %v3514_v61 = vpop.f32.mrb[31].mxu1  ;;  %v7634_v3 = vld [vmem:[#allocation11_spill] sm:$0xff] }
 0x4cd   : > { %v4188_v17 = vadd.f32 %v4156_v62, %v4092_v60  ;;  %v4055_v63 = vmul.f32 %v7306_v7, %v3898_v48  ;;  %v4619_v57 = vpop.f32.mrb[142].mxu0 }
 0x4ce   : > { %v4221_v35 = vmax.f32 %v4189_v0, 0.0  ;;  %v4095_v40 = vadd.f32 %v7316_v14, %v4056_v19  ;;  %v3913_v32 = vadd.f32 %v7265_v6, %v4619_v57  ;;  %v3907_v59 = vpop.f32.mrb[143].mxu0  ;;  %v7348_v43 = vadd.f32 %v4961_v10, %v7273_v41  ;;  %v4131_v0 = vld [vmem:[%s5491_s19 + $0x38] sm:$0xff]  ;;  %v4130_v10 = vld [vmem:[%s5491_s19 + $0x30] sm:$0xff] }
 0x4cf   : > { %v4220_v38 = vmax.f32 %v4188_v17, 0.0  ;;  %v4094_v42 = vadd.f32 %v7316_v14, %v4055_v63  ;;  %v3517_v28 = vpop.f32.mrb[32].mxu1  ;;  %v3908_v58 = vadd.f32 %v7262_v5, %v3907_v59  ;;  %v4162_v59 = vsel %vm292_vm0, %v4130_v10, 0.0 }
 0x4d0   : > { %4253 = vst [vmem:[%s7353_s13 + $0x8] sm:$0xff] %v4221_v35  ;;  %v4191_v6 = vadd.f32 %v4159_v47, %v4095_v40  ;;  %v4058_v52 = vmul.f32 %v7306_v7, %v3913_v32  ;;  %v4963_v62 = vadd.f32 %v3517_v28, %v7634_v3  ;;  %v3519_v41 = vpop.f32.mrb[33].mxu1  ;;  %v4133_v28 = vld [vmem:[%s5491_s19 + $0x48] sm:$0xff] }
 0x4d1   : > { %4252 = vst [vmem:[%s7353_s13] sm:$0xff] %v4220_v38  ;;  %v4190_v18 = vadd.f32 %v4158_v22, %v4094_v42  ;;  %v4057_v5 = vmul.f32 %v7306_v7, %v3908_v58  ;;  %v4622_v36 = vpop.f32.mrb[144].mxu0 }
 0x4d2   : > { %v4223_v60 = vmax.f32 %v4191_v6, 0.0  ;;  %v4097_v37 = vadd.f32 %v7316_v14, %v4058_v52  ;;  %v3923_v48 = vadd.f32 %v7275_v25, %v4622_v36  ;;  %v3917_v19 = vpop.f32.mrb[145].mxu0  ;;  %v7367_v61 = vadd.f32 %v4963_v62, %v7278_v39 }
 0x4d3   : > { %v4222_v17 = vmax.f32 %v4190_v18, 0.0  ;;  %v4096_v47 = vadd.f32 %v7316_v14, %v4057_v5  ;;  %v3522_v63 = vpop.f32.mrb[34].mxu1  ;;  %v3918_v22 = vadd.f32 %v7270_v31, %v3917_v19  ;;  %v4163_v39 = vsel %vm292_vm0, %v4131_v0, 0.0  ;;  %v4135_v19 = vld [vmem:[%s5491_s19 + $0x58] sm:$0xff] }
 0x4d4   : > { %4255 = vst [vmem:[%s7353_s13 + $0x18] sm:$0xff] %v4223_v60  ;;  %v4193_v57 = vadd.f32 %v4161_v53, %v4097_v37  ;;  %v4060_v35 = vmul.f32 %v7306_v7, %v3923_v48  ;;  %v4965_v25 = vadd.f32 %v3522_v63, %v7168_v27  ;;  %v3524_v40 = vpop.f32.mrb[35].mxu1  ;;  %v4132_v27 = vld [vmem:[%s5491_s19 + $0x40] sm:$0xff] }
 0x4d5   : > { %4254 = vst [vmem:[%s7353_s13 + $0x10] sm:$0xff] %v4222_v17  ;;  %v4192_v32 = vadd.f32 %v4160_v44, %v4096_v47  ;;  %v4059_v54 = vmul.f32 %v7306_v7, %v3918_v22  ;;  %v4625_v13 = vpop.f32.mrb[146].mxu0  ;;  %v4164_v60 = vsel %vm292_vm0, %v4132_v27, 0.0 }
 0x4d6   : > { %v4225_v38 = vmax.f32 %v4193_v57, 0.0  ;;  %v4099_v31 = vadd.f32 %v7316_v14, %v4060_v35  ;;  %v3933_v42 = vadd.f32 %v7285_v33, %v4625_v13  ;;  %v3927_v58 = vpop.f32.mrb[147].mxu0  ;;  %v7383_v6 = vadd.f32 %v4965_v25, %v7283_v50 }
 0x4d7   : > { %v4224_v52 = vmax.f32 %v4192_v32, 0.0  ;;  %v4098_v3 = vadd.f32 %v7316_v14, %v4059_v54  ;;  %v3527_v62 = vpop.f32.mrb[36].mxu1  ;;  %v3928_v41 = vadd.f32 %v7280_v15, %v3927_v58  ;;  %v4165_v50 = vsel %vm292_vm0, %v4133_v28, 0.0 }
 0x4d8   : > { %4257 = vst [vmem:[%s7353_s13 + $0x28] sm:$0xff] %v4225_v38  ;;  %v4195_v18 = vadd.f32 %v4163_v39, %v4099_v31  ;;  %v4062_v53 = vmul.f32 %v7306_v7, %v3933_v42  ;;  %v4967_v33 = vadd.f32 %v3527_v62, %v7175_v11  ;;  %v3529_v5 = vpop.f32.mrb[37].mxu1  ;;  %v4134_v11 = vld [vmem:[%s5491_s19 + $0x50] sm:$0xff]  ;;  %v4137_v31 = vld [vmem:[%s5491_s19 + $0x68] sm:$0xff] }
 0x4d9   : > { %4256 = vst [vmem:[%s7353_s13 + $0x20] sm:$0xff] %v4224_v52  ;;  %v4194_v44 = vadd.f32 %v4162_v59, %v4098_v3  ;;  %v4061_v36 = vmul.f32 %v7306_v7, %v3928_v41  ;;  %v4628_v37 = vpop.f32.mrb[148].mxu0  ;;  %v4166_v54 = vsel %vm292_vm0, %v4134_v11, 0.0 }
 0x4da   : > { %v4227_v48 = vmax.f32 %v4195_v18, 0.0  ;;  %v4101_v15 = vadd.f32 %v7316_v14, %v4062_v53  ;;  %v3943_v0 = vadd.f32 %v7295_v45, %v4628_v37  ;;  %v3937_v10 = vpop.f32.mrb[149].mxu0  ;;  %v7399_v17 = vadd.f32 %v4967_v33, %v7288_v16 }
 0x4db   : > { %v4226_v47 = vmax.f32 %v4194_v44, 0.0  ;;  %v4100_v63 = vadd.f32 %v7316_v14, %v4061_v36  ;;  %v3532_v22 = vpop.f32.mrb[38].mxu1  ;;  %v3938_v57 = vadd.f32 %v7290_v51, %v3937_v10  ;;  %v4167_v16 = vsel %vm292_vm0, %v4135_v19, 0.0  ;;  %v4138_v19 = vld [vmem:[%s5491_s19 + $0x70] sm:$0xff] }
 0x4dc   : > { %4259 = vst [vmem:[%s7353_s13 + $0x38] sm:$0xff] %v4227_v48  ;;  %v4197_v35 = vadd.f32 %v4165_v50, %v4101_v15  ;;  %v4064_v25 = vmul.f32 %v7306_v7, %v3943_v0  ;;  %v4969_v45 = vadd.f32 %v3532_v22, %v7182_v34  ;;  %v3534_v40 = vpop.f32.mrb[39].mxu1  ;;  %v4136_v34 = vld [vmem:[%s5491_s19 + $0x60] sm:$0xff] }
 0x4dd   : > { %4258 = vst [vmem:[%s7353_s13 + $0x30] sm:$0xff] %v4226_v47  ;;  %v4196_v32 = vadd.f32 %v4164_v60, %v4100_v63  ;;  %v4063_v39 = vmul.f32 %v7306_v7, %v3938_v57  ;;  %v4631_v59 = vpop.f32.mrb[150].mxu0  ;;  %v4168_v5 = vsel %vm292_vm0, %v4136_v34, 0.0  ;;  %v4139_v60 = vld [vmem:[%s5491_s19 + $0x78] sm:$0xff] }
 0x4de   : > { %v4229_v13 = vmax.f32 %v4197_v35, 0.0  ;;  %v4103_v51 = vadd.f32 %v7316_v14, %v4064_v25  ;;  %v3953_v38 = vadd.f32 %v7310_v2, %v4631_v59  ;;  %v3947_v42 = vpop.f32.mrb[151].mxu0  ;;  %v4970_v28 = vadd.f32 %v4969_v45, %v7293_v46  ;;  %v4141_v25 = vld [vmem:[%s5491_s19 + $0x88] sm:$0xff] }
 0x4df   : > { %v4228_v58 = vmax.f32 %v4196_v32, 0.0  ;;  %v4102_v27 = vadd.f32 %v7316_v14, %v4063_v39  ;;  %v3537_v52 = vpop.f32.mrb[40].mxu1  ;;  %v3948_v3 = vadd.f32 %v7300_v12, %v3947_v42  ;;  %v4169_v46 = vsel %vm292_vm0, %v4137_v31, 0.0  ;;  %v4140_v39 = vld [vmem:[%s5491_s19 + $0x80] sm:$0xff] }
 0x4e0   : > { %4261 = vst [vmem:[%s7353_s13 + $0x48] sm:$0xff] %v4229_v13  ;;  %v4199_v62 = vadd.f32 %v4167_v16, %v4103_v51  ;;  %v4066_v41 = vmul.f32 %v7306_v7, %v3953_v38  ;;  %v4971_v18 = vadd.f32 %v3537_v52, %v7189_v29  ;;  %v3539_v53 = vpop.f32.mrb[41].mxu1  ;;  %v4173_v51 = vsel %vm292_vm0, %v4141_v25, 0.0 }
 0x4e1   : > { %4260 = vst [vmem:[%s7353_s13 + $0x40] sm:$0xff] %v4228_v58  ;;  %v4198_v2 = vadd.f32 %v4166_v54, %v4102_v27  ;;  %v4065_v33 = vmul.f32 %v7306_v7, %v3948_v3  ;;  %v4634_v44 = vpop.f32.mrb[152].mxu0  ;;  %v4143_v58 = vld [vmem:[%s5491_s19 + $0x98] sm:$0xff] }
 0x4e2   : > { %v4231_v12 = vmax.f32 %v4199_v62, 0.0  ;;  %v4105_v50 = vadd.f32 %v7316_v14, %v4066_v41  ;;  %v3963_v36 = vadd.f32 %v7348_v43, %v4634_v44  ;;  %v3957_v29 = vpop.f32.mrb[153].mxu0  ;;  %v4972_v37 = vadd.f32 %v4971_v18, %v7298_v23  ;;  %v4142_v41 = vld [vmem:[%s5491_s19 + $0x90] sm:$0xff] }
 0x4e3   : > { %v4230_v48 = vmax.f32 %v4198_v2, 0.0  ;;  %v4104_v15 = vadd.f32 %v7316_v14, %v4065_v33  ;;  %v3958_v0 = vadd.f32 %v7334_v20, %v3957_v29  ;;  %v4171_v43 = vsel %vm292_vm0, %v4139_v60, 0.0  ;;  %v4144_v29 = vld [vmem:[%s5491_s19 + $0xa0] sm:$0xff] }
 0x4e4   : > { %4263 = vst [vmem:[%s7353_s13 + $0x58] sm:$0xff] %v4231_v12  ;;  %v4201_v10 = vadd.f32 %v4169_v46, %v4105_v50  ;;  %v4068_v11 = vmul.f32 %v7306_v7, %v3963_v36  ;;  %v4170_v20 = vsel %vm292_vm0, %v4138_v19, 0.0  ;;  %v4175_v46 = vsel %vm292_vm0, %v4143_v58, 0.0  ;;  %v4146_v58 = vld [vmem:[%s5491_s19 + $0xb0] sm:$0xff] }
 0x4e5   : > { %4262 = vst [vmem:[%s7353_s13 + $0x50] sm:$0xff] %v4230_v48  ;;  %v4200_v47 = vadd.f32 %v4168_v5, %v4104_v15  ;;  %v4067_v23 = vmul.f32 %v7306_v7, %v3958_v0  ;;  %v4637_v63 = vpop.f32.mrb[154].mxu0 }
 0x4e6   : > { %v4233_v22 = vmax.f32 %v4201_v10, 0.0  ;;  %v4107_v57 = vadd.f32 %v7316_v14, %v4068_v11  ;;  %v3973_v35 = vadd.f32 %v7383_v6, %v4637_v63  ;;  %v3967_v45 = vpop.f32.mrb[155].mxu0  ;;  %v4176_v11 = vsel %vm292_vm0, %v4144_v29, 0.0 }
 0x4e7   : > { %v4232_v40 = vmax.f32 %v4200_v47, 0.0  ;;  %v4106_v32 = vadd.f32 %v7316_v14, %v4067_v23  ;;  %v3968_v16 = vadd.f32 %v7367_v61, %v3967_v45  ;;  %v4172_v61 = vsel %vm292_vm0, %v4140_v39, 0.0 }
 0x4e8   : > { %4265 = vst [vmem:[%s7353_s13 + $0x68] sm:$0xff] %v4233_v22  ;;  %v4203_v54 = vadd.f32 %v4171_v43, %v4107_v57  ;;  %v4070_v59 = vmul.f32 %v7306_v7, %v3973_v35 }
 0x4e9   : > { %4264 = vst [vmem:[%s7353_s13 + $0x60] sm:$0xff] %v4232_v40  ;;  %v4202_v13 = vadd.f32 %v4170_v20, %v4106_v32  ;;  %v4069_v6 = vmul.f32 %v7306_v7, %v3968_v16  ;;  %v4640_v38 = vpop.f32.mrb[156].mxu0 }
 0x4ea   : > { %v4235_v31 = vmax.f32 %v4203_v54, 0.0  ;;  %v4109_v42 = vadd.f32 %v7316_v14, %v4070_v59  ;;  %v3983_v34 = vadd.f32 %v4970_v28, %v4640_v38  ;;  %v3977_v27 = vpop.f32.mrb[157].mxu0 }
 0x4eb   : > { %v4234_v52 = vmax.f32 %v4202_v13, 0.0  ;;  %v4108_v3 = vadd.f32 %v7316_v14, %v4069_v6  ;;  %v3978_v62 = vadd.f32 %v7399_v17, %v3977_v27  ;;  %v4174_v17 = vsel %vm292_vm0, %v4142_v41, 0.0  ;;  %v4145_v13 = vld [vmem:[%s5491_s19 + $0xa8] sm:$0xff] }
 0x4ec   : > { %4267 = vst [vmem:[%s7353_s13 + $0x78] sm:$0xff] %v4235_v31  ;;  %v4205_v18 = vadd.f32 %v4173_v51, %v4109_v42  ;;  %v4072_v53 = vmul.f32 %v7306_v7, %v3983_v34  ;;  %v4177_v42 = vsel %vm292_vm0, %v4145_v13, 0.0  ;;  %v4178_v41 = vsel %vm292_vm0, %v4146_v58, 0.0 }
 0x4ed   : > { %4266 = vst [vmem:[%s7353_s13 + $0x70] sm:$0xff] %v4234_v52  ;;  %v4204_v2 = vadd.f32 %v4172_v61, %v4108_v3  ;;  %v4071_v28 = vmul.f32 %v7306_v7, %v3978_v62  ;;  %v4643_v33 = vpop.f32.mrb[158].mxu0 }
 0x4ee   : > { %v4237_v5 = vmax.f32 %v4205_v18, 0.0  ;;  %v4111_v44 = vadd.f32 %v7316_v14, %v4072_v53  ;;  %v3987_v12 = vpop.f32.mrb[159].mxu0 }
 0x4ef   : > { %v4236_v50 = vmax.f32 %v4204_v2, 0.0  ;;  %v4110_v36 = vadd.f32 %v7316_v14, %v4071_v28  ;;  %v3988_v60 = vadd.f32 %v4972_v37, %v3987_v12  ;;  %v4147_v2 = vld [vmem:[%s5491_s19 + $0xb8] sm:$0xff] }
 0x4f0   : > { %4269 = vst [vmem:[%s7353_s13 + $0x88] sm:$0xff] %v4237_v5  ;;  %v4207_v48 = vadd.f32 %v4175_v46, %v4111_v44 }
 0x4f1   : > { %4268 = vst [vmem:[%s7353_s13 + $0x80] sm:$0xff] %v4236_v50  ;;  %v4206_v15 = vadd.f32 %v4174_v17, %v4110_v36  ;;  %v4073_v0 = vmul.f32 %v7306_v7, %v3988_v60  ;;  %v4646_v19 = vpop.f32.mrb[160].mxu0  ;;  %v4148_v36 = vld [vmem:[%s5491_s19 + $0xc0] sm:$0xff] }
 0x4f2   : > { %v4239_v10 = vmax.f32 %v4207_v48, 0.0  ;;  %v3997_v47 = vpop.f32.mrb[161].mxu0 }
 0x4f3   : > { %v4238_v43 = vmax.f32 %v4206_v15, 0.0  ;;  %v4112_v23 = vadd.f32 %v7316_v14, %v4073_v0 }
 0x4f4   : > { %4271 = vst [vmem:[%s7353_s13 + $0x98] sm:$0xff] %v4239_v10 }
 0x4f5   : > { %4270 = vst [vmem:[%s7353_s13 + $0x90] sm:$0xff] %v4238_v43  ;;  %v4208_v37 = vadd.f32 %v4176_v11, %v4112_v23  ;;  %v4649_v63 = vpop.f32.mrb[162].mxu0 }
 0x4f6   : > { %v4007_v22 = vpop.f32.mrb[163].mxu0 }
 0x4f7   : > { %v4240_v57 = vmax.f32 %v4208_v37, 0.0 }
 0x4f9   : > { %4272 = vst [vmem:[%s7353_s13 + $0xa0] sm:$0xff] %v4240_v57  ;;  %v7471_v20 = vpop.f32.mrb[164].mxu0 }
 0x4fa   : > { %v4017_v35 = vpop.f32.mrb[165].mxu0 }
 0x4fd   : > { %v7473_v25 = vpop.f32.mrb[166].mxu0 }
 0x4fe   : > { %v7475_v45 = vpop.f32.mrb[167].mxu0 }
 0x501   : > { %v7477_v40 = vpop.f32.mrb[168].mxu0 }
 0x502   : > { %v7479_v32 = vpop.f32.mrb[169].mxu0 }
 0x50f   : > { %v3767_v16 = vpop.f32.mrb[42].mxu1 }
 0x510   : > { %v4973_v39 = vadd.f32 %v3767_v16, %v7195_v9  ;;  %v3769_v54 = vpop.f32.mrb[43].mxu1 }
 0x512   : > { %v3993_v59 = vadd.f32 %v4973_v39, %v4643_v33 }
 0x513   : > { %v3772_v51 = vpop.f32.mrb[44].mxu1 }
 0x514   : > { %v4074_v6 = vmul.f32 %v7306_v7, %v3993_v59  ;;  %v4974_v38 = vadd.f32 %v3772_v51, %v7200_v55  ;;  %v3774_v31 = vpop.f32.mrb[45].mxu1  ;;  %v4150_v59 = vld [vmem:[%s5491_s19 + $0xd0] sm:$0xff] }
 0x516   : > { %v4113_v61 = vadd.f32 %v7316_v14, %v4074_v6  ;;  %v3998_v34 = vadd.f32 %v4974_v38, %v3997_v47  ;;  %v4149_v47 = vld [vmem:[%s5491_s19 + $0xc8] sm:$0xff] }
 0x517   : > { %v3777_v27 = vpop.f32.mrb[46].mxu1 }
 0x518   : > { %v4209_v52 = vadd.f32 %v4177_v42, %v4113_v61  ;;  %v4075_v9 = vmul.f32 %v7306_v7, %v3998_v34  ;;  %v4975_v3 = vadd.f32 %v3777_v27, %v7205_v30  ;;  %v3779_v62 = vpop.f32.mrb[47].mxu1  ;;  %v4179_v30 = vsel %vm292_vm0, %v4147_v2, 0.0  ;;  %v4151_v34 = vld [vmem:[%s5491_s19 + $0xd8] sm:$0xff] }
 0x51a   : > { %v4241_v18 = vmax.f32 %v4209_v52, 0.0  ;;  %v4114_v55 = vadd.f32 %v7316_v14, %v4075_v9  ;;  %v4003_v53 = vadd.f32 %v4975_v3, %v4646_v19 }
 0x51b   : > { %v3782_v46 = vpop.f32.mrb[48].mxu1 }
 0x51c   : > { %4273 = vst [vmem:[%s7353_s13 + $0xa8] sm:$0xff] %v4241_v18  ;;  %v4210_v28 = vadd.f32 %v4178_v41, %v4114_v55  ;;  %v4076_v33 = vmul.f32 %v7306_v7, %v4003_v53  ;;  %v4976_v5 = vadd.f32 %v3782_v46, %v7209_v4  ;;  %v3784_v44 = vpop.f32.mrb[49].mxu1  ;;  %v4180_v4 = vsel %vm292_vm0, %v4148_v36, 0.0  ;;  %v4152_v18 = vld [vmem:[%s5491_s19 + $0xe0] sm:$0xff] }
 0x51d   : > { %v4153_v44 = vld [vmem:[%s5491_s19 + $0xe8] sm:$0xff] }
 0x51e   : > { %v4242_v17 = vmax.f32 %v4210_v28, 0.0  ;;  %v4115_v12 = vadd.f32 %v7316_v14, %v4076_v33  ;;  %v4008_v50 = vadd.f32 %v4976_v5, %v4007_v22 }
 0x51f   : > { %v3787_v60 = vpop.f32.mrb[50].mxu1 }
 0x520   : > { %4274 = vst [vmem:[%s7353_s13 + $0xb0] sm:$0xff] %v4242_v17  ;;  %v4211_v29 = vadd.f32 %v4179_v30, %v4115_v12  ;;  %v4077_v48 = vmul.f32 %v7306_v7, %v4008_v50  ;;  %v4977_v15 = vadd.f32 %v3787_v60, %v7212_v24  ;;  %v3789_v0 = vpop.f32.mrb[51].mxu1  ;;  %v4181_v24 = vsel %vm292_vm0, %v4149_v47, 0.0  ;;  %v4155_v47 = vld [vmem:[%s5491_s19 + $0xf8] sm:$0xff] }
 0x522   : > { %v4243_v19 = vmax.f32 %v4211_v29, 0.0  ;;  %v4116_v10 = vadd.f32 %v7316_v14, %v4077_v48  ;;  %v4013_v11 = vadd.f32 %v4977_v15, %v4649_v63  ;;  %v4154_v48 = vld [vmem:[%s5491_s19 + $0xf0] sm:$0xff]  ;;  %s7563_s19 = scalar_lea.sflag [#allocation6], %s284_s8 }
 0x523   : > { %v3792_v43 = vpop.f32.mrb[52].mxu1 }
 0x524   : > { %4275 = vst [vmem:[%s7353_s13 + $0xb8] sm:$0xff] %v4243_v19  ;;  %v4212_v23 = vadd.f32 %v4180_v4, %v4116_v10  ;;  %v4078_v37 = vmul.f32 %v7306_v7, %v4013_v11  ;;  %v4978_v22 = vadd.f32 %v3792_v43, %v7226_v1  ;;  %v3794_v57 = vpop.f32.mrb[53].mxu1  ;;  %v4182_v1 = vsel %vm292_vm0, %v4150_v59, 0.0 }
 0x525   : > { %v4186_v19 = vsel %vm292_vm0, %v4154_v48, 0.0 }
 0x526   : > { %v4244_v16 = vmax.f32 %v4212_v23, 0.0  ;;  %v4117_v39 = vadd.f32 %v7316_v14, %v4078_v37  ;;  %v4018_v54 = vadd.f32 %v4978_v22, %v4017_v35  ;;  %v4187_v37 = vsel %vm292_vm0, %v4155_v47, 0.0 }
 0x527   : > { %v3797_v13 = vpop.f32.mrb[54].mxu1 }
 0x528   : > { %4276 = vst [vmem:[%s7353_s13 + $0xc0] sm:$0xff] %v4244_v16  ;;  %v4213_v63 = vadd.f32 %v4181_v24, %v4117_v39  ;;  %v4079_v51 = vmul.f32 %v7306_v7, %v4018_v54  ;;  %v4979_v6 = vadd.f32 %v3797_v13, %v7230_v26  ;;  %v3799_v38 = vpop.f32.mrb[55].mxu1  ;;  %v4183_v26 = vsel %vm292_vm0, %v4151_v34, 0.0 }
 0x52a   : > { %v4245_v31 = vmax.f32 %v4213_v63, 0.0  ;;  %v4118_v42 = vadd.f32 %v7316_v14, %v4079_v51  ;;  %v4023_v61 = vadd.f32 %v4979_v6, %v7471_v20 }
 0x52b   : > { %v3802_v35 = vpop.f32.mrb[56].mxu1 }
 0x52c   : > { %4277 = vst [vmem:[%s7353_s13 + $0xc8] sm:$0xff] %v4245_v31  ;;  %v4214_v58 = vadd.f32 %v4182_v1, %v4118_v42  ;;  %v4080_v27 = vmul.f32 %v7306_v7, %v4023_v61  ;;  %v4980_v52 = vadd.f32 %v3802_v35, %v7235_v8  ;;  %v3804_v9 = vpop.f32.mrb[57].mxu1  ;;  %v4184_v8 = vsel %vm292_vm0, %v4152_v18, 0.0 }
 0x52e   : > { %v4246_v3 = vmax.f32 %v4214_v58, 0.0  ;;  %v4119_v62 = vadd.f32 %v7316_v14, %v4080_v27  ;;  %v4028_v41 = vadd.f32 %v4980_v52, %v7475_v45 }
 0x52f   : > { %v3807_v20 = vpop.f32.mrb[58].mxu1 }
 0x530   : > { %4278 = vst [vmem:[%s7353_s13 + $0xd0] sm:$0xff] %v4246_v3  ;;  %v4215_v55 = vadd.f32 %v4183_v26, %v4119_v62  ;;  %v4081_v53 = vmul.f32 %v7306_v7, %v4028_v41  ;;  %v4981_v2 = vadd.f32 %v3807_v20, %v7237_v21  ;;  %v3809_v46 = vpop.f32.mrb[59].mxu1  ;;  %v4185_v21 = vsel %vm292_vm0, %v4153_v44, 0.0 }
 0x532   : > { %v4247_v28 = vmax.f32 %v4215_v55, 0.0  ;;  %v4120_v33 = vadd.f32 %v7316_v14, %v4081_v53  ;;  %v4033_v5 = vadd.f32 %v4981_v2, %v7473_v25 }
 0x533   : > { %v3812_v45 = vpop.f32.mrb[60].mxu1 }
 0x534   : > { %4279 = vst [vmem:[%s7353_s13 + $0xd8] sm:$0xff] %v4247_v28  ;;  %v4216_v30 = vadd.f32 %v4184_v8, %v4120_v33  ;;  %v4082_v17 = vmul.f32 %v7306_v7, %v4033_v5  ;;  %v4982_v12 = vadd.f32 %v3812_v45, %v7245_v49  ;;  %v3814_v50 = vpop.f32.mrb[61].mxu1 }
 0x536   : > { %v4248_v36 = vmax.f32 %v4216_v30, 0.0  ;;  %v4121_v60 = vadd.f32 %v7316_v14, %v4082_v17  ;;  %v4038_v29 = vadd.f32 %v4982_v12, %v7479_v32 }
 0x537   : > { %v3817_v25 = vpop.f32.mrb[62].mxu1 }
 0x538   : > { %4280 = vst [vmem:[%s7353_s13 + $0xe0] sm:$0xff] %v4248_v36  ;;  %v4217_v15 = vadd.f32 %v4185_v21, %v4121_v60  ;;  %v4083_v0 = vmul.f32 %v7306_v7, %v4038_v29  ;;  %v4983_v49 = vadd.f32 %v3817_v25, %v7247_v56  ;;  %v3819_v4 = vpop.f32.mrb[63].mxu1 }
 0x53a   : > { %v4249_v10 = vmax.f32 %v4217_v15, 0.0  ;;  %v4122_v11 = vadd.f32 %v7316_v14, %v4083_v0  ;;  %v4043_v32 = vadd.f32 %v4983_v49, %v7477_v40 }
 0x53c   : > { %4281 = vst [vmem:[%s7353_s13 + $0xe8] sm:$0xff] %v4249_v10  ;;  %v4218_v43 = vadd.f32 %v4186_v19, %v4122_v11  ;;  %v4084_v23 = vmul.f32 %v7306_v7, %v4043_v32 }
 0x53e   : > { %v4250_v22 = vmax.f32 %v4218_v43, 0.0  ;;  %v4123_v56 = vadd.f32 %v7316_v14, %v4084_v23 }
 0x540   : > { %4282 = vst [vmem:[%s7353_s13 + $0xf0] sm:$0xff] %v4250_v22  ;;  %v4219_v57 = vadd.f32 %v4187_v37, %v4123_v56 }
 0x542   : > { %v4251_v40 = vmax.f32 %v4219_v57, 0.0 }
 0x544   : > { %4283 = vst [vmem:[%s7353_s13 + $0xf8] sm:$0xff] %v4251_v40 }
 0x545   : > { %5179 = shalt.err (!%p5176_p7)
}
 0x546   : > { %s5180_s8 = scalar_lea.hbm %s7556_s18, 4096  ;;  %s5184_s13 = scalar_lea.hbm %s7612_s7, 8192 }
 0x547   : > { %p5181_p8 = scmp.ne.s32.totalorder %s7556_s18, %s5180_s8  ;;  %p5185_p1 = scmp.lt.u32.totalorder %s7556_s18, %s7612_s7 }
 0x548   : > { %p5186_p0 = scmp.lt.u32.totalorder %s5184_s13, %s5180_s8  ;;  %p5188_p6 = scmp.lt.u32.totalorder %s5180_s8, %s7556_s18 }
 0x549   : > { %p5182_p11 = pnand %p5181_p8, %p7635_p9 }
 0x54a   : > { %p5187_p5 = por %p5186_p0, %p5185_p1 }
 0x54b   : > { %p5183_p13 = pneg %p5182_p11 }
 0x54c   : > { %p5189_p10 = por %p5188_p6, %p5187_p5 }
 0x54e   : > { %p5190_p12 = pnand %p5189_p10, %p5183_p13 }
 0x550   : > { %5193 = shalt.err (!%p5190_p12)
}
 0x551   : > { %s5248_s16 = smov 128  }
 0x552   : > { %5074 = dma.vmem_to_hbm [thread:$0]  (%p7635_p9), %s7558_s20, 4096, %s7556_s18, %s7563_s19, %s5248_s16, %s5248_s16, %s5239_s21  }
 0x553 PF: > { %p5086_p2 = scmp.ge.s32.totalorder %s5232_s27, 2  ;;  %s4313_s22 = sand.u32 1, %s5220_s24  }
 0x554   : > { %p7636_p3 = scmp.ne.s32.totalorder %s7621_s12, 0  ;;  %s4314_s28 = scalar_lea.sflag [#allocation6], %s4313_s22 }
 0x556   : > { %p5081_p4 = pnand %p5086_p2, %p7636_p3 }
 0x558   : > { %5215 = dma.done.wait (!%p5081_p4), %s4314_s28, 4096  }
 0x559   : > { %5217 = vsyncadd (!%p5081_p4), %s4314_s28, 4294963200  ;;  %p18_p7 = scmp.ge.s32.totalorder %s5314_s30, 4   ;;  %s7637_s24 = smov %s5224_s25 }
 0x55a   : > { %s7638_s25 = smov %s5228_s26  ;;  %s7639_s26 = smov %s5325_s10 }
 0x55b   : > { %s7640_s27 = smov %s5314_s30  ;;  %20 = sbr.rel (!%p18_p7) target bundleno = 4 (0x4), region = 94 }
 0x562   :  { %4319 = vsyncpa [#allocation5], 1 }
 0x563   :  { %4321 = vsyncpa [#allocation5 + $0x1], 1 }
 0x564   :  { %4322 = vsyncpa [#allocation6], 1 }
 0x565   :  { %4324 = vsyncpa [#allocation6 + $0x1], 1 }

</bundles_post_ra>
